<compile_context>
chip_gen: v7x
topology: tpu7x:2x2x1
jax: 0.10.0
libtpu: 0.0.40
codegen_flags: <defaults>
</compile_context>

<pallas_src>
import functools

import jax
import jax.numpy as jnp
from jax import lax
from jax.experimental import pallas as pl
from jax.experimental.pallas import tpu as pltpu

H = 256           # embedding / hidden size fixed by the PyTorch module
SUBLANE = 8       # rows per batch block (one sublane tile)
LANE = 128        # pad tiny output dim up to a full lane width
TIME_CHUNK = 8    # time steps per grid step (tunable per chip / VMEM budget)


def _lstm_head_kernel(x_ref, wih_ref, whh_ref, b_ref, h0_ref, c0_ref,
                      wout_ref, bout_ref,
                      out_ref, hT_ref, cT_ref,
                      h_scr, c_scr, pre_scr,
                      *, seq_len, time_padded):
    """One grid step = one (batch-block, time-chunk).

    Grid = (n_batch_blocks, n_time_chunks); the time axis is the minor,
    "arbitrary" axis and h/c are carried across it in VMEM scratch.
    Gate layout of wih/whh/b is [i, f, o, g]."""
    ti = pl.program_id(1)
    BB, Hh = h_scr.shape
    Tc = pre_scr.shape[0] // BB

    # --- init recurrent state at the first time chunk of each batch block ---
    @pl.when(ti == 0)
    def _():
        h_scr[...] = h0_ref[...]
        c_scr[...] = c0_ref[...]

    # --- (1) hoisted input projection for the whole chunk: one MXU matmul ---
    #     bf16 operands, f32 accumulation / pre-gate scratch.
    pre_scr[...] = (
        jnp.dot(x_ref[...], wih_ref[...], preferred_element_type=jnp.float32)
        + b_ref[...])                                     # (Tc*BB, 4H) f32

    whh = whh_ref[...]                                    # (H, 4H) bf16, loaded once
    t_base = ti * Tc

    # --- (2) serial LSTM recurrence over this chunk only --------------------
    #     Unrolled over the chunk (Tc steps) = partial unroll of the full-T
    #     loop: instruction count stays bounded by TIME_CHUNK.
    def step(t, carry):
        h, c = carry
        row = pl.multiple_of(t * BB, BB)
        gates = pre_scr[pl.ds(row, BB), :] + jnp.dot(
            h.astype(jnp.bfloat16), whh, preferred_element_type=jnp.float32)
        sig = jax.nn.sigmoid(gates[:, :3 * Hh])           # i | f | o slab
        g = jnp.tanh(gates[:, 3 * Hh:])                   # g slab
        c_new = sig[:, Hh:2 * Hh] * c + sig[:, :Hh] * g
        h_new = sig[:, 2 * Hh:] * jnp.tanh(c_new)
        if time_padded:                                   # mask padded trailing steps
            valid = (t_base + t) < seq_len
            h_new = jnp.where(valid, h_new, h)
            c_new = jnp.where(valid, c_new, c)
        return h_new, c_new

    h, c = lax.fori_loop(0, Tc, step, (h_scr[...], c_scr[...]), unroll=True)
    h_scr[...] = h
    c_scr[...] = c

    # --- (3) last chunk: final state + Linear head + sigmoid (lane-dense) ---
    @pl.when(ti == pl.num_programs(1) - 1)
    def _():
        hT_ref[...] = h
        cT_ref[...] = c
        logits = jnp.dot(h.astype(jnp.bfloat16), wout_ref[...],
                         preferred_element_type=jnp.float32) + bout_ref[...]
        out_ref[...] = jax.nn.sigmoid(logits)


def lstm_head_pallas(x, wih, whh, b, h0, c0, wout, bout,
                     *, seq_len, chunk, block_batch):
    """x: (n_b, Tp*BB, H) bf16 time-chunk-ordered embeddings per batch block.
       Returns (out (Bp, Opad), hT (Bp, H), cT (Bp, H))."""
    n_b, TBr, Hh = x.shape
    Tp = TBr // block_batch
    n_t = Tp // chunk
    Bp = n_b * block_batch
    H4 = wih.shape[1]
    Opad = wout.shape[1]

    kernel = functools.partial(_lstm_head_kernel,
                               seq_len=seq_len,
                               time_padded=(Tp != seq_len))

    grid_spec = pltpu.PrefetchScalarGridSpec(
        num_scalar_prefetch=0,
        grid=(n_b, n_t),
        in_specs=[
            # per-(batch-block, time-chunk) slab of embeddings, auto-pipelined
            pl.BlockSpec((None, chunk * block_batch, Hh),
                         lambda bi, ti: (bi, ti, 0)),
            # weights / biases: constant block index -> resident, no re-DMA
            pl.BlockSpec((Hh, H4), lambda bi, ti: (0, 0)),
            pl.BlockSpec((Hh, H4), lambda bi, ti: (0, 0)),
            pl.BlockSpec((1, H4), lambda bi, ti: (0, 0)),
            pl.BlockSpec((block_batch, Hh), lambda bi, ti: (bi, 0)),
            pl.BlockSpec((block_batch, Hh), lambda bi, ti: (bi, 0)),
            pl.BlockSpec((Hh, Opad), lambda bi, ti: (0, 0)),
            pl.BlockSpec((1, Opad), lambda bi, ti: (0, 0)),
        ],
        out_specs=(
            pl.BlockSpec((block_batch, Opad), lambda bi, ti: (bi, 0)),
            pl.BlockSpec((block_batch, Hh), lambda bi, ti: (bi, 0)),
            pl.BlockSpec((block_batch, Hh), lambda bi, ti: (bi, 0)),
        ),
        scratch_shapes=[
            pltpu.VMEM((block_batch, Hh), jnp.float32),            # h carry
            pltpu.VMEM((block_batch, Hh), jnp.float32),            # c carry
            pltpu.VMEM((chunk * block_batch, H4), jnp.float32),    # pre-gates chunk
        ],
    )
    return pl.pallas_call(
        kernel,
        out_shape=(
            jax.ShapeDtypeStruct((Bp, Opad), jnp.float32),
            jax.ShapeDtypeStruct((Bp, Hh), jnp.float32),
            jax.ShapeDtypeStruct((Bp, Hh), jnp.float32),
        ),
        grid_spec=grid_spec,
        compiler_params=pltpu.CompilerParams(
            dimension_semantics=("parallel", "arbitrary"),
            vmem_limit_bytes=32 * 1024 * 1024),
    )(x, wih, whh, b, h0, c0, wout, bout)


def _to_ifog(w):
    """Permute gate axis from PyTorch order [i, f, g, o] to kernel order [i, f, o, g]."""
    return jnp.concatenate([w[..., :2 * H], w[..., 3 * H:], w[..., 2 * H:3 * H]],
                           axis=-1)


def _pad_to(x, axis, size):
    pad = size - x.shape[axis]
    if pad <= 0:
        return x
    widths = [(0, 0)] * x.ndim
    widths[axis] = (0, pad)
    return jnp.pad(x, widths)


def init_params(key, word_count, output):
    """Parameters in PyTorch layout (gate order [i, f, g, o], combined bias)."""
    ks = jax.random.split(key, 7)
    s = 0.05
    return dict(
        emb=jax.random.normal(ks[0], (word_count, H), jnp.float32) * s,
        wih_t=jax.random.normal(ks[1], (H, 4 * H), jnp.float32) * s,    # = W_ih^T
        whh_t=jax.random.normal(ks[2], (H, 4 * H), jnp.float32) * s,    # = W_hh^T
        b=jax.random.normal(ks[3], (1, 4 * H), jnp.float32) * s,        # = b_ih + b_hh
        wout_t=jax.random.normal(ks[4], (H, output), jnp.float32) * s,  # = W_out^T
        bout=jax.random.normal(ks[5], (1, output), jnp.float32) * s,
    )


def sentiment_forward(params, X, hidden):
    """X: (B, 1, T) int32 tokens. hidden = (h0, c0), each (1, B, H) as in PyTorch."""
    h0, c0 = hidden
    B = X.shape[0]
    T = X.shape[-1]
    O = params["wout_t"].shape[1]

    BB = SUBLANE
    Bp = max(BB, ((B + BB - 1) // BB) * BB)
    n_b = Bp // BB
    Tc = min(TIME_CHUNK, T)
    Tp = ((T + Tc - 1) // Tc) * Tc
    Opad = max(LANE, ((O + LANE - 1) // LANE) * LANE)

    # Embedding gathered directly in (batch-block, time, row) order: permute the
    # tiny int token matrix, not the (B, T, 256) activations.
    tok = X[:, 0, :]                                      # (B, T) int
    tok = _pad_to(tok, 0, Bp)                             # pad batch with token 0
    tok = tok.reshape(n_b, BB, T).transpose(0, 2, 1)      # (n_b, T, BB)
    tok = _pad_to(tok, 1, Tp)                             # pad time (masked in kernel)
    x = jnp.take(params["emb"], tok, axis=0)              # (n_b, Tp, BB, H)
    x = x.reshape(n_b, Tp * BB, H).astype(jnp.bfloat16)   # bf16 MXU operand
    # F.dropout(p=0.5, training=False) in eval mode is the identity.
    # TODO(synk): training-mode dropout (random mask + 1/(1-p) scaling) not implemented.
    # TODO(synk): embedding gather still runs in the wrapper (HBM roundtrip of the
    #             gathered activations); an in-kernel DMA gather would remove it.

    h0p = _pad_to(h0[0], 0, Bp)
    c0p = _pad_to(c0[0], 0, Bp)

    # Kernel-layout weights: gate order [i, f, o, g]; matmul operands in bf16;
    # output head zero-padded to a full 128-lane width.
    wih_k = _to_ifog(params["wih_t"]).astype(jnp.bfloat16)
    whh_k = _to_ifog(params["whh_t"]).astype(jnp.bfloat16)
    b_k = _to_ifog(params["b"])
    wout_k = _pad_to(params["wout_t"], 1, Opad).astype(jnp.bfloat16)
    bout_k = _pad_to(params["bout"], 1, Opad)

    out_p, hT_p, cT_p = lstm_head_pallas(
        x, wih_k, whh_k, b_k, h0p, c0p, wout_k, bout_k,
        seq_len=T, chunk=Tc, block_batch=BB)

    out = out_p[:B, :O]
    hT = hT_p[:B]
    cT = cT_p[:B]
    return out, (hT[None, ...], cT[None, ...])


def _reference_forward(params, X, hidden):
    """Pure-JAX f32 reference with PyTorch semantics (gate order [i, f, g, o])."""
    h, c = hidden[0][0], hidden[1][0]
    ebd = jnp.squeeze(jnp.take(params["emb"], X, axis=0), axis=1)   # (B, T, H)
    T = ebd.shape[1]
    for t in range(T):
        gates = ebd[:, t, :] @ params["wih_t"] + h @ params["whh_t"] + params["b"]
        i = jax.nn.sigmoid(gates[:, 0 * H:1 * H])
        f = jax.nn.sigmoid(gates[:, 1 * H:2 * H])
        g = jnp.tanh(gates[:, 2 * H:3 * H])
        o = jax.nn.sigmoid(gates[:, 3 * H:4 * H])
        c = f * c + i * g
        h = o * jnp.tanh(c)
    out = jax.nn.sigmoid(h @ params["wout_t"] + params["bout"])
    return out, (h[None], c[None])


if __name__ == "__main__":
    word_count, output = 100, 2
    B, T = 2, 16   # T = 16 exercises two pipelined time chunks (TIME_CHUNK = 8)

    key = jax.random.PRNGKey(0)
    kp, kx = jax.random.split(key)
    params = init_params(kp, word_count, output)

    X = jax.random.randint(kx, (B, 1, T), 0, word_count, dtype=jnp.int32)
    hidden = (jnp.zeros((1, B, H), jnp.float32), jnp.zeros((1, B, H), jnp.float32))

    fwd = jax.jit(sentiment_forward)
    out, (hT, cT) = fwd(params, X, hidden)
    out = jax.block_until_ready(out)
    hT = jax.block_until_ready(hT)
    cT = jax.block_until_ready(cT)

    ref_out, (ref_h, ref_c) = _reference_forward(params, X, hidden)
    assert out.shape == (B, output) and hT.shape == (1, B, H) and cT.shape == (1, B, H)
    # bf16 matmul operands vs the pure-f32 reference -> loosened tolerance.
    assert jnp.allclose(out, ref_out, atol=2e-2)
    assert jnp.allclose(hT, ref_h, atol=2e-2)
    assert jnp.allclose(cT, ref_c, atol=2e-2)

    print("KERNEL_OK")
</pallas_src>

<mosaic_0001>
module attributes {stable_mosaic.version = 11 : i64} {
  func.func @_lstm_head_kernel(%arg0: i32, %arg1: i32, %arg2: memref<1x64x256xbf16, #tpu.memory_space<vmem>>, %arg3: memref<256x1024xbf16, #tpu.memory_space<vmem>>, %arg4: memref<256x1024xbf16, #tpu.memory_space<vmem>>, %arg5: memref<1x1024xf32, #tpu.memory_space<vmem>>, %arg6: memref<8x256xf32, #tpu.memory_space<vmem>>, %arg7: memref<8x256xf32, #tpu.memory_space<vmem>>, %arg8: memref<256x128xbf16, #tpu.memory_space<vmem>>, %arg9: memref<1x128xf32, #tpu.memory_space<vmem>>, %arg10: memref<8x128xf32, #tpu.memory_space<vmem>>, %arg11: memref<8x256xf32, #tpu.memory_space<vmem>>, %arg12: memref<8x256xf32, #tpu.memory_space<vmem>>, %arg13: memref<8x256xf32, #tpu.memory_space<vmem>>, %arg14: memref<8x256xf32, #tpu.memory_space<vmem>>, %arg15: memref<64x1024xf32, #tpu.memory_space<vmem>>) attributes {dimension_semantics = [#tpu.dimension_semantics<parallel>, #tpu.dimension_semantics<arbitrary>], iteration_bounds = array<i64: 1, 2>, scalar_prefetch = 0 : i64, scratch_operands = 3 : i64, tpu.core_type = #tpu.core_type<tc>, window_params = [{transform_indices = @transform_0, window_bounds = array<i64: 1, 64, 256>}, {pipeline_mode = #tpu.pipeline_mode<synchronous>, transform_indices = @transform_1, window_bounds = array<i64: 256, 1024>}, {pipeline_mode = #tpu.pipeline_mode<synchronous>, transform_indices = @transform_2, window_bounds = array<i64: 256, 1024>}, {pipeline_mode = #tpu.pipeline_mode<synchronous>, transform_indices = @transform_3, window_bounds = array<i64: 1, 1024>}, {transform_indices = @transform_4, window_bounds = array<i64: 8, 256>}, {transform_indices = @transform_5, window_bounds = array<i64: 8, 256>}, {pipeline_mode = #tpu.pipeline_mode<synchronous>, transform_indices = @transform_6, window_bounds = array<i64: 256, 128>}, {pipeline_mode = #tpu.pipeline_mode<synchronous>, transform_indices = @transform_7, window_bounds = array<i64: 1, 128>}, {transform_indices = @transform_8, window_bounds = array<i64: 8, 128>}, {transform_indices = @transform_9, window_bounds = array<i64: 8, 256>}, {transform_indices = @transform_10, window_bounds = array<i64: 8, 256>}]} {
    %c0_i32 = arith.constant 0 : i32
    %0 = arith.cmpi eq, %arg1, %c0_i32 : i32
    %1 = arith.extui %0 : i1 to i32
    %c0_i32_0 = arith.constant 0 : i32
    %2 = arith.cmpi ne, %1, %c0_i32_0 : i32
    scf.if %2 {
      %c0_54 = arith.constant 0 : index
      %c0_55 = arith.constant 0 : index
      %203 = vector.load %arg6[%c0_54, %c0_55] : memref<8x256xf32, #tpu.memory_space<vmem>>, vector<8x256xf32>
      %c0_56 = arith.constant 0 : index
      %c0_57 = arith.constant 0 : index
      %204 = vector.load %arg13[%c0_56, %c0_57] : memref<8x256xf32, #tpu.memory_space<vmem>>, vector<8x256xf32>
      tpu.vector_store %arg13[%c0_56, %c0_57], %203 {strides = array<i32>} : memref<8x256xf32, #tpu.memory_space<vmem>>, vector<8x256xf32>,
      %c0_58 = arith.constant 0 : index
      %c0_59 = arith.constant 0 : index
      %205 = vector.load %arg7[%c0_58, %c0_59] : memref<8x256xf32, #tpu.memory_space<vmem>>, vector<8x256xf32>
      %c0_60 = arith.constant 0 : index
      %c0_61 = arith.constant 0 : index
      %206 = vector.load %arg14[%c0_60, %c0_61] : memref<8x256xf32, #tpu.memory_space<vmem>>, vector<8x256xf32>
      tpu.vector_store %arg14[%c0_60, %c0_61], %205 {strides = array<i32>} : memref<8x256xf32, #tpu.memory_space<vmem>>, vector<8x256xf32>,
    } else {
    }
    %c0 = arith.constant 0 : index
    %c0_1 = arith.constant 0 : index
    %c0_2 = arith.constant 0 : index
    %3 = vector.load %arg2[%c0, %c0_1, %c0_2] : memref<1x64x256xbf16, #tpu.memory_space<vmem>>, vector<1x64x256xbf16>
    %4 = vector.shape_cast %3 : vector<1x64x256xbf16> to vector<64x256xbf16>
    %c0_3 = arith.constant 0 : index
    %c0_4 = arith.constant 0 : index
    %5 = vector.load %arg3[%c0_3, %c0_4] : memref<256x1024xbf16, #tpu.memory_space<vmem>>, vector<256x1024xbf16>
    %cst = arith.constant dense<0.000000e+00> : vector<64x1024xf32>
    %6 = tpu.matmul %4, %5, %cst {dimension_numbers = #tpu.dot_dimension_numbers<[1], [0], [0], [1], [0, 0, 1, 1], [], []>} : vector<64x256xbf16>, vector<256x1024xbf16>, vector<64x1024xf32> -> vector<64x1024xf32>
    %c0_5 = arith.constant 0 : index
    %c0_6 = arith.constant 0 : index
    %7 = vector.load %arg5[%c0_5, %c0_6] : memref<1x1024xf32, #tpu.memory_space<vmem>>, vector<1x1024xf32>
    %8 = vector.broadcast %7 : vector<1x1024xf32> to vector<64x1024xf32>
    %9 = arith.addf %6, %8 : vector<64x1024xf32>
    %c0_7 = arith.constant 0 : index
    %c0_8 = arith.constant 0 : index
    %10 = vector.load %arg15[%c0_7, %c0_8] : memref<64x1024xf32, #tpu.memory_space<vmem>>, vector<64x1024xf32>
    tpu.vector_store %arg15[%c0_7, %c0_8], %9 {strides = array<i32>} : memref<64x1024xf32, #tpu.memory_space<vmem>>, vector<64x1024xf32>,
    %c0_9 = arith.constant 0 : index
    %c0_10 = arith.constant 0 : index
    %11 = vector.load %arg4[%c0_9, %c0_10] : memref<256x1024xbf16, #tpu.memory_space<vmem>>, vector<256x1024xbf16>
    %c0_11 = arith.constant 0 : index
    %c0_12 = arith.constant 0 : index
    %12 = vector.load %arg13[%c0_11, %c0_12] : memref<8x256xf32, #tpu.memory_space<vmem>>, vector<8x256xf32>
    %c0_13 = arith.constant 0 : index
    %c0_14 = arith.constant 0 : index
    %13 = vector.load %arg14[%c0_13, %c0_14] : memref<8x256xf32, #tpu.memory_space<vmem>>, vector<8x256xf32>
    %c0_i32_15 = arith.constant 0 : i32
    %c8_i32 = arith.constant 8 : i32
    %14 = arith.muli %c0_i32_15, %c8_i32 : i32
    %15 = tpu.assume_multiple %14, 8 : i32
    %16 = arith.index_cast %15 : i32 to index
    %c0_16 = arith.constant 0 : index
    %17 = vector.load %arg15[%16, %c0_16] : memref<64x1024xf32, #tpu.memory_space<vmem>>, vector<8x1024xf32>
    %18 = arith.truncf %12 : vector<8x256xf32> to vector<8x256xbf16>
    %cst_17 = arith.constant dense<0.000000e+00> : vector<8x1024xf32>
    %19 = tpu.matmul %18, %11, %cst_17 {dimension_numbers = #tpu.dot_dimension_numbers<[1], [0], [0], [1], [0, 0, 1, 1], [], []>} : vector<8x256xbf16>, vector<256x1024xbf16>, vector<8x1024xf32> -> vector<8x1024xf32>
    %20 = arith.addf %17, %19 : vector<8x1024xf32>
    %21 = vector.extract_strided_slice %20 {offsets = [0, 0], sizes = [8, 768], strides = [1, 1]} : vector<8x1024xf32> to vector<8x768xf32>
    %22 = arith.negf %21 : vector<8x768xf32>
    %23 = math.exp %22 : vector<8x768xf32>
    %cst_18 = arith.constant 1.000000e+00 : f32
    %24 = vector.broadcast %cst_18 : f32 to vector<8x768xf32>
    %25 = arith.addf %24, %23 : vector<8x768xf32>
    %26 = arith.divf %24, %25 : vector<8x768xf32>
    %27 = vector.extract_strided_slice %20 {offsets = [0, 768], sizes = [8, 256], strides = [1, 1]} : vector<8x1024xf32> to vector<8x256xf32>
    %28 = math.tanh %27 : vector<8x256xf32>
    %29 = vector.extract_strided_slice %26 {offsets = [0, 256], sizes = [8, 256], strides = [1, 1]} : vector<8x768xf32> to vector<8x256xf32>
    %30 = arith.mulf %29, %13 : vector<8x256xf32>
    %31 = vector.extract_strided_slice %26 {offsets = [0, 0], sizes = [8, 256], strides = [1, 1]} : vector<8x768xf32> to vector<8x256xf32>
    %32 = arith.mulf %31, %28 : vector<8x256xf32>
    %33 = arith.addf %30, %32 : vector<8x256xf32>
    %34 = vector.extract_strided_slice %26 {offsets = [0, 512], sizes = [8, 256], strides = [1, 1]} : vector<8x768xf32> to vector<8x256xf32>
    %35 = math.tanh %33 : vector<8x256xf32>
    %36 = arith.mulf %34, %35 : vector<8x256xf32>
    %c1_i32 = arith.constant 1 : i32
    %c8_i32_19 = arith.constant 8 : i32
    %37 = arith.muli %c1_i32, %c8_i32_19 : i32
    %38 = tpu.assume_multiple %37, 8 : i32
    %39 = arith.index_cast %38 : i32 to index
    %c0_20 = arith.constant 0 : index
    %40 = vector.load %arg15[%39, %c0_20] : memref<64x1024xf32, #tpu.memory_space<vmem>>, vector<8x1024xf32>
    %41 = arith.truncf %36 : vector<8x256xf32> to vector<8x256xbf16>
    %cst_21 = arith.constant dense<0.000000e+00> : vector<8x1024xf32>
    %42 = tpu.matmul %41, %11, %cst_21 {dimension_numbers = #tpu.dot_dimension_numbers<[1], [0], [0], [1], [0, 0, 1, 1], [], []>} : vector<8x256xbf16>, vector<256x1024xbf16>, vector<8x1024xf32> -> vector<8x1024xf32>
    %43 = arith.addf %40, %42 : vector<8x1024xf32>
    %44 = vector.extract_strided_slice %43 {offsets = [0, 0], sizes = [8, 768], strides = [1, 1]} : vector<8x1024xf32> to vector<8x768xf32>
    %45 = arith.negf %44 : vector<8x768xf32>
    %46 = math.exp %45 : vector<8x768xf32>
    %cst_22 = arith.constant 1.000000e+00 : f32
    %47 = vector.broadcast %cst_22 : f32 to vector<8x768xf32>
    %48 = arith.addf %47, %46 : vector<8x768xf32>
    %49 = arith.divf %47, %48 : vector<8x768xf32>
    %50 = vector.extract_strided_slice %43 {offsets = [0, 768], sizes = [8, 256], strides = [1, 1]} : vector<8x1024xf32> to vector<8x256xf32>
    %51 = math.tanh %50 : vector<8x256xf32>
    %52 = vector.extract_strided_slice %49 {offsets = [0, 256], sizes = [8, 256], strides = [1, 1]} : vector<8x768xf32> to vector<8x256xf32>
    %53 = arith.mulf %52, %33 : vector<8x256xf32>
    %54 = vector.extract_strided_slice %49 {offsets = [0, 0], sizes = [8, 256], strides = [1, 1]} : vector<8x768xf32> to vector<8x256xf32>
    %55 = arith.mulf %54, %51 : vector<8x256xf32>
    %56 = arith.addf %53, %55 : vector<8x256xf32>
    %57 = vector.extract_strided_slice %49 {offsets = [0, 512], sizes = [8, 256], strides = [1, 1]} : vector<8x768xf32> to vector<8x256xf32>
    %58 = math.tanh %56 : vector<8x256xf32>
    %59 = arith.mulf %57, %58 : vector<8x256xf32>
    %c2_i32 = arith.constant 2 : i32
    %c8_i32_23 = arith.constant 8 : i32
    %60 = arith.muli %c2_i32, %c8_i32_23 : i32
    %61 = tpu.assume_multiple %60, 8 : i32
    %62 = arith.index_cast %61 : i32 to index
    %c0_24 = arith.constant 0 : index
    %63 = vector.load %arg15[%62, %c0_24] : memref<64x1024xf32, #tpu.memory_space<vmem>>, vector<8x1024xf32>
    %64 = arith.truncf %59 : vector<8x256xf32> to vector<8x256xbf16>
    %cst_25 = arith.constant dense<0.000000e+00> : vector<8x1024xf32>
    %65 = tpu.matmul %64, %11, %cst_25 {dimension_numbers = #tpu.dot_dimension_numbers<[1], [0], [0], [1], [0, 0, 1, 1], [], []>} : vector<8x256xbf16>, vector<256x1024xbf16>, vector<8x1024xf32> -> vector<8x1024xf32>
    %66 = arith.addf %63, %65 : vector<8x1024xf32>
    %67 = vector.extract_strided_slice %66 {offsets = [0, 0], sizes = [8, 768], strides = [1, 1]} : vector<8x1024xf32> to vector<8x768xf32>
    %68 = arith.negf %67 : vector<8x768xf32>
    %69 = math.exp %68 : vector<8x768xf32>
    %cst_26 = arith.constant 1.000000e+00 : f32
    %70 = vector.broadcast %cst_26 : f32 to vector<8x768xf32>
    %71 = arith.addf %70, %69 : vector<8x768xf32>
    %72 = arith.divf %70, %71 : vector<8x768xf32>
    %73 = vector.extract_strided_slice %66 {offsets = [0, 768], sizes = [8, 256], strides = [1, 1]} : vector<8x1024xf32> to vector<8x256xf32>
    %74 = math.tanh %73 : vector<8x256xf32>
    %75 = vector.extract_strided_slice %72 {offsets = [0, 256], sizes = [8, 256], strides = [1, 1]} : vector<8x768xf32> to vector<8x256xf32>
    %76 = arith.mulf %75, %56 : vector<8x256xf32>
    %77 = vector.extract_strided_slice %72 {offsets = [0, 0], sizes = [8, 256], strides = [1, 1]} : vector<8x768xf32> to vector<8x256xf32>
    %78 = arith.mulf %77, %74 : vector<8x256xf32>
    %79 = arith.addf %76, %78 : vector<8x256xf32>
    %80 = vector.extract_strided_slice %72 {offsets = [0, 512], sizes = [8, 256], strides = [1, 1]} : vector<8x768xf32> to vector<8x256xf32>
    %81 = math.tanh %79 : vector<8x256xf32>
    %82 = arith.mulf %80, %81 : vector<8x256xf32>
    %c3_i32 = arith.constant 3 : i32
    %c8_i32_27 = arith.constant 8 : i32
    %83 = arith.muli %c3_i32, %c8_i32_27 : i32
    %84 = tpu.assume_multiple %83, 8 : i32
    %85 = arith.index_cast %84 : i32 to index
    %c0_28 = arith.constant 0 : index
    %86 = vector.load %arg15[%85, %c0_28] : memref<64x1024xf32, #tpu.memory_space<vmem>>, vector<8x1024xf32>
    %87 = arith.truncf %82 : vector<8x256xf32> to vector<8x256xbf16>
    %cst_29 = arith.constant dense<0.000000e+00> : vector<8x1024xf32>
    %88 = tpu.matmul %87, %11, %cst_29 {dimension_numbers = #tpu.dot_dimension_numbers<[1], [0], [0], [1], [0, 0, 1, 1], [], []>} : vector<8x256xbf16>, vector<256x1024xbf16>, vector<8x1024xf32> -> vector<8x1024xf32>
    %89 = arith.addf %86, %88 : vector<8x1024xf32>
    %90 = vector.extract_strided_slice %89 {offsets = [0, 0], sizes = [8, 768], strides = [1, 1]} : vector<8x1024xf32> to vector<8x768xf32>
    %91 = arith.negf %90 : vector<8x768xf32>
    %92 = math.exp %91 : vector<8x768xf32>
    %cst_30 = arith.constant 1.000000e+00 : f32
    %93 = vector.broadcast %cst_30 : f32 to vector<8x768xf32>
    %94 = arith.addf %93, %92 : vector<8x768xf32>
    %95 = arith.divf %93, %94 : vector<8x768xf32>
    %96 = vector.extract_strided_slice %89 {offsets = [0, 768], sizes = [8, 256], strides = [1, 1]} : vector<8x1024xf32> to vector<8x256xf32>
    %97 = math.tanh %96 : vector<8x256xf32>
    %98 = vector.extract_strided_slice %95 {offsets = [0, 256], sizes = [8, 256], strides = [1, 1]} : vector<8x768xf32> to vector<8x256xf32>
    %99 = arith.mulf %98, %79 : vector<8x256xf32>
    %100 = vector.extract_strided_slice %95 {offsets = [0, 0], sizes = [8, 256], strides = [1, 1]} : vector<8x768xf32> to vector<8x256xf32>
    %101 = arith.mulf %100, %97 : vector<8x256xf32>
    %102 = arith.addf %99, %101 : vector<8x256xf32>
    %103 = vector.extract_strided_slice %95 {offsets = [0, 512], sizes = [8, 256], strides = [1, 1]} : vector<8x768xf32> to vector<8x256xf32>
    %104 = math.tanh %102 : vector<8x256xf32>
    %105 = arith.mulf %103, %104 : vector<8x256xf32>
    %c4_i32 = arith.constant 4 : i32
    %c8_i32_31 = arith.constant 8 : i32
    %106 = arith.muli %c4_i32, %c8_i32_31 : i32
    %107 = tpu.assume_multiple %106, 8 : i32
    %108 = arith.index_cast %107 : i32 to index
    %c0_32 = arith.constant 0 : index
    %109 = vector.load %arg15[%108, %c0_32] : memref<64x1024xf32, #tpu.memory_space<vmem>>, vector<8x1024xf32>
    %110 = arith.truncf %105 : vector<8x256xf32> to vector<8x256xbf16>
    %cst_33 = arith.constant dense<0.000000e+00> : vector<8x1024xf32>
    %111 = tpu.matmul %110, %11, %cst_33 {dimension_numbers = #tpu.dot_dimension_numbers<[1], [0], [0], [1], [0, 0, 1, 1], [], []>} : vector<8x256xbf16>, vector<256x1024xbf16>, vector<8x1024xf32> -> vector<8x1024xf32>
    %112 = arith.addf %109, %111 : vector<8x1024xf32>
    %113 = vector.extract_strided_slice %112 {offsets = [0, 0], sizes = [8, 768], strides = [1, 1]} : vector<8x1024xf32> to vector<8x768xf32>
    %114 = arith.negf %113 : vector<8x768xf32>
    %115 = math.exp %114 : vector<8x768xf32>
    %cst_34 = arith.constant 1.000000e+00 : f32
    %116 = vector.broadcast %cst_34 : f32 to vector<8x768xf32>
    %117 = arith.addf %116, %115 : vector<8x768xf32>
    %118 = arith.divf %116, %117 : vector<8x768xf32>
    %119 = vector.extract_strided_slice %112 {offsets = [0, 768], sizes = [8, 256], strides = [1, 1]} : vector<8x1024xf32> to vector<8x256xf32>
    %120 = math.tanh %119 : vector<8x256xf32>
    %121 = vector.extract_strided_slice %118 {offsets = [0, 256], sizes = [8, 256], strides = [1, 1]} : vector<8x768xf32> to vector<8x256xf32>
    %122 = arith.mulf %121, %102 : vector<8x256xf32>
    %123 = vector.extract_strided_slice %118 {offsets = [0, 0], sizes = [8, 256], strides = [1, 1]} : vector<8x768xf32> to vector<8x256xf32>
    %124 = arith.mulf %123, %120 : vector<8x256xf32>
    %125 = arith.addf %122, %124 : vector<8x256xf32>
    %126 = vector.extract_strided_slice %118 {offsets = [0, 512], sizes = [8, 256], strides = [1, 1]} : vector<8x768xf32> to vector<8x256xf32>
    %127 = math.tanh %125 : vector<8x256xf32>
    %128 = arith.mulf %126, %127 : vector<8x256xf32>
    %c5_i32 = arith.constant 5 : i32
    %c8_i32_35 = arith.constant 8 : i32
    %129 = arith.muli %c5_i32, %c8_i32_35 : i32
    %130 = tpu.assume_multiple %129, 8 : i32
    %131 = arith.index_cast %130 : i32 to index
    %c0_36 = arith.constant 0 : index
    %132 = vector.load %arg15[%131, %c0_36] : memref<64x1024xf32, #tpu.memory_space<vmem>>, vector<8x1024xf32>
    %133 = arith.truncf %128 : vector<8x256xf32> to vector<8x256xbf16>
    %cst_37 = arith.constant dense<0.000000e+00> : vector<8x1024xf32>
    %134 = tpu.matmul %133, %11, %cst_37 {dimension_numbers = #tpu.dot_dimension_numbers<[1], [0], [0], [1], [0, 0, 1, 1], [], []>} : vector<8x256xbf16>, vector<256x1024xbf16>, vector<8x1024xf32> -> vector<8x1024xf32>
    %135 = arith.addf %132, %134 : vector<8x1024xf32>
    %136 = vector.extract_strided_slice %135 {offsets = [0, 0], sizes = [8, 768], strides = [1, 1]} : vector<8x1024xf32> to vector<8x768xf32>
    %137 = arith.negf %136 : vector<8x768xf32>
    %138 = math.exp %137 : vector<8x768xf32>
    %cst_38 = arith.constant 1.000000e+00 : f32
    %139 = vector.broadcast %cst_38 : f32 to vector<8x768xf32>
    %140 = arith.addf %139, %138 : vector<8x768xf32>
    %141 = arith.divf %139, %140 : vector<8x768xf32>
    %142 = vector.extract_strided_slice %135 {offsets = [0, 768], sizes = [8, 256], strides = [1, 1]} : vector<8x1024xf32> to vector<8x256xf32>
    %143 = math.tanh %142 : vector<8x256xf32>
    %144 = vector.extract_strided_slice %141 {offsets = [0, 256], sizes = [8, 256], strides = [1, 1]} : vector<8x768xf32> to vector<8x256xf32>
    %145 = arith.mulf %144, %125 : vector<8x256xf32>
    %146 = vector.extract_strided_slice %141 {offsets = [0, 0], sizes = [8, 256], strides = [1, 1]} : vector<8x768xf32> to vector<8x256xf32>
    %147 = arith.mulf %146, %143 : vector<8x256xf32>
    %148 = arith.addf %145, %147 : vector<8x256xf32>
    %149 = vector.extract_strided_slice %141 {offsets = [0, 512], sizes = [8, 256], strides = [1, 1]} : vector<8x768xf32> to vector<8x256xf32>
    %150 = math.tanh %148 : vector<8x256xf32>
    %151 = arith.mulf %149, %150 : vector<8x256xf32>
    %c6_i32 = arith.constant 6 : i32
    %c8_i32_39 = arith.constant 8 : i32
    %152 = arith.muli %c6_i32, %c8_i32_39 : i32
    %153 = tpu.assume_multiple %152, 8 : i32
    %154 = arith.index_cast %153 : i32 to index
    %c0_40 = arith.constant 0 : index
    %155 = vector.load %arg15[%154, %c0_40] : memref<64x1024xf32, #tpu.memory_space<vmem>>, vector<8x1024xf32>
    %156 = arith.truncf %151 : vector<8x256xf32> to vector<8x256xbf16>
    %cst_41 = arith.constant dense<0.000000e+00> : vector<8x1024xf32>
    %157 = tpu.matmul %156, %11, %cst_41 {dimension_numbers = #tpu.dot_dimension_numbers<[1], [0], [0], [1], [0, 0, 1, 1], [], []>} : vector<8x256xbf16>, vector<256x1024xbf16>, vector<8x1024xf32> -> vector<8x1024xf32>
    %158 = arith.addf %155, %157 : vector<8x1024xf32>
    %159 = vector.extract_strided_slice %158 {offsets = [0, 0], sizes = [8, 768], strides = [1, 1]} : vector<8x1024xf32> to vector<8x768xf32>
    %160 = arith.negf %159 : vector<8x768xf32>
    %161 = math.exp %160 : vector<8x768xf32>
    %cst_42 = arith.constant 1.000000e+00 : f32
    %162 = vector.broadcast %cst_42 : f32 to vector<8x768xf32>
    %163 = arith.addf %162, %161 : vector<8x768xf32>
    %164 = arith.divf %162, %163 : vector<8x768xf32>
    %165 = vector.extract_strided_slice %158 {offsets = [0, 768], sizes = [8, 256], strides = [1, 1]} : vector<8x1024xf32> to vector<8x256xf32>
    %166 = math.tanh %165 : vector<8x256xf32>
    %167 = vector.extract_strided_slice %164 {offsets = [0, 256], sizes = [8, 256], strides = [1, 1]} : vector<8x768xf32> to vector<8x256xf32>
    %168 = arith.mulf %167, %148 : vector<8x256xf32>
    %169 = vector.extract_strided_slice %164 {offsets = [0, 0], sizes = [8, 256], strides = [1, 1]} : vector<8x768xf32> to vector<8x256xf32>
    %170 = arith.mulf %169, %166 : vector<8x256xf32>
    %171 = arith.addf %168, %170 : vector<8x256xf32>
    %172 = vector.extract_strided_slice %164 {offsets = [0, 512], sizes = [8, 256], strides = [1, 1]} : vector<8x768xf32> to vector<8x256xf32>
    %173 = math.tanh %171 : vector<8x256xf32>
    %174 = arith.mulf %172, %173 : vector<8x256xf32>
    %c7_i32 = arith.constant 7 : i32
    %c8_i32_43 = arith.constant 8 : i32
    %175 = arith.muli %c7_i32, %c8_i32_43 : i32
    %176 = tpu.assume_multiple %175, 8 : i32
    %177 = arith.index_cast %176 : i32 to index
    %c0_44 = arith.constant 0 : index
    %178 = vector.load %arg15[%177, %c0_44] : memref<64x1024xf32, #tpu.memory_space<vmem>>, vector<8x1024xf32>
    %179 = arith.truncf %174 : vector<8x256xf32> to vector<8x256xbf16>
    %cst_45 = arith.constant dense<0.000000e+00> : vector<8x1024xf32>
    %180 = tpu.matmul %179, %11, %cst_45 {dimension_numbers = #tpu.dot_dimension_numbers<[1], [0], [0], [1], [0, 0, 1, 1], [], []>} : vector<8x256xbf16>, vector<256x1024xbf16>, vector<8x1024xf32> -> vector<8x1024xf32>
    %181 = arith.addf %178, %180 : vector<8x1024xf32>
    %182 = vector.extract_strided_slice %181 {offsets = [0, 0], sizes = [8, 768], strides = [1, 1]} : vector<8x1024xf32> to vector<8x768xf32>
    %183 = arith.negf %182 : vector<8x768xf32>
    %184 = math.exp %183 : vector<8x768xf32>
    %cst_46 = arith.constant 1.000000e+00 : f32
    %185 = vector.broadcast %cst_46 : f32 to vector<8x768xf32>
    %186 = arith.addf %185, %184 : vector<8x768xf32>
    %187 = arith.divf %185, %186 : vector<8x768xf32>
    %188 = vector.extract_strided_slice %181 {offsets = [0, 768], sizes = [8, 256], strides = [1, 1]} : vector<8x1024xf32> to vector<8x256xf32>
    %189 = math.tanh %188 : vector<8x256xf32>
    %190 = vector.extract_strided_slice %187 {offsets = [0, 256], sizes = [8, 256], strides = [1, 1]} : vector<8x768xf32> to vector<8x256xf32>
    %191 = arith.mulf %190, %171 : vector<8x256xf32>
    %192 = vector.extract_strided_slice %187 {offsets = [0, 0], sizes = [8, 256], strides = [1, 1]} : vector<8x768xf32> to vector<8x256xf32>
    %193 = arith.mulf %192, %189 : vector<8x256xf32>
    %194 = arith.addf %191, %193 : vector<8x256xf32>
    %195 = vector.extract_strided_slice %187 {offsets = [0, 512], sizes = [8, 256], strides = [1, 1]} : vector<8x768xf32> to vector<8x256xf32>
    %196 = math.tanh %194 : vector<8x256xf32>
    %197 = arith.mulf %195, %196 : vector<8x256xf32>
    %c8_i32_47 = arith.constant 8 : i32
    %c0_48 = arith.constant 0 : index
    %c0_49 = arith.constant 0 : index
    %198 = vector.load %arg13[%c0_48, %c0_49] : memref<8x256xf32, #tpu.memory_space<vmem>>, vector<8x256xf32>
    tpu.vector_store %arg13[%c0_48, %c0_49], %197 {strides = array<i32>} : memref<8x256xf32, #tpu.memory_space<vmem>>, vector<8x256xf32>,
    %c0_50 = arith.constant 0 : index
    %c0_51 = arith.constant 0 : index
    %199 = vector.load %arg14[%c0_50, %c0_51] : memref<8x256xf32, #tpu.memory_space<vmem>>, vector<8x256xf32>
    tpu.vector_store %arg14[%c0_50, %c0_51], %194 {strides = array<i32>} : memref<8x256xf32, #tpu.memory_space<vmem>>, vector<8x256xf32>,
    %c1_i32_52 = arith.constant 1 : i32
    %200 = arith.cmpi eq, %arg1, %c1_i32_52 : i32
    %201 = arith.extui %200 : i1 to i32
    %c0_i32_53 = arith.constant 0 : i32
    %202 = arith.cmpi ne, %201, %c0_i32_53 : i32
    scf.if %202 {
      %c0_54 = arith.constant 0 : index
      %c0_55 = arith.constant 0 : index
      %203 = vector.load %arg11[%c0_54, %c0_55] : memref<8x256xf32, #tpu.memory_space<vmem>>, vector<8x256xf32>
      tpu.vector_store %arg11[%c0_54, %c0_55], %197 {strides = array<i32>} : memref<8x256xf32, #tpu.memory_space<vmem>>, vector<8x256xf32>,
      %c0_56 = arith.constant 0 : index
      %c0_57 = arith.constant 0 : index
      %204 = vector.load %arg12[%c0_56, %c0_57] : memref<8x256xf32, #tpu.memory_space<vmem>>, vector<8x256xf32>
      tpu.vector_store %arg12[%c0_56, %c0_57], %194 {strides = array<i32>} : memref<8x256xf32, #tpu.memory_space<vmem>>, vector<8x256xf32>,
      %205 = arith.truncf %197 : vector<8x256xf32> to vector<8x256xbf16>
      %c0_58 = arith.constant 0 : index
      %c0_59 = arith.constant 0 : index
      %206 = vector.load %arg8[%c0_58, %c0_59] : memref<256x128xbf16, #tpu.memory_space<vmem>>, vector<256x128xbf16>
      %cst_60 = arith.constant dense<0.000000e+00> : vector<8x128xf32>
      %207 = tpu.matmul %205, %206, %cst_60 {dimension_numbers = #tpu.dot_dimension_numbers<[1], [0], [0], [1], [0, 0, 1, 1], [], []>} : vector<8x256xbf16>, vector<256x128xbf16>, vector<8x128xf32> -> vector<8x128xf32>
      %c0_61 = arith.constant 0 : index
      %c0_62 = arith.constant 0 : index
      %208 = vector.load %arg9[%c0_61, %c0_62] : memref<1x128xf32, #tpu.memory_space<vmem>>, vector<1x128xf32>
      %209 = vector.broadcast %208 : vector<1x128xf32> to vector<8x128xf32>
      %210 = arith.addf %207, %209 : vector<8x128xf32>
      %211 = arith.negf %210 : vector<8x128xf32>
      %212 = math.exp %211 : vector<8x128xf32>
      %cst_63 = arith.constant 1.000000e+00 : f32
      %213 = vector.broadcast %cst_63 : f32 to vector<8x128xf32>
      %214 = arith.addf %213, %212 : vector<8x128xf32>
      %215 = arith.divf %213, %214 : vector<8x128xf32>
      %c0_64 = arith.constant 0 : index
      %c0_65 = arith.constant 0 : index
      %216 = vector.load %arg10[%c0_64, %c0_65] : memref<8x128xf32, #tpu.memory_space<vmem>>, vector<8x128xf32>
      tpu.vector_store %arg10[%c0_64, %c0_65], %215 {strides = array<i32>} : memref<8x128xf32, #tpu.memory_space<vmem>>, vector<8x128xf32>,
    } else {
    }
    return
  }
  func.func @transform_0(%arg0: i32, %arg1: i32) -> (i32, i32, i32) {
    %c0_i32 = arith.constant 0 : i32
    %c0_i32_0 = arith.constant 0 : i32
    return %arg0, %arg1, %c0_i32 : i32, i32, i32
  }
  func.func @transform_1(%arg0: i32, %arg1: i32) -> (i32, i32) {
    %c0_i32 = arith.constant 0 : i32
    %c0_i32_0 = arith.constant 0 : i32
    %c0_i32_1 = arith.constant 0 : i32
    return %c0_i32, %c0_i32_0 : i32, i32
  }
  func.func @transform_2(%arg0: i32, %arg1: i32) -> (i32, i32) {
    %c0_i32 = arith.constant 0 : i32
    %c0_i32_0 = arith.constant 0 : i32
    %c0_i32_1 = arith.constant 0 : i32
    return %c0_i32, %c0_i32_0 : i32, i32
  }
  func.func @transform_3(%arg0: i32, %arg1: i32) -> (i32, i32) {
    %c0_i32 = arith.constant 0 : i32
    %c0_i32_0 = arith.constant 0 : i32
    %c0_i32_1 = arith.constant 0 : i32
    return %c0_i32, %c0_i32_0 : i32, i32
  }
  func.func @transform_4(%arg0: i32, %arg1: i32) -> (i32, i32) {
    %c0_i32 = arith.constant 0 : i32
    %c0_i32_0 = arith.constant 0 : i32
    return %arg0, %c0_i32 : i32, i32
  }
  func.func @transform_5(%arg0: i32, %arg1: i32) -> (i32, i32) {
    %c0_i32 = arith.constant 0 : i32
    %c0_i32_0 = arith.constant 0 : i32
    return %arg0, %c0_i32 : i32, i32
  }
  func.func @transform_6(%arg0: i32, %arg1: i32) -> (i32, i32) {
    %c0_i32 = arith.constant 0 : i32
    %c0_i32_0 = arith.constant 0 : i32
    %c0_i32_1 = arith.constant 0 : i32
    return %c0_i32, %c0_i32_0 : i32, i32
  }
  func.func @transform_7(%arg0: i32, %arg1: i32) -> (i32, i32) {
    %c0_i32 = arith.constant 0 : i32
    %c0_i32_0 = arith.constant 0 : i32
    %c0_i32_1 = arith.constant 0 : i32
    return %c0_i32, %c0_i32_0 : i32, i32
  }
  func.func @transform_8(%arg0: i32, %arg1: i32) -> (i32, i32) {
    %c0_i32 = arith.constant 0 : i32
    %c0_i32_0 = arith.constant 0 : i32
    return %arg0, %c0_i32 : i32, i32
  }
  func.func @transform_9(%arg0: i32, %arg1: i32) -> (i32, i32) {
    %c0_i32 = arith.constant 0 : i32
    %c0_i32_0 = arith.constant 0 : i32
    return %arg0, %c0_i32 : i32, i32
  }
  func.func @transform_10(%arg0: i32, %arg1: i32) -> (i32, i32) {
    %c0_i32 = arith.constant 0 : i32
    %c0_i32_0 = arith.constant 0 : i32
    return %arg0, %c0_i32 : i32, i32
  }
}

</mosaic_0001>

<bundles_post_ra>
// kernel: sentiment_forward.1
= control target key start
LH: loop header
LB: loop body
LE: loop exit
PB: predicated region body
PF: predicated region fallthrough
CT: control target
= control target key end

     0   :  { %s5438_s13 = smov 0   ;;  %s5440_s14 = smov 0   ;;  %s8062_s0 = inlined_call_operand.vmem [shape: bf16[1,128,256], index: 0, kind: input, shape index: {}]   ;;  %s8063_s1 = inlined_call_operand.vmem [shape: bf16[256,1024], index: 1, kind: input, shape index: {}]   ;;  %s8064_s2 = inlined_call_operand.vmem [shape: bf16[256,1024], index: 2, kind: input, shape index: {}]   ;;  %s8065_s3 = inlined_call_operand.vmem [shape: f32[1,1024], index: 3, kind: input, shape index: {}]   ;;  %s8066_s4 = inlined_call_operand.vmem [shape: f32[8,256], index: 4, kind: input, shape index: {}]   ;;  %s8067_s5 = inlined_call_operand.vmem [shape: f32[8,256], index: 5, kind: input, shape index: {}]   ;;  %s8068_s6 = inlined_call_operand.vmem [shape: bf16[256,128], index: 6, kind: input, shape index: {}]   ;;  %s8069_s7 = inlined_call_operand.vmem [shape: f32[1,128], index: 7, kind: input, shape index: {}]   ;;  %s8070_s8 = inlined_call_operand.vmem [shape: f32[8,128], index: 8, kind: output, shape index: {0}]   ;;  %s8071_s9 = inlined_call_operand.vmem [shape: f32[8,256], index: 9, kind: output, shape index: {1}]   ;;  %s8072_s10 = inlined_call_operand.vmem [shape: f32[8,256], index: 10, kind: output, shape index: {2}]  }
   0x1   :  { %s5442_s15 = smov 0  }
   0x2 LB: > { %s30_s16 = sadd.s32 1, %s5377_s14  ;;  %p4683_p0 = scmp.ge.s32.totalorder %s5381_s15, 1  ;;  %s5381_s15 = sphi %s5442_s15, %s21_s15   ;;  %s5377_s14 = sphi %s5440_s14, %s9151_s14   ;;  %s5373_s13 = sphi %s5438_s13, %s9150_s13  }
   0x3   : > { %p31_p1 = scmp.ge.s32.totalorder %s30_s16, 2  ;;  %p357_p2 = scmp.lt.s32.totalorder %s5381_s15, 3 }
   0x5   : > { %s9153_s16 = smov (%p31_p1, %s30_s16), 0  ;;  %p358_p3 = pnand %p4683_p0, %p357_p2 }
   0x7   : > { %361 = sbr.rel (%p358_p3) target bundleno = 2960 (0xb90), region = 52 }
   0xe   : > { %s4684_s17 = sshll.u32 %s5373_s13, 3  ;;  %p4687_p5 = scmp.ne.s32.totalorder %s5373_s13, 0 }
   0xf   : > { %p422_p4 = scmp.lt.s32.totalorder %s4684_s17, 15  ;;  %v459_v0 = vld [vmem:[%s8066_s4] sm:$0xff] (!%p4687_p5)  ;;  %v460_v1 = vld [vmem:[%s8066_s4 + $0x8] sm:$0xff] (!%p4687_p5) }
  0x10   : > { %458 = sbr.rel (%p4687_p5) target bundleno = 23 (0x17), region = 56  ;;  %v463_v2 = vld [vmem:[%s8067_s5] sm:$0xff] (!%p4687_p5)  ;;  %461 = vst [vmem:[#allocation2] sm:$0xff] (!%p4687_p5), %v459_v0  ;;  %462 = vst [vmem:[#allocation2 + $0x8] sm:$0xff] (!%p4687_p5), %v460_v1  ;;  %v464_v3 = vld [vmem:[%s8067_s5 + $0x8] sm:$0xff] (!%p4687_p5) }
  0x11   : > { %s9155_s17 = smov (!%p422_p4, %s4684_s17), 15  ;;  %465 = vst [vmem:[#allocation3] sm:$0xff] (!%p4687_p5), %v463_v2  ;;  %466 = vst [vmem:[#allocation3 + $0x8] sm:$0xff] (!%p4687_p5), %v464_v3 }
  0x12   : > { %s5024_s18 = sshll.u32 %s9155_s17, 3 }
  0x13   : > { %s5462_s21 = scalar_lea.vmem %s8062_s0, %s5024_s18 }
  0x17 PF: > { %v475_v4 = vld [vmem:[%s8063_s1] sm:$0xff]  ;;  %v476_v6 = vld [vmem:[%s8063_s1 + $0x8] sm:$0xff]  ;;  %p5000_p6 = scmp.ne.s32.totalorder %s5373_s13, 1 }
  0x18   : > { %v479_v5 = vld [vmem:[%s8063_s1 + $0x20] sm:$0xff]  ;;  %v480_v8 = vld [vmem:[%s8063_s1 + $0x28] sm:$0xff] }
  0x19   : > { %v4697_v7 = vcombine.high %v475_v4, %v479_v5  ;;  %v4696_v9 = vcombine.low %v475_v4, %v479_v5  ;;  %v483_v10 = vld [vmem:[%s8063_s1 + $0x40] sm:$0xff]  ;;  %v4699_v12 = vcombine.high %v476_v6, %v480_v8  ;;  %v4698_v13 = vcombine.low %v476_v6, %v480_v8  ;;  %v484_v15 = vld [vmem:[%s8063_s1 + $0x48] sm:$0xff] }
  0x1a   : > { %v487_v11 = vld [vmem:[%s8063_s1 + $0x60] sm:$0xff]  ;;  %v488_v16 = vld [vmem:[%s8063_s1 + $0x68] sm:$0xff] }
  0x1b   : > { %v4705_v14 = vcombine.high %v483_v10, %v487_v11  ;;  %v491_v17 = vld [vmem:[%s8063_s1 + $0x80] sm:$0xff]  ;;  %1325 = vmatprep.subr.bf16.mxu0 %v4697_v7  ;;  %v4707_v18 = vcombine.high %v484_v15, %v488_v16  ;;  %v492_v20 = vld [vmem:[%s8063_s1 + $0x88] sm:$0xff]  ;;  %1398 = vmatprep.subr.bf16.mxu1 %v4699_v12  ;;  %v4704_v22 = vcombine.low %v483_v10, %v487_v11 }
  0x1c   : > { %v495_v19 = vld [vmem:[%s8063_s1 + $0xa0] sm:$0xff]  ;;  %v496_v21 = vld [vmem:[%s8063_s1 + $0xa8] sm:$0xff]  ;;  %1326 = vmatpush1.bf16.msra.mxu0 %v4696_v9  ;;  %1399 = vmatpush1.bf16.msra.mxu1 %v4698_v13  ;;  %v4706_v23 = vcombine.low %v484_v15, %v488_v16 }
  0x1d   : > { %1327 = vmatprep.subr.bf16.mxu0 %v4705_v14  ;;  %v4713_v24 = vcombine.high %v491_v17, %v495_v19  ;;  %1400 = vmatprep.subr.bf16.mxu1 %v4707_v18  ;;  %v4715_v25 = vcombine.high %v492_v20, %v496_v21  ;;  %v499_v26 = vld [vmem:[%s8063_s1 + $0xc0] sm:$0xff]  ;;  %v500_v28 = vld [vmem:[%s8063_s1 + $0xc8] sm:$0xff]  ;;  %v4712_v30 = vcombine.low %v491_v17, %v495_v19 }
  0x1e   : > { %v503_v27 = vld [vmem:[%s8063_s1 + $0xe0] sm:$0xff]  ;;  %v504_v29 = vld [vmem:[%s8063_s1 + $0xe8] sm:$0xff]  ;;  %v4714_v31 = vcombine.low %v492_v20, %v496_v21 }
  0x1f   : > { %v4721_v32 = vcombine.high %v499_v26, %v503_v27  ;;  %v4723_v33 = vcombine.high %v500_v28, %v504_v29  ;;  %v507_v34 = vld [vmem:[%s8063_s1 + $0x100] sm:$0xff]  ;;  %v508_v36 = vld [vmem:[%s8063_s1 + $0x108] sm:$0xff]  ;;  %v4720_v38 = vcombine.low %v499_v26, %v503_v27  ;;  %v4722_v39 = vcombine.low %v500_v28, %v504_v29 }
  0x20   : > { %1328 = vmatpush1.bf16.msra.mxu0 %v4704_v22  ;;  %1401 = vmatpush1.bf16.msra.mxu1 %v4706_v23  ;;  %v511_v35 = vld [vmem:[%s8063_s1 + $0x120] sm:$0xff]  ;;  %v512_v37 = vld [vmem:[%s8063_s1 + $0x128] sm:$0xff] }
  0x21   : > { %1329 = vmatprep.subr.bf16.mxu0 %v4713_v24  ;;  %1402 = vmatprep.subr.bf16.mxu1 %v4715_v25  ;;  %v4729_v40 = vcombine.high %v507_v34, %v511_v35  ;;  %v4731_v41 = vcombine.high %v508_v36, %v512_v37  ;;  %v515_v42 = vld [vmem:[%s8063_s1 + $0x140] sm:$0xff]  ;;  %v516_v44 = vld [vmem:[%s8063_s1 + $0x148] sm:$0xff]  ;;  %v4728_v46 = vcombine.low %v507_v34, %v511_v35 }
  0x22   : > { %v519_v43 = vld [vmem:[%s8063_s1 + $0x160] sm:$0xff]  ;;  %v520_v45 = vld [vmem:[%s8063_s1 + $0x168] sm:$0xff]  ;;  %v4730_v47 = vcombine.low %v508_v36, %v512_v37 }
  0x23   : > { %v4737_v48 = vcombine.high %v515_v42, %v519_v43  ;;  %v4739_v49 = vcombine.high %v516_v44, %v520_v45  ;;  %v523_v50 = vld [vmem:[%s8063_s1 + $0x180] sm:$0xff]  ;;  %v524_v52 = vld [vmem:[%s8063_s1 + $0x188] sm:$0xff]  ;;  %v4736_v54 = vcombine.low %v515_v42, %v519_v43  ;;  %v4738_v55 = vcombine.low %v516_v44, %v520_v45 }
  0x24   : > { %1330 = vmatpush1.bf16.msra.mxu0 %v4712_v30  ;;  %1403 = vmatpush1.bf16.msra.mxu1 %v4714_v31  ;;  %v527_v51 = vld [vmem:[%s8063_s1 + $0x1a0] sm:$0xff]  ;;  %v528_v53 = vld [vmem:[%s8063_s1 + $0x1a8] sm:$0xff] }
  0x25   : > { %1331 = vmatprep.subr.bf16.mxu0 %v4721_v32  ;;  %1404 = vmatprep.subr.bf16.mxu1 %v4723_v33  ;;  %v4745_v56 = vcombine.high %v523_v50, %v527_v51  ;;  %v4747_v57 = vcombine.high %v524_v52, %v528_v53  ;;  %v531_v58 = vld [vmem:[%s8063_s1 + $0x1c0] sm:$0xff]  ;;  %v532_v61 = vld [vmem:[%s8063_s1 + $0x1c8] sm:$0xff]  ;;  %v4744_v63 = vcombine.low %v523_v50, %v527_v51 }
  0x26   : > { %v535_v59 = vld [vmem:[%s8063_s1 + $0x1e0] sm:$0xff]  ;;  %v536_v62 = vld [vmem:[%s8063_s1 + $0x1e8] sm:$0xff]  ;;  %v4746_v0 = vcombine.low %v524_v52, %v528_v53 }
  0x27   : > { %v5568_v60 = vld [vmem:[%s5462_s21 + $0x4] ss:$8 sps:$4 sm:$0xff]   ;;  %v4753_v1 = vcombine.high %v531_v58, %v535_v59  ;;  %v4755_v2 = vcombine.high %v532_v61, %v536_v62  ;;  %v4752_v7 = vcombine.low %v531_v58, %v535_v59  ;;  %v4754_v8 = vcombine.low %v532_v61, %v536_v62 }
  0x28   : > { %1332 = vmatpush1.bf16.msra.mxu0 %v4720_v38  ;;  %1405 = vmatpush1.bf16.msra.mxu1 %v4722_v39  ;;  %v539_v3 = vld [vmem:[%s8063_s1 + $0x200] sm:$0xff]  ;;  %v540_v5 = vld [vmem:[%s8063_s1 + $0x208] sm:$0xff] }
  0x29   : > { %1333 = vmatprep.subr.bf16.mxu0 %v4729_v40  ;;  %1406 = vmatprep.subr.bf16.mxu1 %v4731_v41  ;;  %v543_v4 = vld [vmem:[%s8063_s1 + $0x220] sm:$0xff]  ;;  %v544_v6 = vld [vmem:[%s8063_s1 + $0x228] sm:$0xff] }
  0x2a   : > { %1357 = vmatprep.mubr.bf16.mxu0 %v5568_v60  ;;  %1430 = vmatprep.mubr.bf16.mxu1 %v5568_v60  ;;  %v4761_v9 = vcombine.high %v539_v3, %v543_v4  ;;  %v4763_v10 = vcombine.high %v540_v5, %v544_v6  ;;  %v547_v11 = vld [vmem:[%s8063_s1 + $0x240] sm:$0xff]  ;;  %v548_v13 = vld [vmem:[%s8063_s1 + $0x248] sm:$0xff]  ;;  %v4760_v15 = vcombine.low %v539_v3, %v543_v4  ;;  %v477_v4 = vld [vmem:[%s8063_s1 + $0x10] sm:$0xff] }
  0x2b   : > { %v551_v12 = vld [vmem:[%s8063_s1 + $0x260] sm:$0xff]  ;;  %v552_v14 = vld [vmem:[%s8063_s1 + $0x268] sm:$0xff]  ;;  %v4762_v16 = vcombine.low %v540_v5, %v544_v6  ;;  %v481_v5 = vld [vmem:[%s8063_s1 + $0x30] sm:$0xff] }
  0x2c   : > { %1334 = vmatpush1.bf16.msra.mxu0 %v4728_v46  ;;  %1407 = vmatpush1.bf16.msra.mxu1 %v4730_v47  ;;  %v4769_v17 = vcombine.high %v547_v11, %v551_v12  ;;  %v4771_v18 = vcombine.high %v548_v13, %v552_v14  ;;  %v555_v19 = vld [vmem:[%s8063_s1 + $0x280] sm:$0xff]  ;;  %v556_v21 = vld [vmem:[%s8063_s1 + $0x288] sm:$0xff]  ;;  %v4768_v23 = vcombine.low %v547_v11, %v551_v12  ;;  %v478_v6 = vld [vmem:[%s8063_s1 + $0x18] sm:$0xff] }
  0x2d   : > { %1335 = vmatprep.subr.bf16.mxu0 %v4737_v48  ;;  %1408 = vmatprep.subr.bf16.mxu1 %v4739_v49  ;;  %v559_v20 = vld [vmem:[%s8063_s1 + $0x2a0] sm:$0xff]  ;;  %v560_v22 = vld [vmem:[%s8063_s1 + $0x2a8] sm:$0xff]  ;;  %v4770_v24 = vcombine.low %v548_v13, %v552_v14  ;;  %v485_v12 = vld [vmem:[%s8063_s1 + $0x50] sm:$0xff] }
  0x2e   : > { %v4777_v25 = vcombine.high %v555_v19, %v559_v20  ;;  %v4779_v26 = vcombine.high %v556_v21, %v560_v22  ;;  %v563_v27 = vld [vmem:[%s8063_s1 + $0x2c0] sm:$0xff]  ;;  %v564_v29 = vld [vmem:[%s8063_s1 + $0x2c8] sm:$0xff]  ;;  %v4776_v31 = vcombine.low %v555_v19, %v559_v20  ;;  %v4778_v32 = vcombine.low %v556_v21, %v560_v22  ;;  %v489_v13 = vld [vmem:[%s8063_s1 + $0x70] sm:$0xff] }
  0x2f   : > { %v567_v28 = vld [vmem:[%s8063_s1 + $0x2e0] sm:$0xff]  ;;  %v568_v30 = vld [vmem:[%s8063_s1 + $0x2e8] sm:$0xff]  ;;  %v4709_v19 = vcombine.high %v485_v12, %v489_v13  ;;  %v493_v21 = vld [vmem:[%s8063_s1 + $0x90] sm:$0xff] }
  0x30   : > { %1336 = vmatpush1.bf16.msra.mxu0 %v4736_v54  ;;  %1409 = vmatpush1.bf16.msra.mxu1 %v4738_v55  ;;  %v4785_v33 = vcombine.high %v563_v27, %v567_v28  ;;  %v4787_v34 = vcombine.high %v564_v29, %v568_v30  ;;  %v571_v35 = vld [vmem:[%s8063_s1 + $0x300] sm:$0xff]  ;;  %v572_v37 = vld [vmem:[%s8063_s1 + $0x308] sm:$0xff]  ;;  %v4784_v39 = vcombine.low %v563_v27, %v567_v28  ;;  %v497_v22 = vld [vmem:[%s8063_s1 + $0xb0] sm:$0xff] }
  0x31   : > { %1337 = vmatprep.subr.bf16.mxu0 %v4745_v56  ;;  %1410 = vmatprep.subr.bf16.mxu1 %v4747_v57  ;;  %v575_v36 = vld [vmem:[%s8063_s1 + $0x320] sm:$0xff]  ;;  %v576_v38 = vld [vmem:[%s8063_s1 + $0x328] sm:$0xff]  ;;  %v4786_v40 = vcombine.low %v564_v29, %v568_v30  ;;  %v4717_v28 = vcombine.high %v493_v21, %v497_v22  ;;  %v501_v30 = vld [vmem:[%s8063_s1 + $0xd0] sm:$0xff] }
  0x32   : > { %v4793_v41 = vcombine.high %v571_v35, %v575_v36  ;;  %v4795_v42 = vcombine.high %v572_v37, %v576_v38  ;;  %v579_v43 = vld [vmem:[%s8063_s1 + $0x340] sm:$0xff]  ;;  %v580_v45 = vld [vmem:[%s8063_s1 + $0x348] sm:$0xff]  ;;  %v4792_v47 = vcombine.low %v571_v35, %v575_v36  ;;  %v4794_v48 = vcombine.low %v572_v37, %v576_v38 }
  0x33   : > { %v583_v44 = vld [vmem:[%s8063_s1 + $0x360] sm:$0xff]  ;;  %v584_v46 = vld [vmem:[%s8063_s1 + $0x368] sm:$0xff]  ;;  %v4716_v35 = vcombine.low %v493_v21, %v497_v22  ;;  %v549_v21 = vld [vmem:[%s8063_s1 + $0x250] sm:$0xff] }
  0x34   : > { %1338 = vmatpush1.bf16.msra.mxu0 %v4744_v63  ;;  %1411 = vmatpush1.bf16.msra.mxu1 %v4746_v0  ;;  %v4801_v49 = vcombine.high %v579_v43, %v583_v44  ;;  %v4803_v50 = vcombine.high %v580_v45, %v584_v46  ;;  %v587_v51 = vld [vmem:[%s8063_s1 + $0x380] sm:$0xff]  ;;  %v588_v53 = vld [vmem:[%s8063_s1 + $0x388] sm:$0xff]  ;;  %v4800_v55 = vcombine.low %v579_v43, %v583_v44  ;;  %v514_v43 = vld [vmem:[%s8063_s1 + $0x138] sm:$0xff] }
  0x35   : > { %1339 = vmatprep.subr.bf16.mxu0 %v4753_v1  ;;  %1412 = vmatprep.subr.bf16.mxu1 %v4755_v2  ;;  %v591_v52 = vld [vmem:[%s8063_s1 + $0x3a0] sm:$0xff]  ;;  %v592_v54 = vld [vmem:[%s8063_s1 + $0x3a8] sm:$0xff]  ;;  %v4802_v56 = vcombine.low %v580_v45, %v584_v46  ;;  %v553_v22 = vld [vmem:[%s8063_s1 + $0x270] sm:$0xff] }
  0x36   : > { %v4809_v57 = vcombine.high %v587_v51, %v591_v52  ;;  %v4811_v58 = vcombine.high %v588_v53, %v592_v54  ;;  %v595_v59 = vld [vmem:[%s8063_s1 + $0x3c0] sm:$0xff]  ;;  %v596_v62 = vld [vmem:[%s8063_s1 + $0x3c8] sm:$0xff]  ;;  %v4808_v0 = vcombine.low %v587_v51, %v591_v52  ;;  %v4810_v1 = vcombine.low %v588_v53, %v592_v54  ;;  %v522_v51 = vld [vmem:[%s8063_s1 + $0x178] sm:$0xff] }
  0x37   : > { %v599_v61 = vld [vmem:[%s8063_s1 + $0x3e0] sm:$0xff]  ;;  %v600_v63 = vld [vmem:[%s8063_s1 + $0x3e8] sm:$0xff] }
  0x38   : > { %1340 = vmatpush1.bf16.msra.mxu0 %v4752_v7  ;;  %1413 = vmatpush1.bf16.msra.mxu1 %v4754_v8  ;;  %v4817_v2 = vcombine.high %v595_v59, %v599_v61  ;;  %v4819_v3 = vcombine.high %v596_v62, %v600_v63  ;;  %v482_v7 = vld [vmem:[%s8063_s1 + $0x38] sm:$0xff]  ;;  %v4816_v8 = vcombine.low %v595_v59, %v599_v61  ;;  %v5693_v14 = vld [vmem:[%s5462_s21] ss:$8 sps:$4 sm:$0xff]  }
  0x39   : > { %1341 = vmatprep.subr.bf16.mxu0 %v4761_v9  ;;  %1414 = vmatprep.subr.bf16.mxu1 %v4763_v10  ;;  %v4818_v9 = vcombine.low %v596_v62, %v600_v63  ;;  %v4701_v10 = vcombine.high %v477_v4, %v481_v5  ;;  %v4703_v11 = vcombine.high %v478_v6, %v482_v7  ;;  %v5767_v52 = vld [vmem:[%s5462_s21 + $0x20] ss:$8 sps:$4 sm:$0xff]   ;;  %v5776_v59 = vld [vmem:[%s5462_s21 + $0x34] ss:$8 sps:$4 sm:$0xff]  }
  0x3a   : > { %v526_v61 = vld [vmem:[%s8063_s1 + $0x198] sm:$0xff] }
  0x3b   : > { %v530_v62 = vld [vmem:[%s8063_s1 + $0x1b8] sm:$0xff] }
  0x3c   : > { %1342 = vmatpush1.bf16.msra.mxu0 %v4760_v15  ;;  %1415 = vmatpush1.bf16.msra.mxu1 %v4762_v16  ;;  %v486_v15 = vld [vmem:[%s8063_s1 + $0x58] sm:$0xff] }
  0x3d   : > { %1343 = vmatprep.subr.bf16.mxu0 %v4769_v17  ;;  %1416 = vmatprep.subr.bf16.mxu1 %v4771_v18  ;;  %v490_v16 = vld [vmem:[%s8063_s1 + $0x78] sm:$0xff]  ;;  %v4700_v17 = vcombine.low %v477_v4, %v481_v5  ;;  %v4702_v18 = vcombine.low %v478_v6, %v482_v7  ;;  %v537_v4 = vld [vmem:[%s8063_s1 + $0x1f0] sm:$0xff] }
  0x3e   : > { %v4711_v20 = vcombine.high %v486_v15, %v490_v16  ;;  %v4710_v27 = vcombine.low %v486_v15, %v490_v16  ;;  %v534_v5 = vld [vmem:[%s8063_s1 + $0x1d8] sm:$0xff] }
  0x3f   : > { %v538_v6 = vld [vmem:[%s8063_s1 + $0x1f8] sm:$0xff] }
  0x40   : > { %1344 = vmatpush1.bf16.msra.mxu0 %v4768_v23  ;;  %1417 = vmatpush1.bf16.msra.mxu1 %v4770_v24  ;;  %v5708_v23 = vld [vmem:[%s5462_s21 + $0x14] ss:$8 sps:$4 sm:$0xff]   ;;  %v5801_v7 = vld [vmem:[%s5462_s21 + $0x30] ss:$8 sps:$4 sm:$0xff]  }
  0x41   : > { %1345 = vmatprep.subr.bf16.mxu0 %v4777_v25  ;;  %1418 = vmatprep.subr.bf16.mxu1 %v4779_v26  ;;  %v494_v24 = vld [vmem:[%s8063_s1 + $0x98] sm:$0xff]  ;;  %v4708_v26 = vcombine.low %v485_v12, %v489_v13  ;;  %v541_v12 = vld [vmem:[%s8063_s1 + $0x210] sm:$0xff] }
  0x42   : > { %v498_v25 = vld [vmem:[%s8063_s1 + $0xb8] sm:$0xff]  ;;  %v545_v13 = vld [vmem:[%s8063_s1 + $0x230] sm:$0xff] }
  0x43   : > { %v4719_v29 = vcombine.high %v494_v24, %v498_v25  ;;  %v4718_v36 = vcombine.low %v494_v24, %v498_v25  ;;  %v542_v15 = vld [vmem:[%s8063_s1 + $0x218] sm:$0xff] }
  0x44   : > { %1346 = vmatpush1.bf16.msra.mxu0 %v4776_v31  ;;  %1419 = vmatpush1.bf16.msra.mxu1 %v4778_v32  ;;  %v505_v31 = vld [vmem:[%s8063_s1 + $0xf0] sm:$0xff]  ;;  %v502_v32 = vld [vmem:[%s8063_s1 + $0xd8] sm:$0xff] }
  0x45   : > { %1347 = vmatprep.subr.bf16.mxu0 %v4785_v33  ;;  %1420 = vmatprep.subr.bf16.mxu1 %v4787_v34  ;;  %v506_v33 = vld [vmem:[%s8063_s1 + $0xf8] sm:$0xff]  ;;  %v4725_v37 = vcombine.high %v501_v30, %v505_v31  ;;  %v4724_v44 = vcombine.low %v501_v30, %v505_v31  ;;  %v557_v30 = vld [vmem:[%s8063_s1 + $0x290] sm:$0xff] }
  0x46   : > { %v5733_v34 = vld [vmem:[%s5462_s21 + $0x10] ss:$8 sps:$4 sm:$0xff]   ;;  %v4727_v38 = vcombine.high %v502_v32, %v506_v33  ;;  %v4726_v45 = vcombine.low %v502_v32, %v506_v33  ;;  %v4772_v33 = vcombine.low %v549_v21, %v553_v22 }
  0x47   : > { %v546_v16 = vld [vmem:[%s8063_s1 + $0x238] sm:$0xff]  ;;  %v561_v31 = vld [vmem:[%s8063_s1 + $0x2b0] sm:$0xff] }
  0x48   : > { %1348 = vmatpush1.bf16.msra.mxu0 %v4784_v39  ;;  %1421 = vmatpush1.bf16.msra.mxu1 %v4786_v40  ;;  %v509_v39 = vld [vmem:[%s8063_s1 + $0x110] sm:$0xff]  ;;  %v550_v24 = vld [vmem:[%s8063_s1 + $0x258] sm:$0xff] }
  0x49   : > { %1349 = vmatprep.subr.bf16.mxu0 %v4793_v41  ;;  %1422 = vmatprep.subr.bf16.mxu1 %v4795_v42  ;;  %v513_v40 = vld [vmem:[%s8063_s1 + $0x130] sm:$0xff]  ;;  %v5742_v41 = vld [vmem:[%s5462_s21 + $0x24] ss:$8 sps:$4 sm:$0xff]   ;;  %v510_v42 = vld [vmem:[%s8063_s1 + $0x118] sm:$0xff] }
  0x4a   : > { %v4733_v46 = vcombine.high %v509_v39, %v513_v40  ;;  %v4732_v53 = vcombine.low %v509_v39, %v513_v40  ;;  %v4734_v54 = vcombine.low %v510_v42, %v514_v43  ;;  %v554_v25 = vld [vmem:[%s8063_s1 + $0x278] sm:$0xff]  ;;  %v569_v39 = vld [vmem:[%s8063_s1 + $0x2f0] sm:$0xff] }
  0x4b   : > { %v562_v32 = vld [vmem:[%s8063_s1 + $0x2b8] sm:$0xff] }
  0x4c   : > { %1350 = vmatpush1.bf16.msra.mxu0 %v4792_v47  ;;  %1423 = vmatpush1.bf16.msra.mxu1 %v4794_v48  ;;  %v4735_v47 = vcombine.high %v510_v42, %v514_v43  ;;  %v517_v48 = vld [vmem:[%s8063_s1 + $0x150] sm:$0xff]  ;;  %v566_v40 = vld [vmem:[%s8063_s1 + $0x2d8] sm:$0xff]  ;;  %v4780_v43 = vcombine.low %v557_v30, %v561_v31 }
  0x4d   : > { %1351 = vmatprep.subr.bf16.mxu0 %v4801_v49  ;;  %1424 = vmatprep.subr.bf16.mxu1 %v4803_v50  ;;  %v521_v49 = vld [vmem:[%s8063_s1 + $0x170] sm:$0xff]  ;;  %v518_v50 = vld [vmem:[%s8063_s1 + $0x158] sm:$0xff] }
  0x4e   : > { %v4740_v63 = vcombine.low %v517_v48, %v521_v49  ;;  %v570_v42 = vld [vmem:[%s8063_s1 + $0x2f8] sm:$0xff] }
  0x50   : > { %1352 = vmatpush1.bf16.msra.mxu0 %v4800_v55  ;;  %1425 = vmatpush1.bf16.msra.mxu1 %v4802_v56  ;;  %v4741_v55 = vcombine.high %v517_v48, %v521_v49  ;;  %v4743_v56 = vcombine.high %v518_v50, %v522_v51  ;;  %v577_v48 = vld [vmem:[%s8063_s1 + $0x330] sm:$0xff]  ;;  %v574_v49 = vld [vmem:[%s8063_s1 + $0x318] sm:$0xff] }
  0x51   : > { %1353 = vmatprep.subr.bf16.mxu0 %v4809_v57  ;;  %1426 = vmatprep.subr.bf16.mxu1 %v4811_v58  ;;  %v525_v57 = vld [vmem:[%s8063_s1 + $0x190] sm:$0xff] }
  0x52   : > { %v529_v58 = vld [vmem:[%s8063_s1 + $0x1b0] sm:$0xff] }
  0x54   : > { %1354 = vmatpush1.bf16.msra.mxu0 %v4808_v0  ;;  %1427 = vmatpush1.bf16.msra.mxu1 %v4810_v1  ;;  %v4742_v0 = vcombine.low %v518_v50, %v522_v51  ;;  %v4749_v1 = vcombine.high %v525_v57, %v529_v58  ;;  %v578_v50 = vld [vmem:[%s8063_s1 + $0x338] sm:$0xff] }
  0x55   : > { %1355 = vmatprep.subr.bf16.mxu0 %v4817_v2  ;;  %1428 = vmatprep.subr.bf16.mxu1 %v4819_v3  ;;  %v4751_v2 = vcombine.high %v526_v61, %v530_v62  ;;  %v533_v3 = vld [vmem:[%s8063_s1 + $0x1d0] sm:$0xff] }
  0x58   : > { %1356 = vmatpush1.bf16.msra.mxu0 %v4816_v8  ;;  %1429 = vmatpush1.bf16.msra.mxu1 %v4818_v9  ;;  %v4748_v8 = vcombine.low %v525_v57, %v529_v58  ;;  %v4750_v9 = vcombine.low %v526_v61, %v530_v62  ;;  %v585_v57 = vld [vmem:[%s8063_s1 + $0x370] sm:$0xff]  ;;  %v582_v58 = vld [vmem:[%s8063_s1 + $0x358] sm:$0xff] }
  0x59   : > { %1471 = vmatprep.subr.bf16.mxu0 %v4701_v10  ;;  %1544 = vmatprep.subr.bf16.mxu1 %v4703_v11  ;;  %v4757_v10 = vcombine.high %v533_v3, %v537_v4  ;;  %v4759_v11 = vcombine.high %v534_v5, %v538_v6  ;;  %v586_v61 = vld [vmem:[%s8063_s1 + $0x378] sm:$0xff] }
  0x5b   : > { %1358 = vmatmul.mubr.bf16.vlgmr.msra.gmra.mrb[0].mxu0 %v5693_v14  ;;  %1431 = vmatmul.mubr.bf16.vlgmr.msra.gmra.mrb[0].mxu1 %v5693_v14 }
  0x5c   : > { %1472 = vmatpush1.bf16.msra.mxu0 %v4700_v17  ;;  %1545 = vmatpush1.bf16.msra.mxu1 %v4702_v18  ;;  %v4756_v17 = vcombine.low %v533_v3, %v537_v4  ;;  %v4758_v18 = vcombine.low %v534_v5, %v538_v6  ;;  %v593_v3 = vld [vmem:[%s8063_s1 + $0x3b0] sm:$0xff]  ;;  %v590_v4 = vld [vmem:[%s8063_s1 + $0x398] sm:$0xff] }
  0x5d   : > { %1473 = vmatprep.subr.bf16.mxu0 %v4709_v19  ;;  %1546 = vmatprep.subr.bf16.mxu1 %v4711_v20  ;;  %v4765_v19 = vcombine.high %v541_v12, %v545_v13  ;;  %v4767_v20 = vcombine.high %v542_v15, %v546_v16  ;;  %v594_v5 = vld [vmem:[%s8063_s1 + $0x3b8] sm:$0xff] }
  0x5e   : > { %1367 = vmatprep.mubr.bf16.mxu0 %v5708_v23  ;;  %1440 = vmatprep.mubr.bf16.mxu1 %v5708_v23 }
  0x60   : > { %1474 = vmatpush1.bf16.msra.mxu0 %v4708_v26  ;;  %1547 = vmatpush1.bf16.msra.mxu1 %v4710_v27  ;;  %v4764_v26 = vcombine.low %v541_v12, %v545_v13  ;;  %v4766_v27 = vcombine.low %v542_v15, %v546_v16  ;;  %v601_v12 = vld [vmem:[%s8063_s1 + $0x3f0] sm:$0xff]  ;;  %v598_v13 = vld [vmem:[%s8063_s1 + $0x3d8] sm:$0xff] }
  0x61   : > { %1475 = vmatprep.subr.bf16.mxu0 %v4717_v28  ;;  %1548 = vmatprep.subr.bf16.mxu1 %v4719_v29  ;;  %v4773_v28 = vcombine.high %v549_v21, %v553_v22  ;;  %v4775_v29 = vcombine.high %v550_v24, %v554_v25  ;;  %v602_v15 = vld [vmem:[%s8063_s1 + $0x3f8] sm:$0xff]  ;;  %v1685_v21 = vld [vmem:[%s8064_s2 + $0x20] sm:$0xff]  ;;  %v1682_v22 = vld [vmem:[%s8064_s2 + $0x8] sm:$0xff] }
  0x63   : > { %1368 = vmatmul.mubr.bf16.gmra.mrb[4].mxu0 %v5733_v34  ;;  %1441 = vmatmul.mubr.bf16.gmra.mrb[4].mxu1 %v5733_v34 }
  0x64   : > { %1476 = vmatpush1.bf16.msra.mxu0 %v4716_v35  ;;  %1549 = vmatpush1.bf16.msra.mxu1 %v4718_v36  ;;  %v4774_v35 = vcombine.low %v550_v24, %v554_v25  ;;  %v4781_v36 = vcombine.high %v557_v30, %v561_v31  ;;  %v1686_v24 = vld [vmem:[%s8064_s2 + $0x28] sm:$0xff]  ;;  %v1693_v30 = vld [vmem:[%s8064_s2 + $0x60] sm:$0xff] }
  0x65   : > { %1477 = vmatprep.subr.bf16.mxu0 %v4725_v37  ;;  %1550 = vmatprep.subr.bf16.mxu1 %v4727_v38  ;;  %v565_v38 = vld [vmem:[%s8063_s1 + $0x2d0] sm:$0xff]  ;;  %v1690_v31 = vld [vmem:[%s8064_s2 + $0x48] sm:$0xff] }
  0x66   : > { %1377 = vmatprep.mubr.bf16.mxu0 %v5742_v41  ;;  %1450 = vmatprep.mubr.bf16.mxu1 %v5742_v41  ;;  %v4788_v51 = vcombine.low %v565_v38, %v569_v39 }
  0x68   : > { %1478 = vmatpush1.bf16.msra.mxu0 %v4724_v44  ;;  %1551 = vmatpush1.bf16.msra.mxu1 %v4726_v45  ;;  %v4789_v45 = vcombine.high %v565_v38, %v569_v39  ;;  %v1701_v38 = vld [vmem:[%s8064_s2 + $0xa0] sm:$0xff]  ;;  %v1698_v39 = vld [vmem:[%s8064_s2 + $0x88] sm:$0xff] }
  0x69   : > { %1479 = vmatprep.subr.bf16.mxu0 %v4733_v46  ;;  %1552 = vmatprep.subr.bf16.mxu1 %v4735_v47  ;;  %v4791_v46 = vcombine.high %v566_v40, %v570_v42  ;;  %v573_v47 = vld [vmem:[%s8063_s1 + $0x310] sm:$0xff] }
  0x6a   : > { %v4796_v62 = vcombine.low %v573_v47, %v577_v48 }
  0x6b   : > { %1378 = vmatmul.mubr.bf16.gmra.mrb[8].mxu0 %v5767_v52  ;;  %1451 = vmatmul.mubr.bf16.gmra.mrb[8].mxu1 %v5767_v52 }
  0x6c   : > { %1480 = vmatpush1.bf16.msra.mxu0 %v4732_v53  ;;  %1553 = vmatpush1.bf16.msra.mxu1 %v4734_v54  ;;  %v4790_v53 = vcombine.low %v566_v40, %v570_v42  ;;  %v4797_v54 = vcombine.high %v573_v47, %v577_v48  ;;  %v1702_v40 = vld [vmem:[%s8064_s2 + $0xa8] sm:$0xff] }
  0x6d   : > { %1481 = vmatprep.subr.bf16.mxu0 %v4741_v55  ;;  %1554 = vmatprep.subr.bf16.mxu1 %v4743_v56  ;;  %v4799_v55 = vcombine.high %v574_v49, %v578_v50  ;;  %v581_v56 = vld [vmem:[%s8063_s1 + $0x350] sm:$0xff]  ;;  %v1706_v47 = vld [vmem:[%s8064_s2 + $0xc8] sm:$0xff] }
  0x6e   : > { %1387 = vmatprep.mubr.bf16.mxu0 %v5776_v59  ;;  %1460 = vmatprep.mubr.bf16.mxu1 %v5776_v59  ;;  %v4804_v6 = vcombine.low %v581_v56, %v585_v57  ;;  %v1710_v48 = vld [vmem:[%s8064_s2 + $0xe8] sm:$0xff] }
  0x70   : > { %1482 = vmatpush1.bf16.msra.mxu0 %v4740_v63  ;;  %1555 = vmatpush1.bf16.msra.mxu1 %v4742_v0  ;;  %v4798_v63 = vcombine.low %v574_v49, %v578_v50  ;;  %v4805_v0 = vcombine.high %v581_v56, %v585_v57  ;;  %v5986_v50 = vcombine.low %v1698_v39, %v1702_v40  ;;  %v1718_v56 = vld [vmem:[%s8064_s2 + $0x128] sm:$0xff] }
  0x71   : > { %1483 = vmatprep.subr.bf16.mxu0 %v4749_v1  ;;  %1556 = vmatprep.subr.bf16.mxu1 %v4751_v2  ;;  %v4807_v1 = vcombine.high %v582_v58, %v586_v61  ;;  %v589_v2 = vld [vmem:[%s8063_s1 + $0x390] sm:$0xff] }
  0x72   : > { %v4812_v16 = vcombine.low %v589_v2, %v593_v3  ;;  %8349 = vst [vmem:[#allocation16_spill] sm:$0xff] %v5986_v50 }
  0x73   : > { %1388 = vmatmul.mubr.bf16.gmra.mrb[12].mxu0 %v5801_v7  ;;  %1461 = vmatmul.mubr.bf16.gmra.mrb[12].mxu1 %v5801_v7 }
  0x74   : > { %1484 = vmatpush1.bf16.msra.mxu0 %v4748_v8  ;;  %1557 = vmatpush1.bf16.msra.mxu1 %v4750_v9  ;;  %v4806_v8 = vcombine.low %v582_v58, %v586_v61  ;;  %v4813_v9 = vcombine.high %v589_v2, %v593_v3  ;;  %v6012_v58 = vcombine.low %v1706_v47, %v1710_v48 }
  0x75   : > { %1485 = vmatprep.subr.bf16.mxu0 %v4757_v10  ;;  %1558 = vmatprep.subr.bf16.mxu1 %v4759_v11  ;;  %v4815_v10 = vcombine.high %v590_v4, %v594_v5  ;;  %v597_v11 = vld [vmem:[%s8063_s1 + $0x3d0] sm:$0xff] }
  0x76   : > { %1503 = vmatprep.mubr.bf16.mxu0 %v5568_v60  ;;  %1576 = vmatprep.mubr.bf16.mxu1 %v5568_v60  ;;  %v558_v60 = vld [vmem:[%s8063_s1 + $0x298] sm:$0xff]  ;;  %v4820_v25 = vcombine.low %v597_v11, %v601_v12  ;;  %8353 = vst [vmem:[#allocation20_spill] sm:$0xff] %v6012_v58 }
  0x77   : > { %v4783_v37 = vcombine.high %v558_v60, %v562_v32  ;;  %v4782_v44 = vcombine.low %v558_v60, %v562_v32  ;;  %v1694_v60 = vld [vmem:[%s8064_s2 + $0x68] sm:$0xff] }
  0x78   : > { %1486 = vmatpush1.bf16.msra.mxu0 %v4756_v17  ;;  %1559 = vmatpush1.bf16.msra.mxu1 %v4758_v18  ;;  %v4814_v17 = vcombine.low %v590_v4, %v594_v5  ;;  %v4821_v18 = vcombine.high %v597_v11, %v601_v12 }
  0x79   : > { %1487 = vmatprep.subr.bf16.mxu0 %v4765_v19  ;;  %1560 = vmatprep.subr.bf16.mxu1 %v4767_v20  ;;  %v4823_v19 = vcombine.high %v598_v13, %v602_v15  ;;  %v1681_v20 = vld [vmem:[%s8064_s2] sm:$0xff] }
  0x7a   : > { %v5931_v32 = vcombine.low %v1681_v20, %v1685_v21 }
  0x7c   : > { %1488 = vmatpush1.bf16.msra.mxu0 %v4764_v26  ;;  %1561 = vmatpush1.bf16.msra.mxu1 %v4766_v27  ;;  %v4822_v26 = vcombine.low %v598_v13, %v602_v15  ;;  %v5915_v27 = vcombine.high %v1681_v20, %v1685_v21  ;;  %8340 = vst [vmem:[#allocation7_spill] sm:$0xff] %v5931_v32  ;;  %v1737_v15 = vld [vmem:[%s8064_s2 + $0x1c0] sm:$0xff] }
  0x7d   : > { %1489 = vmatprep.subr.bf16.mxu0 %v4773_v28  ;;  %1562 = vmatprep.subr.bf16.mxu1 %v4775_v29  ;;  %v5917_v28 = vcombine.high %v1682_v22, %v1686_v24  ;;  %v1689_v29 = vld [vmem:[%s8064_s2 + $0x40] sm:$0xff] }
  0x7e   : > { %8338 = vst [vmem:[#allocation5_spill] sm:$0xff] %v5915_v27  ;;  %v5956_v42 = vcombine.low %v1689_v29, %v1693_v30 }
  0x7f   : > { %8339 = vst [vmem:[#allocation6_spill] sm:$0xff] %v5917_v28 }
  0x80   : > { %1490 = vmatpush1.bf16.msra.mxu0 %v4772_v33  ;;  %1563 = vmatpush1.bf16.msra.mxu1 %v4774_v35  ;;  %v5934_v33 = vcombine.low %v1682_v22, %v1686_v24  ;;  %v5936_v35 = vcombine.high %v1689_v29, %v1693_v30  ;;  %8344 = vst [vmem:[#allocation11_spill] sm:$0xff] %v5956_v42  ;;  %v1749_v24 = vld [vmem:[%s8064_s2 + $0x220] sm:$0xff]  ;;  %v1750_v29 = vld [vmem:[%s8064_s2 + $0x228] sm:$0xff] }
  0x81   : > { %1491 = vmatprep.subr.bf16.mxu0 %v4781_v36  ;;  %1564 = vmatprep.subr.bf16.mxu1 %v4783_v37  ;;  %v5939_v36 = vcombine.high %v1690_v31, %v1694_v60  ;;  %v1697_v37 = vld [vmem:[%s8064_s2 + $0x80] sm:$0xff] }
  0x82   : > { %8341 = vst [vmem:[#allocation8_spill] sm:$0xff] %v5934_v33  ;;  %8342 = vst [vmem:[#allocation9_spill] sm:$0xff] %v5936_v35  ;;  %v5982_v49 = vcombine.low %v1697_v37, %v1701_v38 }
  0x83   : > { %8343 = vst [vmem:[#allocation10_spill] sm:$0xff] %v5939_v36 }
  0x84   : > { %1492 = vmatpush1.bf16.msra.mxu0 %v4780_v43  ;;  %1565 = vmatpush1.bf16.msra.mxu1 %v4782_v44  ;;  %v5960_v43 = vcombine.low %v1690_v31, %v1694_v60  ;;  %v5962_v44 = vcombine.high %v1697_v37, %v1701_v38  ;;  %8348 = vst [vmem:[#allocation15_spill] sm:$0xff] %v5982_v49  ;;  %v1753_v38 = vld [vmem:[%s8064_s2 + $0x240] sm:$0xff] }
  0x85   : > { %1493 = vmatprep.subr.bf16.mxu0 %v4789_v45  ;;  %1566 = vmatprep.subr.bf16.mxu1 %v4791_v46  ;;  %v5965_v45 = vcombine.high %v1698_v39, %v1702_v40  ;;  %v1709_v46 = vld [vmem:[%s8064_s2 + $0xe0] sm:$0xff]  ;;  %v1754_v39 = vld [vmem:[%s8064_s2 + $0x248] sm:$0xff] }
  0x86   : > { %8345 = vst [vmem:[#allocation12_spill] sm:$0xff] %v5960_v43  ;;  %8346 = vst [vmem:[#allocation13_spill] sm:$0xff] %v5962_v44  ;;  %v1758_v40 = vld [vmem:[%s8064_s2 + $0x268] sm:$0xff] }
  0x87   : > { %8347 = vst [vmem:[#allocation14_spill] sm:$0xff] %v5965_v45 }
  0x88   : > { %1494 = vmatpush1.bf16.msra.mxu0 %v4788_v51  ;;  %1567 = vmatpush1.bf16.msra.mxu1 %v4790_v53  ;;  %v5991_v53 = vcombine.high %v1706_v47, %v1710_v48  ;;  %v6149_v48 = vcombine.high %v1754_v39, %v1758_v40 }
  0x89   : > { %1495 = vmatprep.subr.bf16.mxu0 %v4797_v54  ;;  %1568 = vmatprep.subr.bf16.mxu1 %v4799_v55  ;;  %v1717_v54 = vld [vmem:[%s8064_s2 + $0x120] sm:$0xff]  ;;  %v1714_v55 = vld [vmem:[%s8064_s2 + $0x108] sm:$0xff] }
  0x8a   : > { %8351 = vst [vmem:[#allocation18_spill] sm:$0xff] %v5991_v53  ;;  %v6038_v3 = vcombine.low %v1714_v55, %v1718_v56  ;;  %8375 = vst [vmem:[#allocation42_spill] sm:$0xff] %v6149_v48 }
  0x8c   : > { %1496 = vmatpush1.bf16.msra.mxu0 %v4796_v62  ;;  %1569 = vmatpush1.bf16.msra.mxu1 %v4798_v63  ;;  %v6017_v62 = vcombine.high %v1714_v55, %v1718_v56  ;;  %v1721_v63 = vld [vmem:[%s8064_s2 + $0x140] sm:$0xff]  ;;  %8357 = vst [vmem:[#allocation24_spill] sm:$0xff] %v6038_v3  ;;  %v1762_v55 = vld [vmem:[%s8064_s2 + $0x288] sm:$0xff] }
  0x8d   : > { %1497 = vmatprep.subr.bf16.mxu0 %v4805_v0  ;;  %1570 = vmatprep.subr.bf16.mxu1 %v4807_v1  ;;  %v1722_v0 = vld [vmem:[%s8064_s2 + $0x148] sm:$0xff] }
  0x8e   : > { %8355 = vst [vmem:[#allocation22_spill] sm:$0xff] %v6017_v62  ;;  %v1726_v1 = vld [vmem:[%s8064_s2 + $0x168] sm:$0xff] }
  0x8f   : > { %v6043_v5 = vcombine.high %v1722_v0, %v1726_v1  ;;  %v6064_v11 = vcombine.low %v1722_v0, %v1726_v1  ;;  %v1766_v56 = vld [vmem:[%s8064_s2 + $0x2a8] sm:$0xff] }
  0x90   : > { %1498 = vmatpush1.bf16.msra.mxu0 %v4804_v6  ;;  %1571 = vmatpush1.bf16.msra.mxu1 %v4806_v8  ;;  %v1733_v6 = vld [vmem:[%s8064_s2 + $0x1a0] sm:$0xff]  ;;  %v1730_v8 = vld [vmem:[%s8064_s2 + $0x188] sm:$0xff]  ;;  %v6173_v1 = vcombine.high %v1762_v55, %v1766_v56 }
  0x91   : > { %1499 = vmatprep.subr.bf16.mxu0 %v4813_v9  ;;  %1572 = vmatprep.subr.bf16.mxu1 %v4815_v10  ;;  %8359 = vst [vmem:[#allocation26_spill] sm:$0xff] %v6043_v5  ;;  %v1734_v9 = vld [vmem:[%s8064_s2 + $0x1a8] sm:$0xff]  ;;  %8361 = vst [vmem:[#allocation28_spill] sm:$0xff] %v6064_v11 }
  0x92   : > { %v6069_v13 = vcombine.high %v1730_v8, %v1734_v9  ;;  %v6090_v20 = vcombine.low %v1730_v8, %v1734_v9  ;;  %8379 = vst [vmem:[#allocation46_spill] sm:$0xff] %v6173_v1  ;;  %v1770_v8 = vld [vmem:[%s8064_s2 + $0x2c8] sm:$0xff] }
  0x93   : > { %v1774_v9 = vld [vmem:[%s8064_s2 + $0x2e8] sm:$0xff] }
  0x94   : > { %1500 = vmatpush1.bf16.msra.mxu0 %v4812_v16  ;;  %1573 = vmatpush1.bf16.msra.mxu1 %v4814_v17  ;;  %8363 = vst [vmem:[#allocation30_spill] sm:$0xff] %v6069_v13  ;;  %v1738_v16 = vld [vmem:[%s8064_s2 + $0x1c8] sm:$0xff]  ;;  %8365 = vst [vmem:[#allocation32_spill] sm:$0xff] %v6090_v20 }
  0x95   : > { %1501 = vmatprep.subr.bf16.mxu0 %v4821_v18  ;;  %1574 = vmatprep.subr.bf16.mxu1 %v4823_v19  ;;  %v1742_v17 = vld [vmem:[%s8064_s2 + $0x1e8] sm:$0xff] }
  0x96   : > { %v1810_v18 = vld [vmem:[#allocation2 + $0x8] sm:$0xff]  ;;  %v6095_v22 = vcombine.high %v1738_v16, %v1742_v17  ;;  %v6118_v31 = vcombine.low %v1738_v16, %v1742_v17  ;;  %v6197_v17 = vcombine.high %v1770_v8, %v1774_v9 }
  0x98   : > { %1502 = vmatpush1.bf16.msra.mxu0 %v4820_v25  ;;  %1575 = vmatpush1.bf16.msra.mxu1 %v4822_v26  ;;  %8367 = vst [vmem:[#allocation34_spill] sm:$0xff] %v6095_v22  ;;  %v6103_v25 = vpack.c.bf16 %v1810_v18, %v1810_v18  ;;  %v1746_v26 = vld [vmem:[%s8064_s2 + $0x208] sm:$0xff]  ;;  %8369 = vst [vmem:[#allocation36_spill] sm:$0xff] %v6118_v31  ;;  %v1777_v18 = vld [vmem:[%s8064_s2 + $0x300] sm:$0xff] }
  0x99   : > { %2466 = vmatprep.subr.bf16.mxu0 %v5915_v27  ;;  %2507 = vmatprep.subr.bf16.mxu1 %v5917_v28  ;;  %v6123_v37 = vcombine.high %v1746_v26, %v1750_v29  ;;  %8383 = vst [vmem:[#allocation50_spill] sm:$0xff] %v6197_v17 }
  0x9b   : > { %1504 = vmatmul.mubr.bf16.vlgmr.msra.gmra.mrb[16].mxu0 %v5693_v14  ;;  %1577 = vmatmul.mubr.bf16.vlgmr.msra.gmra.mrb[16].mxu1 %v5693_v14  ;;  %v1705_v14 = vld [vmem:[%s8064_s2 + $0xc0] sm:$0xff]  ;;  %8371 = vst [vmem:[#allocation38_spill] sm:$0xff] %v6123_v37 }
  0x9c   : > { %2467 = vmatpush1.bf16.msra.mxu0 %v5931_v32  ;;  %2508 = vmatpush1.bf16.msra.mxu1 %v5934_v33  ;;  %v5988_v51 = vcombine.high %v1705_v14, %v1709_v46  ;;  %v6007_v57 = vcombine.low %v1705_v14, %v1709_v46  ;;  %v6144_v46 = vcombine.low %v1746_v26, %v1750_v29  ;;  %v1782_v26 = vld [vmem:[%s8064_s2 + $0x328] sm:$0xff] }
  0x9d   : > { %2468 = vmatprep.subr.bf16.mxu0 %v5936_v35  ;;  %2509 = vmatprep.subr.bf16.mxu1 %v5939_v36 }
  0x9e   : > { %1513 = vmatprep.mubr.bf16.mxu0 %v5708_v23  ;;  %1586 = vmatprep.mubr.bf16.mxu1 %v5708_v23  ;;  %8350 = vst [vmem:[#allocation17_spill] sm:$0xff] %v5988_v51  ;;  %v1713_v23 = vld [vmem:[%s8064_s2 + $0x100] sm:$0xff]  ;;  %8352 = vst [vmem:[#allocation19_spill] sm:$0xff] %v6007_v57 }
  0x9f   : > { %v6014_v61 = vcombine.high %v1713_v23, %v1717_v54  ;;  %v6034_v2 = vcombine.low %v1713_v23, %v1717_v54  ;;  %8373 = vst [vmem:[#allocation40_spill] sm:$0xff] %v6144_v46  ;;  %v1761_v23 = vld [vmem:[%s8064_s2 + $0x280] sm:$0xff] }
  0xa0   : > { %2469 = vmatpush1.bf16.msra.mxu0 %v5956_v42  ;;  %2510 = vmatpush1.bf16.msra.mxu1 %v5960_v43  ;;  %v1765_v54 = vld [vmem:[%s8064_s2 + $0x2a0] sm:$0xff] }
  0xa1   : > { %2470 = vmatprep.subr.bf16.mxu0 %v5962_v44  ;;  %2511 = vmatprep.subr.bf16.mxu1 %v5965_v45  ;;  %8354 = vst [vmem:[#allocation21_spill] sm:$0xff] %v6014_v61  ;;  %8356 = vst [vmem:[#allocation23_spill] sm:$0xff] %v6034_v2  ;;  %v6170_v0 = vcombine.high %v1761_v23, %v1765_v54 }
  0xa3   : > { %1514 = vmatmul.mubr.bf16.gmra.mrb[20].mxu0 %v5733_v34  ;;  %1587 = vmatmul.mubr.bf16.gmra.mrb[20].mxu1 %v5733_v34  ;;  %v1725_v34 = vld [vmem:[%s8064_s2 + $0x160] sm:$0xff]  ;;  %8378 = vst [vmem:[#allocation45_spill] sm:$0xff] %v6170_v0 }
  0xa4   : > { %2471 = vmatpush1.bf16.msra.mxu0 %v5982_v49  ;;  %2512 = vmatpush1.bf16.msra.mxu1 %v5986_v50  ;;  %v6040_v4 = vcombine.high %v1721_v63, %v1725_v34  ;;  %v6059_v10 = vcombine.low %v1721_v63, %v1725_v34  ;;  %v6168_v34 = vcombine.low %v1754_v39, %v1758_v40  ;;  %v1785_v40 = vld [vmem:[%s8064_s2 + $0x340] sm:$0xff] }
  0xa5   : > { %2472 = vmatprep.subr.bf16.mxu0 %v5988_v51  ;;  %2513 = vmatprep.subr.bf16.mxu1 %v5991_v53 }
  0xa6   : > { %1523 = vmatprep.mubr.bf16.mxu0 %v5742_v41  ;;  %1596 = vmatprep.mubr.bf16.mxu1 %v5742_v41  ;;  %8358 = vst [vmem:[#allocation25_spill] sm:$0xff] %v6040_v4  ;;  %v1729_v41 = vld [vmem:[%s8064_s2 + $0x180] sm:$0xff]  ;;  %8360 = vst [vmem:[#allocation27_spill] sm:$0xff] %v6059_v10 }
  0xa7   : > { %v6066_v12 = vcombine.high %v1729_v41, %v1733_v6  ;;  %v6086_v19 = vcombine.low %v1729_v41, %v1733_v6  ;;  %8377 = vst [vmem:[#allocation44_spill] sm:$0xff] %v6168_v34  ;;  %v1769_v41 = vld [vmem:[%s8064_s2 + $0x2c0] sm:$0xff] }
  0xa8   : > { %2473 = vmatpush1.bf16.msra.mxu0 %v6007_v57  ;;  %2514 = vmatpush1.bf16.msra.mxu1 %v6012_v58  ;;  %v1773_v6 = vld [vmem:[%s8064_s2 + $0x2e0] sm:$0xff] }
  0xa9   : > { %2474 = vmatprep.subr.bf16.mxu0 %v6014_v61  ;;  %2515 = vmatprep.subr.bf16.mxu1 %v6017_v62  ;;  %8362 = vst [vmem:[#allocation29_spill] sm:$0xff] %v6066_v12  ;;  %8364 = vst [vmem:[#allocation31_spill] sm:$0xff] %v6086_v19  ;;  %v6194_v16 = vcombine.high %v1769_v41, %v1773_v6  ;;  %v6212_v29 = vcombine.low %v1769_v41, %v1773_v6 }
  0xab   : > { %1524 = vmatmul.mubr.bf16.gmra.mrb[24].mxu0 %v5767_v52  ;;  %1597 = vmatmul.mubr.bf16.gmra.mrb[24].mxu1 %v5767_v52  ;;  %v1741_v52 = vld [vmem:[%s8064_s2 + $0x1e0] sm:$0xff]  ;;  %8382 = vst [vmem:[#allocation49_spill] sm:$0xff] %v6194_v16  ;;  %8384 = vst [vmem:[#allocation51_spill] sm:$0xff] %v6212_v29 }
  0xac   : > { %2475 = vmatpush1.bf16.msra.mxu0 %v6034_v2  ;;  %2516 = vmatpush1.bf16.msra.mxu1 %v6038_v3  ;;  %v6092_v21 = vcombine.high %v1737_v15, %v1741_v52  ;;  %v6113_v30 = vcombine.low %v1737_v15, %v1741_v52  ;;  %v6188_v15 = vcombine.low %v1761_v23, %v1765_v54  ;;  %v1789_v23 = vld [vmem:[%s8064_s2 + $0x360] sm:$0xff]  ;;  %v1786_v54 = vld [vmem:[%s8064_s2 + $0x348] sm:$0xff] }
  0xad   : > { %2476 = vmatprep.subr.bf16.mxu0 %v6040_v4  ;;  %2517 = vmatprep.subr.bf16.mxu1 %v6043_v5  ;;  %v6192_v52 = vcombine.low %v1762_v55, %v1766_v56  ;;  %v1790_v55 = vld [vmem:[%s8064_s2 + $0x368] sm:$0xff]  ;;  %v6242_v6 = vcombine.high %v1785_v40, %v1789_v23 }
  0xae   : > { %1533 = vmatprep.mubr.bf16.mxu0 %v5776_v59  ;;  %1606 = vmatprep.mubr.bf16.mxu1 %v5776_v59  ;;  %8366 = vst [vmem:[#allocation33_spill] sm:$0xff] %v6092_v21  ;;  %v1745_v59 = vld [vmem:[%s8064_s2 + $0x200] sm:$0xff]  ;;  %8368 = vst [vmem:[#allocation35_spill] sm:$0xff] %v6113_v30 }
  0xaf   : > { %v6120_v60 = vcombine.high %v1745_v59, %v1749_v24  ;;  %v6140_v14 = vcombine.low %v1745_v59, %v1749_v24  ;;  %8380 = vst [vmem:[#allocation47_spill] sm:$0xff] %v6188_v15  ;;  %8381 = vst [vmem:[#allocation48_spill] sm:$0xff] %v6192_v52  ;;  %v1781_v59 = vld [vmem:[%s8064_s2 + $0x320] sm:$0xff]  ;;  %v1778_v24 = vld [vmem:[%s8064_s2 + $0x308] sm:$0xff] }
  0xb0   : > { %2477 = vmatpush1.bf16.msra.mxu0 %v6059_v10  ;;  %2518 = vmatpush1.bf16.msra.mxu1 %v6064_v11  ;;  %v6221_v39 = vcombine.high %v1778_v24, %v1782_v26  ;;  %v6236_v56 = vcombine.low %v1777_v18, %v1781_v59  ;;  %v6240_v41 = vcombine.low %v1778_v24, %v1782_v26  ;;  %v1798_v24 = vld [vmem:[%s8064_s2 + $0x3a8] sm:$0xff] }
  0xb1   : > { %2478 = vmatprep.subr.bf16.mxu0 %v6066_v12  ;;  %2519 = vmatprep.subr.bf16.mxu1 %v6069_v13  ;;  %8370 = vst [vmem:[#allocation37_spill] sm:$0xff] %v6120_v60  ;;  %8372 = vst [vmem:[#allocation39_spill] sm:$0xff] %v6140_v14  ;;  %v6260_v26 = vcombine.low %v1785_v40, %v1789_v23  ;;  %v1805_v40 = vld [vmem:[%s8064_s2 + $0x3e0] sm:$0xff]  ;;  %v1802_v23 = vld [vmem:[%s8064_s2 + $0x3c8] sm:$0xff] }
  0xb2   : > { %8387 = vst [vmem:[#allocation54_spill] sm:$0xff] %v6221_v39  ;;  %8388 = vst [vmem:[#allocation55_spill] sm:$0xff] %v6236_v56 }
  0xb3   : > { %1534 = vmatmul.mubr.bf16.gmra.mrb[28].mxu0 %v5801_v7  ;;  %1607 = vmatmul.mubr.bf16.gmra.mrb[28].mxu1 %v5801_v7  ;;  %v1757_v7 = vld [vmem:[%s8064_s2 + $0x260] sm:$0xff]  ;;  %8389 = vst [vmem:[#allocation56_spill] sm:$0xff] %v6240_v41  ;;  %8390 = vst [vmem:[#allocation57_spill] sm:$0xff] %v6242_v6 }
  0xb4   : > { %2479 = vmatpush1.bf16.msra.mxu0 %v6086_v19  ;;  %2520 = vmatpush1.bf16.msra.mxu1 %v6090_v20  ;;  %v6146_v47 = vcombine.high %v1753_v38, %v1757_v7  ;;  %v6164_v63 = vcombine.low %v1753_v38, %v1757_v7  ;;  %v6216_v38 = vcombine.low %v1770_v8, %v1774_v9  ;;  %v1793_v9 = vld [vmem:[%s8064_s2 + $0x380] sm:$0xff] }
  0xb5   : > { %2480 = vmatprep.subr.bf16.mxu0 %v6092_v21  ;;  %2521 = vmatprep.subr.bf16.mxu1 %v6095_v22  ;;  %v6218_v7 = vcombine.high %v1777_v18, %v1781_v59  ;;  %v6245_v8 = vcombine.high %v1786_v54, %v1790_v55  ;;  %v1797_v18 = vld [vmem:[%s8064_s2 + $0x3a0] sm:$0xff]  ;;  %v1794_v59 = vld [vmem:[%s8064_s2 + $0x388] sm:$0xff]  ;;  %8392 = vst [vmem:[#allocation59_spill] sm:$0xff] %v6260_v26 }
  0xb6   : > { %2498 = vmatprep.mubr.bf16.mxu0 %v6103_v25  ;;  %2539 = vmatprep.mubr.bf16.mxu1 %v6103_v25  ;;  %8374 = vst [vmem:[#allocation41_spill] sm:$0xff] %v6146_v47  ;;  %8376 = vst [vmem:[#allocation43_spill] sm:$0xff] %v6164_v63 }
  0xb7   : > { %8385 = vst [vmem:[#allocation52_spill] sm:$0xff] %v6216_v38  ;;  %8386 = vst [vmem:[#allocation53_spill] sm:$0xff] %v6218_v7 }
  0xb8   : > { %2481 = vmatpush1.bf16.msra.mxu0 %v6113_v30  ;;  %2522 = vmatpush1.bf16.msra.mxu1 %v6118_v31  ;;  %8391 = vst [vmem:[#allocation58_spill] sm:$0xff] %v6245_v8 }
  0xb9   : > { %2482 = vmatprep.subr.bf16.mxu0 %v6120_v60  ;;  %2523 = vmatprep.subr.bf16.mxu1 %v6123_v37 }
  0xbc   : > { %2483 = vmatpush1.bf16.msra.mxu0 %v6140_v14  ;;  %2524 = vmatpush1.bf16.msra.mxu1 %v6144_v46 }
  0xbd   : > { %2484 = vmatprep.subr.bf16.mxu0 %v6146_v47  ;;  %2525 = vmatprep.subr.bf16.mxu1 %v6149_v48 }
  0xc0   : > { %2485 = vmatpush1.bf16.msra.mxu0 %v6164_v63  ;;  %2526 = vmatpush1.bf16.msra.mxu1 %v6168_v34 }
  0xc1   : > { %2486 = vmatprep.subr.bf16.mxu0 %v6170_v0  ;;  %2527 = vmatprep.subr.bf16.mxu1 %v6173_v1 }
  0xc4   : > { %2487 = vmatpush1.bf16.msra.mxu0 %v6188_v15  ;;  %2528 = vmatpush1.bf16.msra.mxu1 %v6192_v52 }
  0xc5   : > { %2488 = vmatprep.subr.bf16.mxu0 %v6194_v16  ;;  %2529 = vmatprep.subr.bf16.mxu1 %v6197_v17  ;;  %v1691_v17 = vld [vmem:[%s8064_s2 + $0x50] sm:$0xff] }
  0xc8   : > { %2489 = vmatpush1.bf16.msra.mxu0 %v6212_v29  ;;  %2530 = vmatpush1.bf16.msra.mxu1 %v6216_v38  ;;  %v6269_v38 = vcombine.high %v1794_v59, %v1798_v24  ;;  %v1801_v29 = vld [vmem:[%s8064_s2 + $0x3c0] sm:$0xff] }
  0xc9   : > { %2490 = vmatprep.subr.bf16.mxu0 %v6218_v7  ;;  %2531 = vmatprep.subr.bf16.mxu1 %v6221_v39  ;;  %v6264_v39 = vcombine.low %v1786_v54, %v1790_v55  ;;  %v6266_v7 = vcombine.high %v1793_v9, %v1797_v18  ;;  %v1806_v54 = vld [vmem:[%s8064_s2 + $0x3e8] sm:$0xff]  ;;  %v6284_v55 = vcombine.low %v1793_v9, %v1797_v18  ;;  %v1687_v9 = vld [vmem:[%s8064_s2 + $0x30] sm:$0xff]  ;;  %v1684_v18 = vld [vmem:[%s8064_s2 + $0x18] sm:$0xff] }
  0xca   : > { %8395 = vst [vmem:[#allocation62_spill] sm:$0xff] %v6269_v38 }
  0xcb   : > { %8393 = vst [vmem:[#allocation60_spill] sm:$0xff] %v6264_v39  ;;  %8394 = vst [vmem:[#allocation61_spill] sm:$0xff] %v6266_v7 }
  0xcc   : > { %2491 = vmatpush1.bf16.msra.mxu0 %v6236_v56  ;;  %2532 = vmatpush1.bf16.msra.mxu1 %v6240_v41  ;;  %8396 = vst [vmem:[#allocation63_spill] sm:$0xff] %v6284_v55  ;;  %v6293_v41 = vcombine.high %v1802_v23, %v1806_v54  ;;  %v1683_v56 = vld [vmem:[%s8064_s2 + $0x10] sm:$0xff] }
  0xcd   : > { %2492 = vmatprep.subr.bf16.mxu0 %v6242_v6  ;;  %2533 = vmatprep.subr.bf16.mxu1 %v6245_v8  ;;  %v6288_v8 = vcombine.low %v1794_v59, %v1798_v24  ;;  %v6290_v6 = vcombine.high %v1801_v29, %v1805_v40  ;;  %v1688_v59 = vld [vmem:[%s8064_s2 + $0x38] sm:$0xff]  ;;  %v6308_v24 = vcombine.low %v1801_v29, %v1805_v40  ;;  %v1695_v29 = vld [vmem:[%s8064_s2 + $0x70] sm:$0xff] }
  0xce   : > { %8399 = vst [vmem:[#allocation66_spill] sm:$0xff] %v6293_v41 }
  0xcf   : > { %8397 = vst [vmem:[#allocation64_spill] sm:$0xff] %v6288_v8  ;;  %8398 = vst [vmem:[#allocation65_spill] sm:$0xff] %v6290_v6 }
  0xd0   : > { %2493 = vmatpush1.bf16.msra.mxu0 %v6260_v26  ;;  %2534 = vmatpush1.bf16.msra.mxu1 %v6264_v39  ;;  %8400 = vst [vmem:[#allocation67_spill] sm:$0xff] %v6308_v24  ;;  %v6314_v39 = vcombine.high %v1683_v56, %v1687_v9  ;;  %v6317_v26 = vcombine.high %v1684_v18, %v1688_v59 }
  0xd1   : > { %2494 = vmatprep.subr.bf16.mxu0 %v6266_v7  ;;  %2535 = vmatprep.subr.bf16.mxu1 %v6269_v38  ;;  %v1809_v38 = vld [vmem:[#allocation2] sm:$0xff]  ;;  %v6312_v7 = vcombine.low %v1802_v23, %v1806_v54  ;;  %v1692_v23 = vld [vmem:[%s8064_s2 + $0x58] sm:$0xff] }
  0xd2   : > { %8402 = vst [vmem:[#allocation69_spill] sm:$0xff] %v6314_v39  ;;  %8403 = vst [vmem:[#allocation70_spill] sm:$0xff] %v6317_v26  ;;  %v6325_v40 = vpack.c.bf16 %v1809_v38, %v1809_v38  ;;  %v1696_v54 = vld [vmem:[%s8064_s2 + $0x78] sm:$0xff]  ;;  %v6340_v38 = vcombine.high %v1691_v17, %v1695_v29 }
  0xd3   : > { %8401 = vst [vmem:[#allocation68_spill] sm:$0xff] %v6312_v7 }
  0xd4   : > { %2495 = vmatpush1.bf16.msra.mxu0 %v6284_v55  ;;  %2536 = vmatpush1.bf16.msra.mxu1 %v6288_v8  ;;  %8405 = vst [vmem:[#allocation72_spill] sm:$0xff] %v6340_v38  ;;  %v6343_v8 = vcombine.high %v1692_v23, %v1696_v54  ;;  %v1699_v55 = vld [vmem:[%s8064_s2 + $0x90] sm:$0xff] }
  0xd5   : > { %2496 = vmatprep.subr.bf16.mxu0 %v6290_v6  ;;  %2537 = vmatprep.subr.bf16.mxu1 %v6293_v41  ;;  %v6334_v41 = vcombine.low %v1683_v56, %v1687_v9  ;;  %v6338_v6 = vcombine.low %v1684_v18, %v1688_v59  ;;  %v1703_v56 = vld [vmem:[%s8064_s2 + $0xb0] sm:$0xff]  ;;  %v1700_v9 = vld [vmem:[%s8064_s2 + $0x98] sm:$0xff]  ;;  %v6360_v59 = vcombine.low %v1691_v17, %v1695_v29 }
  0xd6   : > { %8406 = vst [vmem:[#allocation73_spill] sm:$0xff] %v6343_v8  ;;  %v1704_v18 = vld [vmem:[%s8064_s2 + $0xb8] sm:$0xff]  ;;  %v1711_v17 = vld [vmem:[%s8064_s2 + $0xf0] sm:$0xff] }
  0xd7   : > { %8404 = vst [vmem:[#allocation71_spill] sm:$0xff] %v6338_v6  ;;  %8407 = vst [vmem:[#allocation74_spill] sm:$0xff] %v6360_v59  ;;  %v1708_v29 = vld [vmem:[%s8064_s2 + $0xd8] sm:$0xff] }
  0xd8   : > { %2497 = vmatpush1.bf16.msra.mxu0 %v6308_v24  ;;  %2538 = vmatpush1.bf16.msra.mxu1 %v6312_v7  ;;  %v6369_v7 = vcombine.high %v1700_v9, %v1704_v18  ;;  %v1707_v24 = vld [vmem:[%s8064_s2 + $0xd0] sm:$0xff] }
  0xd9   : > { %2548 = vmatprep.subr.bf16.mxu0 %v6314_v39  ;;  %2589 = vmatprep.subr.bf16.mxu1 %v6317_v26  ;;  %v6364_v26 = vcombine.low %v1692_v23, %v1696_v54  ;;  %v6366_v39 = vcombine.high %v1699_v55, %v1703_v56  ;;  %v1712_v23 = vld [vmem:[%s8064_s2 + $0xf8] sm:$0xff]  ;;  %v6386_v54 = vcombine.low %v1699_v55, %v1703_v56  ;;  %v1719_v55 = vld [vmem:[%s8064_s2 + $0x130] sm:$0xff] }
  0xda   : > { %8410 = vst [vmem:[#allocation77_spill] sm:$0xff] %v6369_v7  ;;  %v1716_v56 = vld [vmem:[%s8064_s2 + $0x118] sm:$0xff] }
  0xdb   : > { %2499 = vmatmul.mubr.bf16.vlgmr.msra.gmra.mrb[32].mxu0 %v6325_v40  ;;  %2540 = vmatmul.mubr.bf16.vlgmr.msra.gmra.mrb[32].mxu1 %v6325_v40  ;;  %8408 = vst [vmem:[#allocation75_spill] sm:$0xff] %v6364_v26  ;;  %8409 = vst [vmem:[#allocation76_spill] sm:$0xff] %v6366_v39 }
  0xdc   : > { %2549 = vmatpush1.bf16.msra.mxu0 %v6334_v41  ;;  %2590 = vmatpush1.bf16.msra.mxu1 %v6338_v6  ;;  %8411 = vst [vmem:[#allocation78_spill] sm:$0xff] %v6386_v54  ;;  %v6395_v6 = vcombine.high %v1708_v29, %v1712_v23 }
  0xdd   : > { %2550 = vmatprep.subr.bf16.mxu0 %v6340_v38  ;;  %2591 = vmatprep.subr.bf16.mxu1 %v6343_v8  ;;  %v6390_v8 = vcombine.low %v1700_v9, %v1704_v18  ;;  %v6392_v38 = vcombine.high %v1707_v24, %v1711_v17  ;;  %v1720_v9 = vld [vmem:[%s8064_s2 + $0x138] sm:$0xff]  ;;  %v6410_v18 = vcombine.low %v1707_v24, %v1711_v17  ;;  %v1727_v24 = vld [vmem:[%s8064_s2 + $0x170] sm:$0xff] }
  0xde   : > { %2580 = vmatprep.mubr.bf16.mxu0 %v6103_v25  ;;  %2621 = vmatprep.mubr.bf16.mxu1 %v6103_v25  ;;  %8414 = vst [vmem:[#allocation81_spill] sm:$0xff] %v6395_v6  ;;  %v1715_v25 = vld [vmem:[%s8064_s2 + $0x110] sm:$0xff]  ;;  %v1724_v17 = vld [vmem:[%s8064_s2 + $0x158] sm:$0xff] }
  0xdf   : > { %8412 = vst [vmem:[#allocation79_spill] sm:$0xff] %v6390_v8  ;;  %8413 = vst [vmem:[#allocation80_spill] sm:$0xff] %v6392_v38 }
  0xe0   : > { %2551 = vmatpush1.bf16.msra.mxu0 %v6360_v59  ;;  %2592 = vmatpush1.bf16.msra.mxu1 %v6364_v26  ;;  %8415 = vst [vmem:[#allocation82_spill] sm:$0xff] %v6410_v18  ;;  %v6419_v26 = vcombine.high %v1716_v56, %v1720_v9  ;;  %v1723_v59 = vld [vmem:[%s8064_s2 + $0x150] sm:$0xff] }
  0xe1   : > { %2552 = vmatprep.subr.bf16.mxu0 %v6366_v39  ;;  %2593 = vmatprep.subr.bf16.mxu1 %v6369_v7  ;;  %v6414_v7 = vcombine.low %v1708_v29, %v1712_v23  ;;  %v6416_v39 = vcombine.high %v1715_v25, %v1719_v55  ;;  %v1728_v29 = vld [vmem:[%s8064_s2 + $0x178] sm:$0xff]  ;;  %v6434_v23 = vcombine.low %v1715_v25, %v1719_v55  ;;  %v1735_v25 = vld [vmem:[%s8064_s2 + $0x1b0] sm:$0xff] }
  0xe2   : > { %8418 = vst [vmem:[#allocation85_spill] sm:$0xff] %v6419_v26  ;;  %v1732_v55 = vld [vmem:[%s8064_s2 + $0x198] sm:$0xff] }
  0xe3   : > { %8416 = vst [vmem:[#allocation83_spill] sm:$0xff] %v6414_v7  ;;  %8417 = vst [vmem:[#allocation84_spill] sm:$0xff] %v6416_v39 }
  0xe4   : > { %2553 = vmatpush1.bf16.msra.mxu0 %v6386_v54  ;;  %2594 = vmatpush1.bf16.msra.mxu1 %v6390_v8  ;;  %8419 = vst [vmem:[#allocation86_spill] sm:$0xff] %v6434_v23  ;;  %v6443_v8 = vcombine.high %v1724_v17, %v1728_v29  ;;  %v1731_v54 = vld [vmem:[%s8064_s2 + $0x190] sm:$0xff] }
  0xe5   : > { %2554 = vmatprep.subr.bf16.mxu0 %v6392_v38  ;;  %2595 = vmatprep.subr.bf16.mxu1 %v6395_v6  ;;  %v6438_v6 = vcombine.low %v1716_v56, %v1720_v9  ;;  %v6440_v38 = vcombine.high %v1723_v59, %v1727_v24  ;;  %v1736_v56 = vld [vmem:[%s8064_s2 + $0x1b8] sm:$0xff]  ;;  %v6458_v9 = vcombine.low %v1723_v59, %v1727_v24  ;;  %v1743_v59 = vld [vmem:[%s8064_s2 + $0x1f0] sm:$0xff] }
  0xe6   : > { %8422 = vst [vmem:[#allocation89_spill] sm:$0xff] %v6443_v8  ;;  %v1740_v24 = vld [vmem:[%s8064_s2 + $0x1d8] sm:$0xff] }
  0xe7   : > { %8420 = vst [vmem:[#allocation87_spill] sm:$0xff] %v6438_v6  ;;  %8421 = vst [vmem:[#allocation88_spill] sm:$0xff] %v6440_v38 }
  0xe8   : > { %2555 = vmatpush1.bf16.msra.mxu0 %v6410_v18  ;;  %2596 = vmatpush1.bf16.msra.mxu1 %v6414_v7  ;;  %8423 = vst [vmem:[#allocation90_spill] sm:$0xff] %v6458_v9  ;;  %v6467_v7 = vcombine.high %v1732_v55, %v1736_v56  ;;  %v1739_v18 = vld [vmem:[%s8064_s2 + $0x1d0] sm:$0xff] }
  0xe9   : > { %2556 = vmatprep.subr.bf16.mxu0 %v6416_v39  ;;  %2597 = vmatprep.subr.bf16.mxu1 %v6419_v26  ;;  %v6462_v26 = vcombine.low %v1724_v17, %v1728_v29  ;;  %v6464_v39 = vcombine.high %v1731_v54, %v1735_v25  ;;  %v1744_v17 = vld [vmem:[%s8064_s2 + $0x1f8] sm:$0xff]  ;;  %v6482_v29 = vcombine.low %v1731_v54, %v1735_v25  ;;  %v1751_v54 = vld [vmem:[%s8064_s2 + $0x230] sm:$0xff] }
  0xea   : > { %8426 = vst [vmem:[#allocation93_spill] sm:$0xff] %v6467_v7  ;;  %v1748_v25 = vld [vmem:[%s8064_s2 + $0x218] sm:$0xff] }
  0xeb   : > { %8424 = vst [vmem:[#allocation91_spill] sm:$0xff] %v6462_v26  ;;  %8425 = vst [vmem:[#allocation92_spill] sm:$0xff] %v6464_v39 }
  0xec   : > { %2557 = vmatpush1.bf16.msra.mxu0 %v6434_v23  ;;  %2598 = vmatpush1.bf16.msra.mxu1 %v6438_v6  ;;  %8427 = vst [vmem:[#allocation94_spill] sm:$0xff] %v6482_v29  ;;  %v6491_v6 = vcombine.high %v1740_v24, %v1744_v17  ;;  %v1747_v23 = vld [vmem:[%s8064_s2 + $0x210] sm:$0xff] }
  0xed   : > { %2558 = vmatprep.subr.bf16.mxu0 %v6440_v38  ;;  %2599 = vmatprep.subr.bf16.mxu1 %v6443_v8  ;;  %v6486_v8 = vcombine.low %v1732_v55, %v1736_v56  ;;  %v6488_v38 = vcombine.high %v1739_v18, %v1743_v59  ;;  %v1752_v55 = vld [vmem:[%s8064_s2 + $0x238] sm:$0xff]  ;;  %v6506_v56 = vcombine.low %v1739_v18, %v1743_v59  ;;  %v1759_v18 = vld [vmem:[%s8064_s2 + $0x270] sm:$0xff] }
  0xee   : > { %8430 = vst [vmem:[#allocation97_spill] sm:$0xff] %v6491_v6  ;;  %v1756_v59 = vld [vmem:[%s8064_s2 + $0x258] sm:$0xff] }
  0xef   : > { %8428 = vst [vmem:[#allocation95_spill] sm:$0xff] %v6486_v8  ;;  %8429 = vst [vmem:[#allocation96_spill] sm:$0xff] %v6488_v38 }
  0xf0   : > { %2559 = vmatpush1.bf16.msra.mxu0 %v6458_v9  ;;  %2600 = vmatpush1.bf16.msra.mxu1 %v6462_v26  ;;  %8431 = vst [vmem:[#allocation98_spill] sm:$0xff] %v6506_v56  ;;  %v6515_v26 = vcombine.high %v1748_v25, %v1752_v55  ;;  %v1755_v9 = vld [vmem:[%s8064_s2 + $0x250] sm:$0xff] }
  0xf1   : > { %2560 = vmatprep.subr.bf16.mxu0 %v6464_v39  ;;  %2601 = vmatprep.subr.bf16.mxu1 %v6467_v7  ;;  %v6510_v7 = vcombine.low %v1740_v24, %v1744_v17  ;;  %v6512_v39 = vcombine.high %v1747_v23, %v1751_v54  ;;  %v1760_v24 = vld [vmem:[%s8064_s2 + $0x278] sm:$0xff]  ;;  %v6530_v17 = vcombine.low %v1747_v23, %v1751_v54  ;;  %v1767_v23 = vld [vmem:[%s8064_s2 + $0x2b0] sm:$0xff] }
  0xf2   : > { %8434 = vst [vmem:[#allocation101_spill] sm:$0xff] %v6515_v26  ;;  %v1764_v54 = vld [vmem:[%s8064_s2 + $0x298] sm:$0xff] }
  0xf3   : > { %8432 = vst [vmem:[#allocation99_spill] sm:$0xff] %v6510_v7  ;;  %8433 = vst [vmem:[#allocation100_spill] sm:$0xff] %v6512_v39 }
  0xf4   : > { %2561 = vmatpush1.bf16.msra.mxu0 %v6482_v29  ;;  %2602 = vmatpush1.bf16.msra.mxu1 %v6486_v8  ;;  %8435 = vst [vmem:[#allocation102_spill] sm:$0xff] %v6530_v17  ;;  %v6539_v8 = vcombine.high %v1756_v59, %v1760_v24  ;;  %v1763_v29 = vld [vmem:[%s8064_s2 + $0x290] sm:$0xff] }
  0xf5   : > { %2562 = vmatprep.subr.bf16.mxu0 %v6488_v38  ;;  %2603 = vmatprep.subr.bf16.mxu1 %v6491_v6  ;;  %v6534_v6 = vcombine.low %v1748_v25, %v1752_v55  ;;  %v6536_v38 = vcombine.high %v1755_v9, %v1759_v18  ;;  %v1768_v25 = vld [vmem:[%s8064_s2 + $0x2b8] sm:$0xff]  ;;  %v6554_v55 = vcombine.low %v1755_v9, %v1759_v18  ;;  %v1775_v9 = vld [vmem:[%s8064_s2 + $0x2f0] sm:$0xff] }
  0xf6   : > { %8438 = vst [vmem:[#allocation105_spill] sm:$0xff] %v6539_v8  ;;  %v1772_v18 = vld [vmem:[%s8064_s2 + $0x2d8] sm:$0xff] }
  0xf7   : > { %8436 = vst [vmem:[#allocation103_spill] sm:$0xff] %v6534_v6  ;;  %8437 = vst [vmem:[#allocation104_spill] sm:$0xff] %v6536_v38 }
  0xf8   : > { %2563 = vmatpush1.bf16.msra.mxu0 %v6506_v56  ;;  %2604 = vmatpush1.bf16.msra.mxu1 %v6510_v7  ;;  %8439 = vst [vmem:[#allocation106_spill] sm:$0xff] %v6554_v55  ;;  %v6563_v7 = vcombine.high %v1764_v54, %v1768_v25  ;;  %v1771_v56 = vld [vmem:[%s8064_s2 + $0x2d0] sm:$0xff] }
  0xf9   : > { %2564 = vmatprep.subr.bf16.mxu0 %v6512_v39  ;;  %2605 = vmatprep.subr.bf16.mxu1 %v6515_v26  ;;  %v6558_v26 = vcombine.low %v1756_v59, %v1760_v24  ;;  %v6560_v39 = vcombine.high %v1763_v29, %v1767_v23  ;;  %v1776_v59 = vld [vmem:[%s8064_s2 + $0x2f8] sm:$0xff]  ;;  %v6578_v24 = vcombine.low %v1763_v29, %v1767_v23  ;;  %v1783_v29 = vld [vmem:[%s8064_s2 + $0x330] sm:$0xff] }
  0xfa   : > { %8442 = vst [vmem:[#allocation109_spill] sm:$0xff] %v6563_v7  ;;  %v1780_v23 = vld [vmem:[%s8064_s2 + $0x318] sm:$0xff] }
  0xfb   : > { %8440 = vst [vmem:[#allocation107_spill] sm:$0xff] %v6558_v26  ;;  %8441 = vst [vmem:[#allocation108_spill] sm:$0xff] %v6560_v39 }
  0xfc   : > { %2565 = vmatpush1.bf16.msra.mxu0 %v6530_v17  ;;  %2606 = vmatpush1.bf16.msra.mxu1 %v6534_v6  ;;  %8443 = vst [vmem:[#allocation110_spill] sm:$0xff] %v6578_v24  ;;  %v6587_v6 = vcombine.high %v1772_v18, %v1776_v59  ;;  %v1779_v17 = vld [vmem:[%s8064_s2 + $0x310] sm:$0xff] }
  0xfd   : > { %2566 = vmatprep.subr.bf16.mxu0 %v6536_v38  ;;  %2607 = vmatprep.subr.bf16.mxu1 %v6539_v8  ;;  %v6582_v8 = vcombine.low %v1764_v54, %v1768_v25  ;;  %v6584_v38 = vcombine.high %v1771_v56, %v1775_v9  ;;  %v1784_v54 = vld [vmem:[%s8064_s2 + $0x338] sm:$0xff]  ;;  %v6602_v25 = vcombine.low %v1771_v56, %v1775_v9  ;;  %v1791_v56 = vld [vmem:[%s8064_s2 + $0x370] sm:$0xff] }
  0xfe   : > { %8446 = vst [vmem:[#allocation113_spill] sm:$0xff] %v6587_v6  ;;  %v1788_v9 = vld [vmem:[%s8064_s2 + $0x358] sm:$0xff] }
  0xff   : > { %8444 = vst [vmem:[#allocation111_spill] sm:$0xff] %v6582_v8  ;;  %8445 = vst [vmem:[#allocation112_spill] sm:$0xff] %v6584_v38 }
 0x100   : > { %2567 = vmatpush1.bf16.msra.mxu0 %v6554_v55  ;;  %2608 = vmatpush1.bf16.msra.mxu1 %v6558_v26  ;;  %8447 = vst [vmem:[#allocation114_spill] sm:$0xff] %v6602_v25  ;;  %v6611_v26 = vcombine.high %v1780_v23, %v1784_v54  ;;  %v1787_v55 = vld [vmem:[%s8064_s2 + $0x350] sm:$0xff] }
 0x101   : > { %2568 = vmatprep.subr.bf16.mxu0 %v6560_v39  ;;  %2609 = vmatprep.subr.bf16.mxu1 %v6563_v7  ;;  %v6606_v7 = vcombine.low %v1772_v18, %v1776_v59  ;;  %v6608_v39 = vcombine.high %v1779_v17, %v1783_v29  ;;  %v1792_v18 = vld [vmem:[%s8064_s2 + $0x378] sm:$0xff]  ;;  %v6626_v59 = vcombine.low %v1779_v17, %v1783_v29  ;;  %v1799_v17 = vld [vmem:[%s8064_s2 + $0x3b0] sm:$0xff] }
 0x102   : > { %8450 = vst [vmem:[#allocation117_spill] sm:$0xff] %v6611_v26  ;;  %v1796_v29 = vld [vmem:[%s8064_s2 + $0x398] sm:$0xff] }
 0x103   : > { %8448 = vst [vmem:[#allocation115_spill] sm:$0xff] %v6606_v7  ;;  %8449 = vst [vmem:[#allocation116_spill] sm:$0xff] %v6608_v39 }
 0x104   : > { %2569 = vmatpush1.bf16.msra.mxu0 %v6578_v24  ;;  %2610 = vmatpush1.bf16.msra.mxu1 %v6582_v8  ;;  %8451 = vst [vmem:[#allocation118_spill] sm:$0xff] %v6626_v59  ;;  %v6635_v8 = vcombine.high %v1788_v9, %v1792_v18  ;;  %v1795_v24 = vld [vmem:[%s8064_s2 + $0x390] sm:$0xff] }
 0x105   : > { %2570 = vmatprep.subr.bf16.mxu0 %v6584_v38  ;;  %2611 = vmatprep.subr.bf16.mxu1 %v6587_v6  ;;  %v6630_v6 = vcombine.low %v1780_v23, %v1784_v54  ;;  %v6632_v38 = vcombine.high %v1787_v55, %v1791_v56  ;;  %v1800_v23 = vld [vmem:[%s8064_s2 + $0x3b8] sm:$0xff]  ;;  %v6650_v54 = vcombine.low %v1787_v55, %v1791_v56  ;;  %v1807_v55 = vld [vmem:[%s8064_s2 + $0x3f0] sm:$0xff] }
 0x106   : > { %8454 = vst [vmem:[#allocation121_spill] sm:$0xff] %v6635_v8  ;;  %v1804_v56 = vld [vmem:[%s8064_s2 + $0x3d8] sm:$0xff] }
 0x107   : > { %8452 = vst [vmem:[#allocation119_spill] sm:$0xff] %v6630_v6  ;;  %8453 = vst [vmem:[#allocation120_spill] sm:$0xff] %v6632_v38 }
 0x108   : > { %2571 = vmatpush1.bf16.msra.mxu0 %v6602_v25  ;;  %2612 = vmatpush1.bf16.msra.mxu1 %v6606_v7  ;;  %8455 = vst [vmem:[#allocation122_spill] sm:$0xff] %v6650_v54  ;;  %v6659_v7 = vcombine.high %v1796_v29, %v1800_v23  ;;  %v1803_v25 = vld [vmem:[%s8064_s2 + $0x3d0] sm:$0xff] }
 0x109   : > { %2572 = vmatprep.subr.bf16.mxu0 %v6608_v39  ;;  %2613 = vmatprep.subr.bf16.mxu1 %v6611_v26  ;;  %v6654_v26 = vcombine.low %v1788_v9, %v1792_v18  ;;  %v6656_v39 = vcombine.high %v1795_v24, %v1799_v17  ;;  %v1808_v9 = vld [vmem:[%s8064_s2 + $0x3f8] sm:$0xff]  ;;  %v6674_v18 = vcombine.low %v1795_v24, %v1799_v17 }
 0x10a   : > { %8458 = vst [vmem:[#allocation125_spill] sm:$0xff] %v6659_v7  ;;  %v6690_v24 = vcombine.low %v1804_v56, %v1808_v9 }
 0x10b   : > { %8456 = vst [vmem:[#allocation123_spill] sm:$0xff] %v6654_v26  ;;  %8457 = vst [vmem:[#allocation124_spill] sm:$0xff] %v6656_v39 }
 0x10c   : > { %2573 = vmatpush1.bf16.msra.mxu0 %v6626_v59  ;;  %2614 = vmatpush1.bf16.msra.mxu1 %v6630_v6  ;;  %8459 = vst [vmem:[#allocation126_spill] sm:$0xff] %v6674_v18  ;;  %v6683_v6 = vcombine.high %v1804_v56, %v1808_v9  ;;  %v6686_v59 = vcombine.low %v1803_v25, %v1807_v55  ;;  %8464 = vst [vmem:[#allocation131_spill] sm:$0xff] %v6690_v24 }
 0x10d   : > { %2574 = vmatprep.subr.bf16.mxu0 %v6632_v38  ;;  %2615 = vmatprep.subr.bf16.mxu1 %v6635_v8  ;;  %v6678_v8 = vcombine.low %v1796_v29, %v1800_v23  ;;  %v6680_v38 = vcombine.high %v1803_v25, %v1807_v55  ;;  %v605_v25 = vlaneseq  ;;  %v6720_v29 = vld [vmem:[%s8065_s3] sm:$0xff] }
 0x10e   : > { %8462 = vst [vmem:[#allocation129_spill] sm:$0xff] %v6683_v6  ;;  %8463 = vst [vmem:[#allocation130_spill] sm:$0xff] %v6686_v59 }
 0x10f   : > { %8460 = vst [vmem:[#allocation127_spill] sm:$0xff] %v6678_v8  ;;  %8461 = vst [vmem:[#allocation128_spill] sm:$0xff] %v6680_v38 }
 0x110   : > { %2575 = vmatpush1.bf16.msra.mxu0 %v6650_v54  ;;  %2616 = vmatpush1.bf16.msra.mxu1 %v6654_v26 }
 0x111   : > { %2576 = vmatprep.subr.bf16.mxu0 %v6656_v39  ;;  %2617 = vmatprep.subr.bf16.mxu1 %v6659_v7 }
 0x114   : > { %2577 = vmatpush1.bf16.msra.mxu0 %v6674_v18  ;;  %2618 = vmatpush1.bf16.msra.mxu1 %v6678_v8 }
 0x115   : > { %2578 = vmatprep.subr.bf16.mxu0 %v6680_v38  ;;  %2619 = vmatprep.subr.bf16.mxu1 %v6683_v6 }
 0x118   : > { %2579 = vmatpush1.bf16.msra.mxu0 %v6686_v59  ;;  %2620 = vmatpush1.bf16.msra.mxu1 %v6690_v24 }
 0x119   : > { %2699 = vmatprep.subr.bf16.mxu0 %v5915_v27  ;;  %2740 = vmatprep.subr.bf16.mxu1 %v5917_v28 }
 0x11b   : > { %2581 = vmatmul.mubr.bf16.vlgmr.msra.gmra.mrb[36].mxu0 %v6325_v40  ;;  %2622 = vmatmul.mubr.bf16.vlgmr.msra.gmra.mrb[36].mxu1 %v6325_v40  ;;  %v6708_v40 = vshrl.u32 %v605_v25, 7 }
 0x11c   : > { %2700 = vmatpush1.bf16.msra.mxu0 %v5931_v32  ;;  %2741 = vmatpush1.bf16.msra.mxu1 %v5934_v33 }
 0x11d   : > { %2701 = vmatprep.subr.bf16.mxu0 %v5936_v35  ;;  %2742 = vmatprep.subr.bf16.mxu1 %v5939_v36  ;;  %v607_v17 = vsub.s32 0, %v6708_v40  ;;  %v615_v23 = vsub.s32 2, %v6708_v40  ;;  %v611_v55 = vsub.s32 1, %v6708_v40  ;;  %v619_v9 = vsub.s32 3, %v6708_v40 }
 0x11f   : > { %v6727_v56 = vrot.slane %v6720_v29, %v607_v17  ;;  %v6743_v17 = vrot.slane %v6720_v29, %v611_v55 }
 0x120   : > { %2702 = vmatpush1.bf16.msra.mxu0 %v5956_v42  ;;  %2743 = vmatpush1.bf16.msra.mxu1 %v5960_v43 }
 0x121   : > { %2703 = vmatprep.subr.bf16.mxu0 %v5962_v44  ;;  %2744 = vmatprep.subr.bf16.mxu1 %v5965_v45 }
 0x124   : > { %2704 = vmatpush1.bf16.msra.mxu0 %v5982_v49  ;;  %2745 = vmatpush1.bf16.msra.mxu1 %v5986_v50 }
 0x125   : > { %2705 = vmatprep.subr.bf16.mxu0 %v5988_v51  ;;  %2746 = vmatprep.subr.bf16.mxu1 %v5991_v53 }
 0x128   : > { %2706 = vmatpush1.bf16.msra.mxu0 %v6007_v57  ;;  %2747 = vmatpush1.bf16.msra.mxu1 %v6012_v58 }
 0x129   : > { %2707 = vmatprep.subr.bf16.mxu0 %v6014_v61  ;;  %2748 = vmatprep.subr.bf16.mxu1 %v6017_v62  ;;  %v6735_v61 = vrot.slane %v6720_v29, %v615_v23 }
 0x12c   : > { %2708 = vmatpush1.bf16.msra.mxu0 %v6034_v2  ;;  %2749 = vmatpush1.bf16.msra.mxu1 %v6038_v3 }
 0x12d   : > { %2709 = vmatprep.subr.bf16.mxu0 %v6040_v4  ;;  %2750 = vmatprep.subr.bf16.mxu1 %v6043_v5  ;;  %v6749_v4 = vrot.slane %v6720_v29, %v619_v9 }
 0x12e   : > { %v6732_v25 = vpop.f32.mrb[0].mxu0  ;;  %v6738_v62 = vpop.f32.mrb[0].mxu1 }
 0x12f   : > { %v6740_v58 = vpop.f32.mrb[1].mxu0  ;;  %v6745_v2 = vpop.f32.mrb[1].mxu1 }
 0x130   : > { %v1363_v57 = vpop.f32.mrb[2].mxu0  ;;  %2710 = vmatpush1.bf16.msra.mxu0 %v6059_v10  ;;  %v1436_v3 = vpop.f32.mrb[2].mxu1  ;;  %2751 = vmatpush1.bf16.msra.mxu1 %v6064_v11 }
 0x131   : > { %v6752_v23 = vadd.f32 %v1363_v57, %v6727_v56  ;;  %v1365_v5 = vpop.f32.mrb[3].mxu0  ;;  %2711 = vmatprep.subr.bf16.mxu0 %v6066_v12  ;;  %v6757_v55 = vadd.f32 %v1436_v3, %v6735_v61  ;;  %v1438_v51 = vpop.f32.mrb[3].mxu1  ;;  %2752 = vmatprep.subr.bf16.mxu1 %v6069_v13 }
 0x132   : > { %v6760_v53 = vadd.f32 %v1365_v5, %v6743_v17  ;;  %v6764_v9 = vadd.f32 %v1438_v51, %v6749_v4 }
 0x133   : > { %8465 = vst [vmem:[#allocation132_spill] sm:$0xff] %v6752_v23  ;;  %8466 = vst [vmem:[#allocation133_spill] sm:$0xff] %v6757_v55 }
 0x134   : > { %8467 = vst [vmem:[#allocation134_spill] sm:$0xff] %v6760_v53  ;;  %8468 = vst [vmem:[#allocation135_spill] sm:$0xff] %v6764_v9  ;;  %2712 = vmatpush1.bf16.msra.mxu0 %v6086_v19  ;;  %2753 = vmatpush1.bf16.msra.mxu1 %v6090_v20 }
 0x135   : > { %2713 = vmatprep.subr.bf16.mxu0 %v6092_v21  ;;  %2754 = vmatprep.subr.bf16.mxu1 %v6095_v22 }
 0x136   : > { %v1369_v57 = vpop.f32.mrb[4].mxu0  ;;  %v1442_v5 = vpop.f32.mrb[4].mxu1 }
 0x137   : > { %v6771_v3 = vadd.f32 %v1369_v57, %v6727_v56  ;;  %v1371_v53 = vpop.f32.mrb[5].mxu0  ;;  %v6774_v55 = vadd.f32 %v1442_v5, %v6735_v61  ;;  %v1444_v9 = vpop.f32.mrb[5].mxu1 }
 0x138   : > { %v6777_v51 = vadd.f32 %v1371_v53, %v6743_v17  ;;  %v1373_v23 = vpop.f32.mrb[6].mxu0  ;;  %2714 = vmatpush1.bf16.msra.mxu0 %v6113_v30  ;;  %v6781_v21 = vadd.f32 %v1444_v9, %v6749_v4  ;;  %v1446_v57 = vpop.f32.mrb[6].mxu1  ;;  %2755 = vmatpush1.bf16.msra.mxu1 %v6118_v31 }
 0x139   : > { %8469 = vst [vmem:[#allocation136_spill] sm:$0xff] %v6771_v3  ;;  %8470 = vst [vmem:[#allocation137_spill] sm:$0xff] %v6774_v55  ;;  %v6784_v22 = vadd.f32 %v1373_v23, %v6727_v56  ;;  %v1375_v3 = vpop.f32.mrb[7].mxu0  ;;  %2715 = vmatprep.subr.bf16.mxu0 %v6120_v60  ;;  %v6789_v5 = vadd.f32 %v1446_v57, %v6735_v61  ;;  %2756 = vmatprep.subr.bf16.mxu1 %v6123_v37 }
 0x13a   : > { %8471 = vst [vmem:[#allocation138_spill] sm:$0xff] %v6777_v51  ;;  %8472 = vst [vmem:[#allocation139_spill] sm:$0xff] %v6781_v21  ;;  %v6792_v53 = vadd.f32 %v1375_v3, %v6743_v17  ;;  %v1448_v51 = vpop.f32.mrb[7].mxu1 }
 0x13b   : > { %8473 = vst [vmem:[#allocation140_spill] sm:$0xff] %v6784_v22  ;;  %8474 = vst [vmem:[#allocation141_spill] sm:$0xff] %v6789_v5  ;;  %v6796_v9 = vadd.f32 %v1448_v51, %v6749_v4 }
 0x13c   : > { %8475 = vst [vmem:[#allocation142_spill] sm:$0xff] %v6792_v53  ;;  %2716 = vmatpush1.bf16.msra.mxu0 %v6140_v14  ;;  %2757 = vmatpush1.bf16.msra.mxu1 %v6144_v46 }
 0x13d   : > { %8476 = vst [vmem:[#allocation143_spill] sm:$0xff] %v6796_v9  ;;  %2717 = vmatprep.subr.bf16.mxu0 %v6146_v47  ;;  %2758 = vmatprep.subr.bf16.mxu1 %v6149_v48 }
 0x13e   : > { %v1379_v23 = vpop.f32.mrb[8].mxu0  ;;  %v1452_v3 = vpop.f32.mrb[8].mxu1 }
 0x13f   : > { %v6803_v57 = vadd.f32 %v1379_v23, %v6727_v56  ;;  %v1381_v53 = vpop.f32.mrb[9].mxu0  ;;  %v6806_v5 = vadd.f32 %v1452_v3, %v6735_v61  ;;  %v1454_v9 = vpop.f32.mrb[9].mxu1 }
 0x140   : > { %v6809_v51 = vadd.f32 %v1381_v53, %v6743_v17  ;;  %v1383_v22 = vpop.f32.mrb[10].mxu0  ;;  %2718 = vmatpush1.bf16.msra.mxu0 %v6164_v63  ;;  %v6813_v21 = vadd.f32 %v1454_v9, %v6749_v4  ;;  %v1456_v23 = vpop.f32.mrb[10].mxu1  ;;  %2759 = vmatpush1.bf16.msra.mxu1 %v6168_v34 }
 0x141   : > { %8477 = vst [vmem:[#allocation144_spill] sm:$0xff] %v6803_v57  ;;  %8478 = vst [vmem:[#allocation145_spill] sm:$0xff] %v6806_v5  ;;  %v6816_v55 = vadd.f32 %v1383_v22, %v6727_v56  ;;  %v1385_v57 = vpop.f32.mrb[11].mxu0  ;;  %2719 = vmatprep.subr.bf16.mxu0 %v6170_v0  ;;  %v6821_v3 = vadd.f32 %v1456_v23, %v6735_v61  ;;  %2760 = vmatprep.subr.bf16.mxu1 %v6173_v1  ;;  %v8489_v5 = vld [vmem:[#allocation51_spill] sm:$0xff] }
 0x142   : > { %8479 = vst [vmem:[#allocation146_spill] sm:$0xff] %v6809_v51  ;;  %8480 = vst [vmem:[#allocation147_spill] sm:$0xff] %v6813_v21  ;;  %v6824_v53 = vadd.f32 %v1385_v57, %v6743_v17  ;;  %v1458_v51 = vpop.f32.mrb[11].mxu1 }
 0x143   : > { %8481 = vst [vmem:[#allocation148_spill] sm:$0xff] %v6816_v55  ;;  %8482 = vst [vmem:[#allocation149_spill] sm:$0xff] %v6821_v3  ;;  %v6828_v9 = vadd.f32 %v1458_v51, %v6749_v4  ;;  %v8485_v55 = vld [vmem:[#allocation50_spill] sm:$0xff] }
 0x144   : > { %8483 = vst [vmem:[#allocation150_spill] sm:$0xff] %v6824_v53  ;;  %2720 = vmatpush1.bf16.msra.mxu0 %v6188_v15  ;;  %2761 = vmatpush1.bf16.msra.mxu1 %v6192_v52  ;;  %v8492_v52 = vld [vmem:[#allocation52_spill] sm:$0xff]  ;;  %v8493_v15 = vld [vmem:[#allocation53_spill] sm:$0xff] }
 0x145   : > { %8484 = vst [vmem:[#allocation151_spill] sm:$0xff] %v6828_v9  ;;  %2721 = vmatprep.subr.bf16.mxu0 %v6194_v16  ;;  %2762 = vmatprep.subr.bf16.mxu1 %v8485_v55 }
 0x146   : > { %v1389_v22 = vpop.f32.mrb[12].mxu0  ;;  %v1462_v57 = vpop.f32.mrb[12].mxu1 }
 0x147   : > { %v6835_v23 = vadd.f32 %v1389_v22, %v6727_v56  ;;  %v1391_v53 = vpop.f32.mrb[13].mxu0  ;;  %v6838_v3 = vadd.f32 %v1462_v57, %v6735_v61  ;;  %v1464_v9 = vpop.f32.mrb[13].mxu1 }
 0x148   : > { %v6841_v51 = vadd.f32 %v1391_v53, %v6743_v17  ;;  %v1393_v21 = vpop.f32.mrb[14].mxu0  ;;  %2722 = vmatpush1.bf16.msra.mxu0 %v8489_v5  ;;  %v6845_v16 = vadd.f32 %v1464_v9, %v6749_v4  ;;  %v1466_v22 = vpop.f32.mrb[14].mxu1  ;;  %2763 = vmatpush1.bf16.msra.mxu1 %v8492_v52  ;;  %v8501_v52 = vld [vmem:[#allocation58_spill] sm:$0xff] }
 0x149   : > { %8486 = vst [vmem:[#allocation152_spill] sm:$0xff] %v6835_v23  ;;  %8487 = vst [vmem:[#allocation153_spill] sm:$0xff] %v6838_v3  ;;  %v6848_v55 = vadd.f32 %v1393_v21, %v6727_v56  ;;  %v1395_v23 = vpop.f32.mrb[15].mxu0  ;;  %2723 = vmatprep.subr.bf16.mxu0 %v8493_v15  ;;  %v6853_v57 = vadd.f32 %v1466_v22, %v6735_v61  ;;  %v8496_v3 = vld [vmem:[#allocation54_spill] sm:$0xff]  ;;  %v8498_v21 = vld [vmem:[#allocation55_spill] sm:$0xff] }
 0x14a   : > { %8488 = vst [vmem:[#allocation154_spill] sm:$0xff] %v6841_v51  ;;  %8490 = vst [vmem:[#allocation155_spill] sm:$0xff] %v6845_v16  ;;  %v6856_v53 = vadd.f32 %v1395_v23, %v6743_v17  ;;  %v1468_v51 = vpop.f32.mrb[15].mxu1  ;;  %2764 = vmatprep.subr.bf16.mxu1 %v8496_v3  ;;  %v8500_v16 = vld [vmem:[#allocation57_spill] sm:$0xff]  ;;  %v8502_v15 = vld [vmem:[#allocation59_spill] sm:$0xff] }
 0x14b   : > { %8491 = vst [vmem:[#allocation156_spill] sm:$0xff] %v6848_v55  ;;  %8494 = vst [vmem:[#allocation157_spill] sm:$0xff] %v6853_v57  ;;  %v6860_v9 = vadd.f32 %v1468_v51, %v6749_v4  ;;  %v8499_v55 = vld [vmem:[#allocation56_spill] sm:$0xff]  ;;  %v8504_v23 = vld [vmem:[#allocation61_spill] sm:$0xff] }
 0x14c   : > { %8495 = vst [vmem:[#allocation158_spill] sm:$0xff] %v6856_v53  ;;  %2724 = vmatpush1.bf16.msra.mxu0 %v8498_v21  ;;  %2765 = vmatpush1.bf16.msra.mxu1 %v8499_v55  ;;  %v8503_v22 = vld [vmem:[#allocation60_spill] sm:$0xff]  ;;  %v8505_v53 = vld [vmem:[#allocation62_spill] sm:$0xff]  ;;  %v8506_v57 = vld [vmem:[#allocation63_spill] sm:$0xff] }
 0x14d   : > { %8497 = vst [vmem:[#allocation159_spill] sm:$0xff] %v6860_v9  ;;  %2725 = vmatprep.subr.bf16.mxu0 %v8500_v16  ;;  %2766 = vmatprep.subr.bf16.mxu1 %v8501_v52  ;;  %v8507_v51 = vld [vmem:[#allocation64_spill] sm:$0xff]  ;;  %v8508_v9 = vld [vmem:[#allocation65_spill] sm:$0xff]  ;;  %v8509_v21 = vld [vmem:[#allocation66_spill] sm:$0xff] }
 0x14e   : > { %v8510_v55 = vld [vmem:[#allocation67_spill] sm:$0xff]  ;;  %v8511_v16 = vld [vmem:[#allocation68_spill] sm:$0xff]  ;;  %v8512_v52 = vld [vmem:[#allocation69_spill] sm:$0xff] }
 0x150   : > { %2726 = vmatpush1.bf16.msra.mxu0 %v8502_v15  ;;  %2767 = vmatpush1.bf16.msra.mxu1 %v8503_v22  ;;  %v8513_v15 = vld [vmem:[#allocation70_spill] sm:$0xff] }
 0x151   : > { %2727 = vmatprep.subr.bf16.mxu0 %v8504_v23  ;;  %2768 = vmatprep.subr.bf16.mxu1 %v8505_v53  ;;  %v623_v23 = vsub.s32 4, %v6708_v40  ;;  %v631_v53 = vsub.s32 6, %v6708_v40 }
 0x154   : > { %2728 = vmatpush1.bf16.msra.mxu0 %v8506_v57  ;;  %2769 = vmatpush1.bf16.msra.mxu1 %v8507_v51  ;;  %v627_v57 = vsub.s32 5, %v6708_v40  ;;  %v6882_v51 = vrot.slane %v6720_v29, %v623_v23 }
 0x155   : > { %2729 = vmatprep.subr.bf16.mxu0 %v8508_v9  ;;  %2770 = vmatprep.subr.bf16.mxu1 %v8509_v21  ;;  %v635_v9 = vsub.s32 7, %v6708_v40 }
 0x157   : > { %v6900_v23 = vrot.slane %v6720_v29, %v635_v9 }
 0x158   : > { %2730 = vmatpush1.bf16.msra.mxu0 %v8510_v55  ;;  %2771 = vmatpush1.bf16.msra.mxu1 %v8511_v16  ;;  %v6888_v55 = vrot.slane %v6720_v29, %v631_v53 }
 0x159   : > { %2781 = vmatprep.subr.bf16.mxu0 %v8512_v52  ;;  %2822 = vmatprep.subr.bf16.mxu1 %v8513_v15  ;;  %v6895_v15 = vrot.slane %v6720_v29, %v627_v57 }
 0x16e   : > { %v6885_v21 = vpop.f32.mrb[16].mxu0  ;;  %v6890_v16 = vpop.f32.mrb[16].mxu1 }
 0x16f   : > { %v6892_v52 = vpop.f32.mrb[17].mxu0  ;;  %v6897_v22 = vpop.f32.mrb[17].mxu1 }
 0x170   : > { %v1509_v3 = vpop.f32.mrb[18].mxu0  ;;  %v1582_v5 = vpop.f32.mrb[18].mxu1 }
 0x171   : > { %v6903_v40 = vadd.f32 %v1509_v3, %v6882_v51  ;;  %v1511_v1 = vpop.f32.mrb[19].mxu0  ;;  %v6906_v53 = vadd.f32 %v1582_v5, %v6888_v55  ;;  %v1584_v34 = vpop.f32.mrb[19].mxu1 }
 0x172   : > { %v6909_v0 = vadd.f32 %v1511_v1, %v6895_v15  ;;  %v6912_v57 = vadd.f32 %v1584_v34, %v6900_v23 }
 0x173   : > { %8514 = vst [vmem:[#allocation160_spill] sm:$0xff] %v6903_v40  ;;  %8515 = vst [vmem:[#allocation161_spill] sm:$0xff] %v6906_v53 }
 0x174   : > { %8516 = vst [vmem:[#allocation162_spill] sm:$0xff] %v6909_v0  ;;  %8517 = vst [vmem:[#allocation163_spill] sm:$0xff] %v6912_v57 }
 0x176   : > { %v1515_v63 = vpop.f32.mrb[20].mxu0  ;;  %v1588_v29 = vpop.f32.mrb[20].mxu1 }
 0x177   : > { %v6915_v48 = vadd.f32 %v1515_v63, %v6882_v51  ;;  %v1517_v9 = vpop.f32.mrb[21].mxu0  ;;  %v6918_v3 = vadd.f32 %v1588_v29, %v6888_v55  ;;  %v1590_v5 = vpop.f32.mrb[21].mxu1 }
 0x178   : > { %v6921_v40 = vadd.f32 %v1517_v9, %v6895_v15  ;;  %v1519_v53 = vpop.f32.mrb[22].mxu0  ;;  %v6924_v1 = vadd.f32 %v1590_v5, %v6900_v23  ;;  %v1592_v57 = vpop.f32.mrb[22].mxu1 }
 0x179   : > { %8518 = vst [vmem:[#allocation164_spill] sm:$0xff] %v6915_v48  ;;  %8519 = vst [vmem:[#allocation165_spill] sm:$0xff] %v6918_v3  ;;  %v6927_v34 = vadd.f32 %v1519_v53, %v6882_v51  ;;  %v1521_v0 = vpop.f32.mrb[23].mxu0  ;;  %v6930_v63 = vadd.f32 %v1592_v57, %v6888_v55  ;;  %v1594_v29 = vpop.f32.mrb[23].mxu1 }
 0x17a   : > { %8520 = vst [vmem:[#allocation166_spill] sm:$0xff] %v6921_v40  ;;  %8521 = vst [vmem:[#allocation167_spill] sm:$0xff] %v6924_v1  ;;  %v6933_v48 = vadd.f32 %v1521_v0, %v6895_v15  ;;  %v6936_v9 = vadd.f32 %v1594_v29, %v6900_v23 }
 0x17b   : > { %8522 = vst [vmem:[#allocation168_spill] sm:$0xff] %v6927_v34  ;;  %8523 = vst [vmem:[#allocation169_spill] sm:$0xff] %v6930_v63 }
 0x17c   : > { %8524 = vst [vmem:[#allocation170_spill] sm:$0xff] %v6933_v48  ;;  %8525 = vst [vmem:[#allocation171_spill] sm:$0xff] %v6936_v9 }
 0x17e   : > { %v1525_v40 = vpop.f32.mrb[24].mxu0  ;;  %v1598_v5 = vpop.f32.mrb[24].mxu1 }
 0x17f   : > { %v6939_v3 = vadd.f32 %v1525_v40, %v6882_v51  ;;  %v1527_v1 = vpop.f32.mrb[25].mxu0  ;;  %v6942_v53 = vadd.f32 %v1598_v5, %v6888_v55  ;;  %v1600_v57 = vpop.f32.mrb[25].mxu1 }
 0x180   : > { %v6945_v34 = vadd.f32 %v1527_v1, %v6895_v15  ;;  %v1529_v63 = vpop.f32.mrb[26].mxu0  ;;  %v6948_v0 = vadd.f32 %v1600_v57, %v6900_v23  ;;  %v1602_v9 = vpop.f32.mrb[26].mxu1 }
 0x181   : > { %8526 = vst [vmem:[#allocation172_spill] sm:$0xff] %v6939_v3  ;;  %8527 = vst [vmem:[#allocation173_spill] sm:$0xff] %v6942_v53  ;;  %v6951_v29 = vadd.f32 %v1529_v63, %v6882_v51  ;;  %v1531_v48 = vpop.f32.mrb[27].mxu0  ;;  %v6954_v40 = vadd.f32 %v1602_v9, %v6888_v55  ;;  %v1604_v5 = vpop.f32.mrb[27].mxu1 }
 0x182   : > { %8528 = vst [vmem:[#allocation174_spill] sm:$0xff] %v6945_v34  ;;  %8529 = vst [vmem:[#allocation175_spill] sm:$0xff] %v6948_v0  ;;  %v6957_v3 = vadd.f32 %v1531_v48, %v6895_v15  ;;  %v6960_v1 = vadd.f32 %v1604_v5, %v6900_v23 }
 0x183   : > { %8530 = vst [vmem:[#allocation176_spill] sm:$0xff] %v6951_v29  ;;  %8531 = vst [vmem:[#allocation177_spill] sm:$0xff] %v6954_v40 }
 0x184   : > { %8532 = vst [vmem:[#allocation178_spill] sm:$0xff] %v6957_v3  ;;  %8533 = vst [vmem:[#allocation179_spill] sm:$0xff] %v6960_v1 }
 0x186   : > { %v1535_v34 = vpop.f32.mrb[28].mxu0  ;;  %v1608_v57 = vpop.f32.mrb[28].mxu1 }
 0x187   : > { %v6963_v53 = vadd.f32 %v1535_v34, %v6882_v51  ;;  %v1537_v0 = vpop.f32.mrb[29].mxu0  ;;  %v6966_v63 = vadd.f32 %v1608_v57, %v6888_v55  ;;  %v1610_v9 = vpop.f32.mrb[29].mxu1 }
 0x188   : > { %v6969_v29 = vadd.f32 %v1537_v0, %v6895_v15  ;;  %v1539_v40 = vpop.f32.mrb[30].mxu0  ;;  %v6972_v48 = vadd.f32 %v1610_v9, %v6900_v23  ;;  %v1612_v1 = vpop.f32.mrb[30].mxu1  ;;  %v1433_v9 = vadd.f32 %v6738_v62, %v6735_v61 }
 0x189   : > { %8534 = vst [vmem:[#allocation180_spill] sm:$0xff] %v6963_v53  ;;  %8535 = vst [vmem:[#allocation181_spill] sm:$0xff] %v6966_v63  ;;  %v6975_v5 = vadd.f32 %v1539_v40, %v6882_v51  ;;  %v1541_v3 = vpop.f32.mrb[31].mxu0  ;;  %v6978_v34 = vadd.f32 %v1612_v1, %v6888_v55  ;;  %v1614_v57 = vpop.f32.mrb[31].mxu1  ;;  %v1362_v40 = vadd.f32 %v6740_v58, %v6743_v17 }
 0x18a   : > { %8536 = vst [vmem:[#allocation182_spill] sm:$0xff] %v6969_v29  ;;  %8537 = vst [vmem:[#allocation183_spill] sm:$0xff] %v6972_v48  ;;  %v6981_v53 = vadd.f32 %v1541_v3, %v6895_v15  ;;  %v6984_v0 = vadd.f32 %v1614_v57, %v6900_v23  ;;  %v1360_v29 = vadd.f32 %v6732_v25, %v6727_v56 }
 0x18b   : > { %8538 = vst [vmem:[#allocation184_spill] sm:$0xff] %v6975_v5  ;;  %8539 = vst [vmem:[#allocation185_spill] sm:$0xff] %v6978_v34  ;;  %v1435_v1 = vadd.f32 %v6745_v2, %v6749_v4 }
 0x18c   : > { %8540 = vst [vmem:[#allocation186_spill] sm:$0xff] %v6981_v53  ;;  %8541 = vst [vmem:[#allocation187_spill] sm:$0xff] %v6984_v0 }
 0x1ae   : > { %v2500_v5 = vpop.f32.mrb[32].mxu0  ;;  %v2541_v3 = vpop.f32.mrb[32].mxu1 }
 0x1af   : > { %v2630_v34 = vadd.f32 %v2500_v5, %v1360_v29  ;;  %v2502_v53 = vpop.f32.mrb[33].mxu0  ;;  %v2632_v48 = vadd.f32 %v2541_v3, %v1433_v9  ;;  %v2543_v57 = vpop.f32.mrb[33].mxu1 }
 0x1b0   : > { %v2631_v63 = vadd.f32 %v2502_v53, %v1362_v40  ;;  %v2504_v0 = vpop.f32.mrb[34].mxu0  ;;  %v2633_v47 = vadd.f32 %v2543_v57, %v1435_v1  ;;  %v2545_v46 = vpop.f32.mrb[34].mxu1 }
 0x1b1   : > { %v2505_v56 = vpop.f32.mrb[35].mxu0  ;;  %v2546_v25 = vpop.f32.mrb[35].mxu1  ;;  %v4952_v14 = vmul.f32 -1.442695, %v2630_v34  ;;  %v4954_v61 = vmul.f32 -1.442695, %v2632_v48  ;;  %v1506_v46 = vadd.f32 %v6885_v21, %v6882_v51  ;;  %v1579_v48 = vadd.f32 %v6890_v16, %v6888_v55 }
 0x1b2   : > { %v4953_v62 = vmul.f32 -1.442695, %v2631_v63  ;;  %v4955_v37 = vmul.f32 -1.442695, %v2633_v47  ;;  %v1811_v25 = vld [vmem:[#allocation3] sm:$0xff] }
 0x1b3   : > { %5083 = vpow2.f32 %v4952_v14  ;;  %v1508_v14 = vadd.f32 %v6892_v52, %v6895_v15 }
 0x1b4   : > { %5085 = vpow2.f32 %v4954_v61 }
 0x1b5   : > { %5087 = vpow2.f32 %v4953_v62 }
 0x1b6   : > { %5089 = vpow2.f32 %v4955_v37  ;;  %v1581_v37 = vadd.f32 %v6897_v22, %v6900_v23 }
 0x1bd   : > { %v5084_v58 = vpop.eup %5083 }
 0x1be   : > { %v5086_v2 = vpop.eup %5085  ;;  %v2656_v29 = vadd.f32 1.0, %v5084_v58 }
 0x1bf   : > { %v5088_v4 = vpop.eup %5087  ;;  %v2658_v53 = vadd.f32 1.0, %v5086_v2 }
 0x1c0   : > { %v5090_v17 = vpop.eup %5089  ;;  %v2657_v5 = vadd.f32 1.0, %v5088_v4  ;;  %5091 = vrcp.f32 %v2656_v29  ;;  %v1812_v4 = vld [vmem:[#allocation3 + $0x8] sm:$0xff] }
 0x1c1   : > { %v2659_v0 = vadd.f32 1.0, %v5090_v17  ;;  %5093 = vrcp.f32 %v2658_v53 }
 0x1c2   : > { %5095 = vrcp.f32 %v2657_v5 }
 0x1c3   : > { %5097 = vrcp.f32 %v2659_v0 }
 0x1ca   : > { %v5092_v22 = vpop.eup %5091 }
 0x1cb   : > { %v5094_v23 = vpop.eup %5093 }
 0x1cc   : > { %v5096_v56 = vpop.eup %5095  ;;  %v2676_v2 = vmul.f32 %v5094_v23, %v1811_v25  ;;  %v8549_v23 = vld [vmem:[#allocation78_spill] sm:$0xff]  ;;  %v8551_v25 = vld [vmem:[#allocation80_spill] sm:$0xff] }
 0x1cd   : > { %v5098_v61 = vpop.eup %5097 }
 0x1ee   : > { %v2582_v47 = vpop.f32.mrb[36].mxu0  ;;  %v2623_v34 = vpop.f32.mrb[36].mxu1 }
 0x1ef   : > { %v2634_v63 = vadd.f32 %v2582_v47, %v1506_v46  ;;  %v2584_v9 = vpop.f32.mrb[37].mxu0  ;;  %v2636_v40 = vadd.f32 %v2623_v34, %v1579_v48  ;;  %v2625_v21 = vpop.f32.mrb[37].mxu1  ;;  %v2677_v48 = vmul.f32 %v5098_v61, %v1812_v4  ;;  %v8552_v61 = vld [vmem:[#allocation81_spill] sm:$0xff] }
 0x1f0   : > { %v2635_v1 = vadd.f32 %v2584_v9, %v1508_v14  ;;  %v2586_v51 = vpop.f32.mrb[38].mxu0  ;;  %v2637_v16 = vadd.f32 %v2625_v21, %v1581_v37  ;;  %v2627_v55 = vpop.f32.mrb[38].mxu1  ;;  %v8556_v4 = vld [vmem:[#allocation85_spill] sm:$0xff] }
 0x1f1   : > { %v4956_v3 = vmul.f32 -1.442695, %v2634_v63  ;;  %v2587_v57 = vpop.f32.mrb[39].mxu0  ;;  %5099 = vtanh.f32 %v2636_v40  ;;  %v2628_v52 = vpop.f32.mrb[39].mxu1  ;;  %v8544_v55 = vld [vmem:[#allocation73_spill] sm:$0xff] }
 0x1f2   : > { %v4957_v15 = vmul.f32 -1.442695, %v2635_v1  ;;  %v8545_v57 = vld [vmem:[#allocation74_spill] sm:$0xff]  ;;  %v8547_v52 = vld [vmem:[#allocation76_spill] sm:$0xff] }
 0x1f3   : > { %5101 = vpow2.f32 %v4956_v3  ;;  %v8542_v3 = vld [vmem:[#allocation71_spill] sm:$0xff] }
 0x1f4   : > { %5103 = vpow2.f32 %v4957_v15  ;;  %v8546_v15 = vld [vmem:[#allocation75_spill] sm:$0xff] }
 0x1f5   : > { %5105 = vtanh.f32 %v2637_v16  ;;  %v8543_v16 = vld [vmem:[#allocation72_spill] sm:$0xff] }
 0x1fb   : > { %v5100_v62 = vpop.eup %5099 }
 0x1fc   : > { %v2678_v17 = vmul.f32 %v5100_v62, %v5092_v22  ;;  %v8548_v22 = vld [vmem:[#allocation77_spill] sm:$0xff]  ;;  %v8553_v62 = vld [vmem:[#allocation82_spill] sm:$0xff] }
 0x1fd   : > { %v5102_v58 = vpop.eup %5101 }
 0x1fe   : > { %v5104_v29 = vpop.eup %5103  ;;  %v2660_v53 = vadd.f32 1.0, %v5102_v58  ;;  %v7002_v46 = vadd.f32 %v2678_v17, %v2676_v2  ;;  %v8554_v58 = vld [vmem:[#allocation83_spill] sm:$0xff]  ;;  %v8555_v2 = vld [vmem:[#allocation84_spill] sm:$0xff]  ;;  %v8557_v17 = vld [vmem:[#allocation86_spill] sm:$0xff] }
 0x1ff   : > { %v5106_v5 = vpop.eup %5105  ;;  %v2661_v0 = vadd.f32 1.0, %v5104_v29  ;;  %v8558_v29 = vld [vmem:[#allocation87_spill] sm:$0xff] }
 0x200   : > { %5107 = vrcp.f32 %v2660_v53  ;;  %v2679_v14 = vmul.f32 %v5106_v5, %v5096_v56  ;;  %v8550_v56 = vld [vmem:[#allocation79_spill] sm:$0xff]  ;;  %v8559_v53 = vld [vmem:[#allocation88_spill] sm:$0xff]  ;;  %v8560_v5 = vld [vmem:[#allocation89_spill] sm:$0xff] }
 0x201   : > { %5109 = vtanh.f32 %v7002_v46 }
 0x202   : > { %5111 = vrcp.f32 %v2661_v0  ;;  %v7005_v47 = vadd.f32 %v2679_v14, %v2677_v48  ;;  %v8561_v0 = vld [vmem:[#allocation90_spill] sm:$0xff]  ;;  %v8562_v48 = vld [vmem:[#allocation91_spill] sm:$0xff]  ;;  %v8563_v14 = vld [vmem:[#allocation92_spill] sm:$0xff] }
 0x204   : > { %5113 = vtanh.f32 %v7005_v47 }
 0x20a   : > { %v5108_v37 = vpop.eup %5107 }
 0x20b   : > { %v5110_v63 = vpop.eup %5109 }
 0x20c   : > { %v5112_v34 = vpop.eup %5111  ;;  %v2684_v40 = vmul.f32 %v5110_v63, %v5108_v37  ;;  %v8564_v37 = vld [vmem:[#allocation93_spill] sm:$0xff]  ;;  %v8565_v63 = vld [vmem:[#allocation94_spill] sm:$0xff] }
 0x20e   : > { %v5114_v9 = vpop.eup %5113  ;;  %v7008_v51 = vpack.c.bf16 %v2684_v40, %v2684_v40  ;;  %v8568_v40 = vld [vmem:[#allocation97_spill] sm:$0xff] }
 0x20f   : > { %v2685_v1 = vmul.f32 %v5114_v9, %v5112_v34  ;;  %v8566_v34 = vld [vmem:[#allocation95_spill] sm:$0xff]  ;;  %v8567_v9 = vld [vmem:[#allocation96_spill] sm:$0xff] }
 0x211   : > { %v2698_v21 = vpack.c.bf16 %v2685_v1, %v2685_v1  ;;  %v8569_v1 = vld [vmem:[#allocation98_spill] sm:$0xff] }
 0x213   : > { %2731 = vmatprep.mubr.bf16.mxu0 %v2698_v21  ;;  %2772 = vmatprep.mubr.bf16.mxu1 %v2698_v21 }
 0x214   : > { %2732 = vmatmul.mubr.bf16.vlgmr.msra.gmra.mrb[40].mxu0 %v7008_v51  ;;  %2773 = vmatmul.mubr.bf16.vlgmr.msra.gmra.mrb[40].mxu1 %v7008_v51 }
 0x215   : > { %2782 = vmatpush1.bf16.msra.mxu0 %v6334_v41  ;;  %2823 = vmatpush1.bf16.msra.mxu1 %v8542_v3 }
 0x216   : > { %2813 = vmatprep.mubr.bf16.mxu0 %v2698_v21  ;;  %2854 = vmatprep.mubr.bf16.mxu1 %v2698_v21  ;;  %v8570_v21 = vld [vmem:[#allocation99_spill] sm:$0xff] }
 0x217   : > { %2783 = vmatprep.subr.bf16.mxu0 %v8543_v16  ;;  %2824 = vmatprep.subr.bf16.mxu1 %v8544_v55 }
 0x219   : > { %2784 = vmatpush1.bf16.msra.mxu0 %v8545_v57  ;;  %2825 = vmatpush1.bf16.msra.mxu1 %v8546_v15 }
 0x21a   : > { %2785 = vmatprep.subr.bf16.mxu0 %v8547_v52  ;;  %2826 = vmatprep.subr.bf16.mxu1 %v8548_v22 }
 0x21d   : > { %2786 = vmatpush1.bf16.msra.mxu0 %v8549_v23  ;;  %2827 = vmatpush1.bf16.msra.mxu1 %v8550_v56 }
 0x21e   : > { %2787 = vmatprep.subr.bf16.mxu0 %v8551_v25  ;;  %2828 = vmatprep.subr.bf16.mxu1 %v8552_v61 }
 0x221   : > { %2788 = vmatpush1.bf16.msra.mxu0 %v8553_v62  ;;  %2829 = vmatpush1.bf16.msra.mxu1 %v8554_v58 }
 0x222   : > { %2789 = vmatprep.subr.bf16.mxu0 %v8555_v2  ;;  %2830 = vmatprep.subr.bf16.mxu1 %v8556_v4 }
 0x225   : > { %2790 = vmatpush1.bf16.msra.mxu0 %v8557_v17  ;;  %2831 = vmatpush1.bf16.msra.mxu1 %v8558_v29 }
 0x226   : > { %2791 = vmatprep.subr.bf16.mxu0 %v8559_v53  ;;  %2832 = vmatprep.subr.bf16.mxu1 %v8560_v5  ;;  %v8571_v5 = vld [vmem:[#allocation100_spill] sm:$0xff] }
 0x229   : > { %2792 = vmatpush1.bf16.msra.mxu0 %v8561_v0  ;;  %2833 = vmatpush1.bf16.msra.mxu1 %v8562_v48  ;;  %v8572_v0 = vld [vmem:[#allocation101_spill] sm:$0xff]  ;;  %v8573_v48 = vld [vmem:[#allocation102_spill] sm:$0xff] }
 0x22a   : > { %2793 = vmatprep.subr.bf16.mxu0 %v8563_v14  ;;  %2834 = vmatprep.subr.bf16.mxu1 %v8564_v37  ;;  %v8574_v14 = vld [vmem:[#allocation103_spill] sm:$0xff]  ;;  %v8575_v37 = vld [vmem:[#allocation104_spill] sm:$0xff] }
 0x22d   : > { %2794 = vmatpush1.bf16.msra.mxu0 %v8565_v63  ;;  %2835 = vmatpush1.bf16.msra.mxu1 %v8566_v34  ;;  %v8576_v63 = vld [vmem:[#allocation105_spill] sm:$0xff]  ;;  %v8577_v34 = vld [vmem:[#allocation106_spill] sm:$0xff] }
 0x22e   : > { %2795 = vmatprep.subr.bf16.mxu0 %v8567_v9  ;;  %2836 = vmatprep.subr.bf16.mxu1 %v8568_v40  ;;  %v8578_v9 = vld [vmem:[#allocation107_spill] sm:$0xff]  ;;  %v8579_v40 = vld [vmem:[#allocation108_spill] sm:$0xff] }
 0x231   : > { %2796 = vmatpush1.bf16.msra.mxu0 %v8569_v1  ;;  %2837 = vmatpush1.bf16.msra.mxu1 %v8570_v21  ;;  %v8580_v1 = vld [vmem:[#allocation109_spill] sm:$0xff]  ;;  %v8581_v21 = vld [vmem:[#allocation110_spill] sm:$0xff] }
 0x232   : > { %2797 = vmatprep.subr.bf16.mxu0 %v8571_v5  ;;  %2838 = vmatprep.subr.bf16.mxu1 %v8572_v0  ;;  %v8582_v5 = vld [vmem:[#allocation111_spill] sm:$0xff]  ;;  %v8583_v0 = vld [vmem:[#allocation112_spill] sm:$0xff] }
 0x235   : > { %2798 = vmatpush1.bf16.msra.mxu0 %v8573_v48  ;;  %2839 = vmatpush1.bf16.msra.mxu1 %v8574_v14  ;;  %v8584_v48 = vld [vmem:[#allocation113_spill] sm:$0xff]  ;;  %v8585_v14 = vld [vmem:[#allocation114_spill] sm:$0xff] }
 0x236   : > { %2799 = vmatprep.subr.bf16.mxu0 %v8575_v37  ;;  %2840 = vmatprep.subr.bf16.mxu1 %v8576_v63  ;;  %v8586_v37 = vld [vmem:[#allocation115_spill] sm:$0xff]  ;;  %v8587_v63 = vld [vmem:[#allocation116_spill] sm:$0xff] }
 0x239   : > { %2800 = vmatpush1.bf16.msra.mxu0 %v8577_v34  ;;  %2841 = vmatpush1.bf16.msra.mxu1 %v8578_v9  ;;  %v8588_v34 = vld [vmem:[#allocation117_spill] sm:$0xff]  ;;  %v8589_v9 = vld [vmem:[#allocation118_spill] sm:$0xff] }
 0x23a   : > { %2801 = vmatprep.subr.bf16.mxu0 %v8579_v40  ;;  %2842 = vmatprep.subr.bf16.mxu1 %v8580_v1  ;;  %v8590_v40 = vld [vmem:[#allocation119_spill] sm:$0xff]  ;;  %v8591_v1 = vld [vmem:[#allocation120_spill] sm:$0xff] }
 0x23d   : > { %2802 = vmatpush1.bf16.msra.mxu0 %v8581_v21  ;;  %2843 = vmatpush1.bf16.msra.mxu1 %v8582_v5  ;;  %v8592_v21 = vld [vmem:[#allocation121_spill] sm:$0xff] }
 0x23e   : > { %2803 = vmatprep.subr.bf16.mxu0 %v8583_v0  ;;  %2844 = vmatprep.subr.bf16.mxu1 %v8584_v48 }
 0x241   : > { %2804 = vmatpush1.bf16.msra.mxu0 %v8585_v14  ;;  %2845 = vmatpush1.bf16.msra.mxu1 %v8586_v37 }
 0x242   : > { %2805 = vmatprep.subr.bf16.mxu0 %v8587_v63  ;;  %2846 = vmatprep.subr.bf16.mxu1 %v8588_v34 }
 0x245   : > { %2806 = vmatpush1.bf16.msra.mxu0 %v8589_v9  ;;  %2847 = vmatpush1.bf16.msra.mxu1 %v8590_v40 }
 0x246   : > { %2807 = vmatprep.subr.bf16.mxu0 %v8591_v1  ;;  %2848 = vmatprep.subr.bf16.mxu1 %v8592_v21 }
 0x249   : > { %2808 = vmatpush1.bf16.msra.mxu0 %v6650_v54  ;;  %2849 = vmatpush1.bf16.msra.mxu1 %v6654_v26 }
 0x24a   : > { %2809 = vmatprep.subr.bf16.mxu0 %v6656_v39  ;;  %2850 = vmatprep.subr.bf16.mxu1 %v6659_v7 }
 0x24d   : > { %2810 = vmatpush1.bf16.msra.mxu0 %v6674_v18  ;;  %2851 = vmatpush1.bf16.msra.mxu1 %v6678_v8 }
 0x24e   : > { %2811 = vmatprep.subr.bf16.mxu0 %v6680_v38  ;;  %2852 = vmatprep.subr.bf16.mxu1 %v6683_v6 }
 0x251   : > { %2812 = vmatpush1.bf16.msra.mxu0 %v6686_v59  ;;  %2853 = vmatpush1.bf16.msra.mxu1 %v6690_v24 }
 0x252   : > { %2932 = vmatprep.subr.bf16.mxu0 %v5915_v27  ;;  %2973 = vmatprep.subr.bf16.mxu1 %v5917_v28 }
 0x254   : > { %2814 = vmatmul.mubr.bf16.vlgmr.msra.gmra.mrb[44].mxu0 %v7008_v51  ;;  %2855 = vmatmul.mubr.bf16.vlgmr.msra.gmra.mrb[44].mxu1 %v7008_v51  ;;  %v8593_v51 = vld [vmem:[#allocation17_spill] sm:$0xff] }
 0x255   : > { %2933 = vmatpush1.bf16.msra.mxu0 %v5931_v32  ;;  %2974 = vmatpush1.bf16.msra.mxu1 %v5934_v33  ;;  %v8594_v32 = vld [vmem:[#allocation18_spill] sm:$0xff]  ;;  %v8595_v33 = vld [vmem:[#allocation19_spill] sm:$0xff] }
 0x256   : > { %2934 = vmatprep.subr.bf16.mxu0 %v5936_v35  ;;  %2975 = vmatprep.subr.bf16.mxu1 %v5939_v36  ;;  %v8596_v35 = vld [vmem:[#allocation20_spill] sm:$0xff]  ;;  %v8597_v36 = vld [vmem:[#allocation21_spill] sm:$0xff] }
 0x259   : > { %2935 = vmatpush1.bf16.msra.mxu0 %v5956_v42  ;;  %2976 = vmatpush1.bf16.msra.mxu1 %v5960_v43  ;;  %v8598_v42 = vld [vmem:[#allocation22_spill] sm:$0xff]  ;;  %v8599_v43 = vld [vmem:[#allocation23_spill] sm:$0xff] }
 0x25a   : > { %2936 = vmatprep.subr.bf16.mxu0 %v5962_v44  ;;  %2977 = vmatprep.subr.bf16.mxu1 %v5965_v45  ;;  %v8600_v44 = vld [vmem:[#allocation24_spill] sm:$0xff]  ;;  %v8601_v45 = vld [vmem:[#allocation25_spill] sm:$0xff] }
 0x25d   : > { %2937 = vmatpush1.bf16.msra.mxu0 %v5982_v49  ;;  %2978 = vmatpush1.bf16.msra.mxu1 %v5986_v50  ;;  %v8602_v49 = vld [vmem:[#allocation26_spill] sm:$0xff] }
 0x25e   : > { %2938 = vmatprep.subr.bf16.mxu0 %v8593_v51  ;;  %2979 = vmatprep.subr.bf16.mxu1 %v8594_v32 }
 0x261   : > { %2939 = vmatpush1.bf16.msra.mxu0 %v8595_v33  ;;  %2980 = vmatpush1.bf16.msra.mxu1 %v8596_v35  ;;  %v8641_v35 = vld [vmem:[#allocation135_spill] sm:$0xff] }
 0x262   : > { %2940 = vmatprep.subr.bf16.mxu0 %v8597_v36  ;;  %2981 = vmatprep.subr.bf16.mxu1 %v8598_v42  ;;  %v8603_v42 = vld [vmem:[#allocation33_spill] sm:$0xff]  ;;  %v8640_v36 = vld [vmem:[#allocation134_spill] sm:$0xff] }
 0x265   : > { %2941 = vmatpush1.bf16.msra.mxu0 %v8599_v43  ;;  %2982 = vmatpush1.bf16.msra.mxu1 %v8600_v44  ;;  %v8604_v43 = vld [vmem:[#allocation34_spill] sm:$0xff] }
 0x266   : > { %2942 = vmatprep.subr.bf16.mxu0 %v8601_v45  ;;  %2983 = vmatprep.subr.bf16.mxu1 %v8602_v49  ;;  %v8638_v49 = vld [vmem:[#allocation132_spill] sm:$0xff]  ;;  %v8639_v45 = vld [vmem:[#allocation133_spill] sm:$0xff] }
 0x269   : > { %2943 = vmatpush1.bf16.msra.mxu0 %v6059_v10  ;;  %2984 = vmatpush1.bf16.msra.mxu1 %v6064_v11  ;;  %v8605_v10 = vld [vmem:[#allocation38_spill] sm:$0xff]  ;;  %v8606_v11 = vld [vmem:[#allocation39_spill] sm:$0xff] }
 0x26a   : > { %2944 = vmatprep.subr.bf16.mxu0 %v6066_v12  ;;  %2985 = vmatprep.subr.bf16.mxu1 %v6069_v13  ;;  %v8607_v12 = vld [vmem:[#allocation40_spill] sm:$0xff]  ;;  %v8608_v13 = vld [vmem:[#allocation41_spill] sm:$0xff] }
 0x26d   : > { %2945 = vmatpush1.bf16.msra.mxu0 %v6086_v19  ;;  %2986 = vmatpush1.bf16.msra.mxu1 %v6090_v20  ;;  %v8609_v19 = vld [vmem:[#allocation42_spill] sm:$0xff]  ;;  %v8610_v20 = vld [vmem:[#allocation43_spill] sm:$0xff] }
 0x26e   : > { %2946 = vmatprep.subr.bf16.mxu0 %v8603_v42  ;;  %2987 = vmatprep.subr.bf16.mxu1 %v8604_v43  ;;  %v8611_v42 = vld [vmem:[#allocation44_spill] sm:$0xff]  ;;  %v8612_v43 = vld [vmem:[#allocation45_spill] sm:$0xff] }
 0x271   : > { %2947 = vmatpush1.bf16.msra.mxu0 %v6113_v30  ;;  %2988 = vmatpush1.bf16.msra.mxu1 %v6118_v31  ;;  %v8613_v30 = vld [vmem:[#allocation46_spill] sm:$0xff]  ;;  %v8614_v31 = vld [vmem:[#allocation47_spill] sm:$0xff] }
 0x272   : > { %2948 = vmatprep.subr.bf16.mxu0 %v6120_v60  ;;  %2989 = vmatprep.subr.bf16.mxu1 %v8605_v10  ;;  %v8615_v60 = vld [vmem:[#allocation48_spill] sm:$0xff]  ;;  %v8616_v10 = vld [vmem:[#allocation49_spill] sm:$0xff] }
 0x275   : > { %2949 = vmatpush1.bf16.msra.mxu0 %v8606_v11  ;;  %2990 = vmatpush1.bf16.msra.mxu1 %v8607_v12  ;;  %v8617_v11 = vld [vmem:[#allocation50_spill] sm:$0xff]  ;;  %v8618_v12 = vld [vmem:[#allocation51_spill] sm:$0xff] }
 0x276   : > { %2950 = vmatprep.subr.bf16.mxu0 %v8608_v13  ;;  %2991 = vmatprep.subr.bf16.mxu1 %v8609_v19  ;;  %v8619_v13 = vld [vmem:[#allocation52_spill] sm:$0xff]  ;;  %v8620_v19 = vld [vmem:[#allocation53_spill] sm:$0xff] }
 0x279   : > { %2951 = vmatpush1.bf16.msra.mxu0 %v8610_v20  ;;  %2992 = vmatpush1.bf16.msra.mxu1 %v8611_v42  ;;  %v8621_v20 = vld [vmem:[#allocation54_spill] sm:$0xff]  ;;  %v8622_v42 = vld [vmem:[#allocation55_spill] sm:$0xff] }
 0x27a   : > { %2952 = vmatprep.subr.bf16.mxu0 %v8612_v43  ;;  %2993 = vmatprep.subr.bf16.mxu1 %v8613_v30  ;;  %v8623_v43 = vld [vmem:[#allocation56_spill] sm:$0xff]  ;;  %v8624_v30 = vld [vmem:[#allocation57_spill] sm:$0xff] }
 0x27d   : > { %2953 = vmatpush1.bf16.msra.mxu0 %v8614_v31  ;;  %2994 = vmatpush1.bf16.msra.mxu1 %v8615_v60  ;;  %v8625_v31 = vld [vmem:[#allocation58_spill] sm:$0xff]  ;;  %v8626_v60 = vld [vmem:[#allocation59_spill] sm:$0xff] }
 0x27e   : > { %2954 = vmatprep.subr.bf16.mxu0 %v8616_v10  ;;  %2995 = vmatprep.subr.bf16.mxu1 %v8617_v11  ;;  %v8627_v10 = vld [vmem:[#allocation60_spill] sm:$0xff]  ;;  %v8628_v11 = vld [vmem:[#allocation61_spill] sm:$0xff] }
 0x281   : > { %2955 = vmatpush1.bf16.msra.mxu0 %v8618_v12  ;;  %2996 = vmatpush1.bf16.msra.mxu1 %v8619_v13  ;;  %v8629_v12 = vld [vmem:[#allocation62_spill] sm:$0xff]  ;;  %v8630_v13 = vld [vmem:[#allocation63_spill] sm:$0xff] }
 0x282   : > { %2956 = vmatprep.subr.bf16.mxu0 %v8620_v19  ;;  %2997 = vmatprep.subr.bf16.mxu1 %v8621_v20  ;;  %v8631_v19 = vld [vmem:[#allocation64_spill] sm:$0xff]  ;;  %v8632_v20 = vld [vmem:[#allocation65_spill] sm:$0xff] }
 0x285   : > { %2957 = vmatpush1.bf16.msra.mxu0 %v8622_v42  ;;  %2998 = vmatpush1.bf16.msra.mxu1 %v8623_v43  ;;  %v8633_v42 = vld [vmem:[#allocation66_spill] sm:$0xff]  ;;  %v8634_v43 = vld [vmem:[#allocation67_spill] sm:$0xff] }
 0x286   : > { %2958 = vmatprep.subr.bf16.mxu0 %v8624_v30  ;;  %2999 = vmatprep.subr.bf16.mxu1 %v8625_v31  ;;  %v8635_v30 = vld [vmem:[#allocation68_spill] sm:$0xff]  ;;  %v8636_v31 = vld [vmem:[#allocation69_spill] sm:$0xff] }
 0x289   : > { %2959 = vmatpush1.bf16.msra.mxu0 %v8626_v60  ;;  %3000 = vmatpush1.bf16.msra.mxu1 %v8627_v10  ;;  %v8637_v60 = vld [vmem:[#allocation70_spill] sm:$0xff] }
 0x28a   : > { %2960 = vmatprep.subr.bf16.mxu0 %v8628_v11  ;;  %3001 = vmatprep.subr.bf16.mxu1 %v8629_v12 }
 0x28d   : > { %2961 = vmatpush1.bf16.msra.mxu0 %v8630_v13  ;;  %3002 = vmatpush1.bf16.msra.mxu1 %v8631_v19 }
 0x28e   : > { %2962 = vmatprep.subr.bf16.mxu0 %v8632_v20  ;;  %3003 = vmatprep.subr.bf16.mxu1 %v8633_v42 }
 0x291   : > { %2963 = vmatpush1.bf16.msra.mxu0 %v8634_v43  ;;  %3004 = vmatpush1.bf16.msra.mxu1 %v8635_v30 }
 0x292   : > { %3014 = vmatprep.subr.bf16.mxu0 %v8636_v31  ;;  %3055 = vmatprep.subr.bf16.mxu1 %v8637_v60 }
 0x2e7   : > { %v2733_v10 = vpop.f32.mrb[40].mxu0  ;;  %v2774_v11 = vpop.f32.mrb[40].mxu1 }
 0x2e8   : > { %v2863_v12 = vadd.f32 %v2733_v10, %v8638_v49  ;;  %v2865_v13 = vadd.f32 %v2774_v11, %v8639_v45  ;;  %v2735_v44 = vpop.f32.mrb[41].mxu0  ;;  %v2776_v19 = vpop.f32.mrb[41].mxu1 }
 0x2e9   : > { %v2864_v20 = vadd.f32 %v2735_v44, %v8640_v36  ;;  %v2866_v42 = vadd.f32 %v2776_v19, %v8641_v35  ;;  %v2737_v33 = vpop.f32.mrb[42].mxu0  ;;  %v2778_v43 = vpop.f32.mrb[42].mxu1 }
 0x2ea   : > { %v2738_v32 = vpop.f32.mrb[43].mxu0  ;;  %v2779_v30 = vpop.f32.mrb[43].mxu1  ;;  %v4958_v51 = vmul.f32 -1.442695, %v2863_v12  ;;  %v4960_v31 = vmul.f32 -1.442695, %v2865_v13 }
 0x2eb   : > { %v4959_v50 = vmul.f32 -1.442695, %v2864_v20  ;;  %v4961_v60 = vmul.f32 -1.442695, %v2866_v42  ;;  %v8642_v43 = vld [vmem:[#allocation160_spill] sm:$0xff]  ;;  %v8643_v42 = vld [vmem:[#allocation161_spill] sm:$0xff] }
 0x2ec   : > { %5115 = vpow2.f32 %v4958_v51  ;;  %v8644_v20 = vld [vmem:[#allocation162_spill] sm:$0xff] }
 0x2ed   : > { %5117 = vpow2.f32 %v4960_v31  ;;  %v8645_v31 = vld [vmem:[#allocation163_spill] sm:$0xff] }
 0x2ee   : > { %5119 = vpow2.f32 %v4959_v50 }
 0x2ef   : > { %5121 = vpow2.f32 %v4961_v60 }
 0x2f6   : > { %v5116_v49 = vpop.eup %5115 }
 0x2f7   : > { %v5118_v45 = vpop.eup %5117  ;;  %v2889_v28 = vadd.f32 1.0, %v5116_v49 }
 0x2f8   : > { %v5120_v10 = vpop.eup %5119  ;;  %v2891_v36 = vadd.f32 1.0, %v5118_v45 }
 0x2f9   : > { %v5122_v11 = vpop.eup %5121  ;;  %v2890_v44 = vadd.f32 1.0, %v5120_v10  ;;  %5123 = vrcp.f32 %v2889_v28 }
 0x2fa   : > { %v2892_v35 = vadd.f32 1.0, %v5122_v11  ;;  %5125 = vrcp.f32 %v2891_v36 }
 0x2fb   : > { %5127 = vrcp.f32 %v2890_v44 }
 0x2fc   : > { %5129 = vrcp.f32 %v2892_v35 }
 0x303   : > { %v5124_v36 = vpop.eup %5123 }
 0x304   : > { %v5126_v44 = vpop.eup %5125 }
 0x327   : > { %v2815_v32 = vpop.f32.mrb[44].mxu0  ;;  %v2856_v33 = vpop.f32.mrb[44].mxu1 }
 0x328   : > { %v2867_v12 = vadd.f32 %v2815_v32, %v8642_v43  ;;  %v2869_v13 = vadd.f32 %v2856_v33, %v8643_v42  ;;  %v2817_v19 = vpop.f32.mrb[45].mxu0  ;;  %v2858_v50 = vpop.f32.mrb[45].mxu1  ;;  %v2909_v42 = vmul.f32 %v5126_v44, %v7002_v46  ;;  %v8646_v44 = vld [vmem:[#allocation89_spill] sm:$0xff] }
 0x329   : > { %v2868_v30 = vadd.f32 %v2817_v19, %v8644_v20  ;;  %v2870_v60 = vadd.f32 %v2858_v50, %v8645_v31  ;;  %v2819_v51 = vpop.f32.mrb[46].mxu0  ;;  %v2860_v49 = vpop.f32.mrb[46].mxu1 }
 0x32a   : > { %v4962_v45 = vmul.f32 -1.442695, %v2867_v12  ;;  %5131 = vtanh.f32 %v2869_v13  ;;  %v2820_v28 = vpop.f32.mrb[47].mxu0  ;;  %v2861_v10 = vpop.f32.mrb[47].mxu1 }
 0x32b   : > { %v4963_v11 = vmul.f32 -1.442695, %v2868_v30  ;;  %5133 = vtanh.f32 %v2870_v60  ;;  %v5128_v32 = vpop.eup %5127 }
 0x32c   : > { %5135 = vpow2.f32 %v4962_v45  ;;  %v5130_v33 = vpop.eup %5129 }
 0x32d   : > { %5137 = vpow2.f32 %v4963_v11  ;;  %v2910_v20 = vmul.f32 %v5130_v33, %v7005_v47  ;;  %v8648_v33 = vld [vmem:[#allocation91_spill] sm:$0xff] }
 0x334   : > { %v5132_v43 = vpop.eup %5131 }
 0x335   : > { %v5134_v35 = vpop.eup %5133  ;;  %v2911_v19 = vmul.f32 %v5132_v43, %v5124_v36  ;;  %v8649_v43 = vld [vmem:[#allocation92_spill] sm:$0xff] }
 0x336   : > { %v5136_v50 = vpop.eup %5135  ;;  %v2912_v12 = vmul.f32 %v5134_v35, %v5128_v32  ;;  %v8647_v32 = vld [vmem:[#allocation90_spill] sm:$0xff]  ;;  %v8650_v35 = vld [vmem:[#allocation93_spill] sm:$0xff] }
 0x337   : > { %v5138_v13 = vpop.eup %5137  ;;  %v2893_v31 = vadd.f32 1.0, %v5136_v50  ;;  %v7152_v51 = vadd.f32 %v2911_v19, %v2909_v42  ;;  %v8651_v42 = vld [vmem:[#allocation94_spill] sm:$0xff]  ;;  %v8652_v19 = vld [vmem:[#allocation95_spill] sm:$0xff]  ;;  %v8653_v50 = vld [vmem:[#allocation96_spill] sm:$0xff] }
 0x338   : > { %v2894_v30 = vadd.f32 1.0, %v5138_v13  ;;  %v7154_v60 = vadd.f32 %v2912_v12, %v2910_v20  ;;  %v8654_v20 = vld [vmem:[#allocation97_spill] sm:$0xff]  ;;  %v8655_v12 = vld [vmem:[#allocation98_spill] sm:$0xff]  ;;  %v8656_v13 = vld [vmem:[#allocation99_spill] sm:$0xff] }
 0x339   : > { %5139 = vrcp.f32 %v2893_v31  ;;  %v8657_v31 = vld [vmem:[#allocation100_spill] sm:$0xff] }
 0x33a   : > { %5141 = vtanh.f32 %v7152_v51 }
 0x33b   : > { %5143 = vrcp.f32 %v2894_v30  ;;  %v8658_v30 = vld [vmem:[#allocation101_spill] sm:$0xff] }
 0x33c   : > { %5145 = vtanh.f32 %v7154_v60 }
 0x343   : > { %v5140_v49 = vpop.eup %5139 }
 0x344   : > { %v5142_v46 = vpop.eup %5141 }
 0x345   : > { %v5144_v45 = vpop.eup %5143  ;;  %v2917_v10 = vmul.f32 %v5142_v46, %v5140_v49  ;;  %v8659_v49 = vld [vmem:[#allocation102_spill] sm:$0xff]  ;;  %v8660_v46 = vld [vmem:[#allocation103_spill] sm:$0xff] }
 0x346   : > { %v5146_v28 = vpop.eup %5145 }
 0x347   : > { %v2918_v47 = vmul.f32 %v5146_v28, %v5144_v45  ;;  %v7158_v36 = vpack.c.bf16 %v2917_v10, %v2917_v10  ;;  %v8661_v45 = vld [vmem:[#allocation104_spill] sm:$0xff]  ;;  %v8662_v28 = vld [vmem:[#allocation105_spill] sm:$0xff]  ;;  %v8663_v10 = vld [vmem:[#allocation106_spill] sm:$0xff] }
 0x349   : > { %v2931_v11 = vpack.c.bf16 %v2918_v47, %v2918_v47  ;;  %v8664_v47 = vld [vmem:[#allocation107_spill] sm:$0xff] }
 0x34b   : > { %2964 = vmatprep.mubr.bf16.mxu0 %v2931_v11  ;;  %3005 = vmatprep.mubr.bf16.mxu1 %v2931_v11 }
 0x34c   : > { %2965 = vmatmul.mubr.bf16.vlgmr.msra.gmra.mrb[48].mxu0 %v7158_v36  ;;  %3006 = vmatmul.mubr.bf16.vlgmr.msra.gmra.mrb[48].mxu1 %v7158_v36 }
 0x34d   : > { %3015 = vmatpush1.bf16.msra.mxu0 %v6334_v41  ;;  %3056 = vmatpush1.bf16.msra.mxu1 %v8542_v3 }
 0x34e   : > { %3046 = vmatprep.mubr.bf16.mxu0 %v2931_v11  ;;  %3087 = vmatprep.mubr.bf16.mxu1 %v2931_v11  ;;  %v8665_v11 = vld [vmem:[#allocation108_spill] sm:$0xff] }
 0x34f   : > { %3016 = vmatprep.subr.bf16.mxu0 %v8543_v16  ;;  %3057 = vmatprep.subr.bf16.mxu1 %v8544_v55 }
 0x351   : > { %3017 = vmatpush1.bf16.msra.mxu0 %v8545_v57  ;;  %3058 = vmatpush1.bf16.msra.mxu1 %v8546_v15 }
 0x352   : > { %3018 = vmatprep.subr.bf16.mxu0 %v8547_v52  ;;  %3059 = vmatprep.subr.bf16.mxu1 %v8548_v22 }
 0x355   : > { %3019 = vmatpush1.bf16.msra.mxu0 %v8549_v23  ;;  %3060 = vmatpush1.bf16.msra.mxu1 %v8550_v56 }
 0x356   : > { %3020 = vmatprep.subr.bf16.mxu0 %v8551_v25  ;;  %3061 = vmatprep.subr.bf16.mxu1 %v8552_v61 }
 0x359   : > { %3021 = vmatpush1.bf16.msra.mxu0 %v8553_v62  ;;  %3062 = vmatpush1.bf16.msra.mxu1 %v8554_v58 }
 0x35a   : > { %3022 = vmatprep.subr.bf16.mxu0 %v8555_v2  ;;  %3063 = vmatprep.subr.bf16.mxu1 %v8556_v4 }
 0x35d   : > { %3023 = vmatpush1.bf16.msra.mxu0 %v8557_v17  ;;  %3064 = vmatpush1.bf16.msra.mxu1 %v8558_v29 }
 0x35e   : > { %3024 = vmatprep.subr.bf16.mxu0 %v8559_v53  ;;  %3065 = vmatprep.subr.bf16.mxu1 %v8646_v44 }
 0x361   : > { %3025 = vmatpush1.bf16.msra.mxu0 %v8647_v32  ;;  %3066 = vmatpush1.bf16.msra.mxu1 %v8648_v33 }
 0x362   : > { %3026 = vmatprep.subr.bf16.mxu0 %v8649_v43  ;;  %3067 = vmatprep.subr.bf16.mxu1 %v8650_v35 }
 0x365   : > { %3027 = vmatpush1.bf16.msra.mxu0 %v8651_v42  ;;  %3068 = vmatpush1.bf16.msra.mxu1 %v8652_v19 }
 0x366   : > { %3028 = vmatprep.subr.bf16.mxu0 %v8653_v50  ;;  %3069 = vmatprep.subr.bf16.mxu1 %v8654_v20 }
 0x369   : > { %3029 = vmatpush1.bf16.msra.mxu0 %v8655_v12  ;;  %3070 = vmatpush1.bf16.msra.mxu1 %v8656_v13  ;;  %v8666_v12 = vld [vmem:[#allocation109_spill] sm:$0xff]  ;;  %v8667_v13 = vld [vmem:[#allocation110_spill] sm:$0xff] }
 0x36a   : > { %3030 = vmatprep.subr.bf16.mxu0 %v8657_v31  ;;  %3071 = vmatprep.subr.bf16.mxu1 %v8658_v30 }
 0x36d   : > { %3031 = vmatpush1.bf16.msra.mxu0 %v8659_v49  ;;  %3072 = vmatpush1.bf16.msra.mxu1 %v8660_v46 }
 0x36e   : > { %3032 = vmatprep.subr.bf16.mxu0 %v8661_v45  ;;  %3073 = vmatprep.subr.bf16.mxu1 %v8662_v28 }
 0x371   : > { %3033 = vmatpush1.bf16.msra.mxu0 %v8663_v10  ;;  %3074 = vmatpush1.bf16.msra.mxu1 %v8664_v47 }
 0x372   : > { %3034 = vmatprep.subr.bf16.mxu0 %v8665_v11  ;;  %3075 = vmatprep.subr.bf16.mxu1 %v8666_v12 }
 0x375   : > { %3035 = vmatpush1.bf16.msra.mxu0 %v8667_v13  ;;  %3076 = vmatpush1.bf16.msra.mxu1 %v8582_v5 }
 0x376   : > { %3036 = vmatprep.subr.bf16.mxu0 %v8583_v0  ;;  %3077 = vmatprep.subr.bf16.mxu1 %v8584_v48 }
 0x379   : > { %3037 = vmatpush1.bf16.msra.mxu0 %v8585_v14  ;;  %3078 = vmatpush1.bf16.msra.mxu1 %v8586_v37 }
 0x37a   : > { %3038 = vmatprep.subr.bf16.mxu0 %v8587_v63  ;;  %3079 = vmatprep.subr.bf16.mxu1 %v8588_v34 }
 0x37d   : > { %3039 = vmatpush1.bf16.msra.mxu0 %v8589_v9  ;;  %3080 = vmatpush1.bf16.msra.mxu1 %v8590_v40  ;;  %v8735_v40 = vld [vmem:[#allocation138_spill] sm:$0xff]  ;;  %v8736_v9 = vld [vmem:[#allocation139_spill] sm:$0xff] }
 0x37e   : > { %3040 = vmatprep.subr.bf16.mxu0 %v8591_v1  ;;  %3081 = vmatprep.subr.bf16.mxu1 %v8592_v21  ;;  %v8734_v21 = vld [vmem:[#allocation137_spill] sm:$0xff] }
 0x381   : > { %3041 = vmatpush1.bf16.msra.mxu0 %v6650_v54  ;;  %3082 = vmatpush1.bf16.msra.mxu1 %v6654_v26  ;;  %v8668_v54 = vld [vmem:[#allocation6_spill] sm:$0xff]  ;;  %v8733_v26 = vld [vmem:[#allocation136_spill] sm:$0xff] }
 0x382   : > { %3042 = vmatprep.subr.bf16.mxu0 %v6656_v39  ;;  %3083 = vmatprep.subr.bf16.mxu1 %v6659_v7  ;;  %v8669_v7 = vld [vmem:[#allocation7_spill] sm:$0xff]  ;;  %v8678_v39 = vld [vmem:[#allocation16_spill] sm:$0xff] }
 0x385   : > { %3043 = vmatpush1.bf16.msra.mxu0 %v6674_v18  ;;  %3084 = vmatpush1.bf16.msra.mxu1 %v6678_v8  ;;  %v8670_v18 = vld [vmem:[#allocation8_spill] sm:$0xff]  ;;  %v8671_v8 = vld [vmem:[#allocation9_spill] sm:$0xff] }
 0x386   : > { %3044 = vmatprep.subr.bf16.mxu0 %v6680_v38  ;;  %3085 = vmatprep.subr.bf16.mxu1 %v6683_v6  ;;  %v8672_v38 = vld [vmem:[#allocation10_spill] sm:$0xff]  ;;  %v8673_v6 = vld [vmem:[#allocation11_spill] sm:$0xff] }
 0x389   : > { %3045 = vmatpush1.bf16.msra.mxu0 %v6686_v59  ;;  %3086 = vmatpush1.bf16.msra.mxu1 %v6690_v24  ;;  %v8674_v59 = vld [vmem:[#allocation12_spill] sm:$0xff]  ;;  %v8675_v24 = vld [vmem:[#allocation13_spill] sm:$0xff] }
 0x38a   : > { %3165 = vmatprep.subr.bf16.mxu0 %v5915_v27  ;;  %3206 = vmatprep.subr.bf16.mxu1 %v8668_v54  ;;  %v8676_v27 = vld [vmem:[#allocation14_spill] sm:$0xff]  ;;  %v8677_v54 = vld [vmem:[#allocation15_spill] sm:$0xff] }
 0x38c   : > { %3047 = vmatmul.mubr.bf16.vlgmr.msra.gmra.mrb[52].mxu0 %v7158_v36  ;;  %3088 = vmatmul.mubr.bf16.vlgmr.msra.gmra.mrb[52].mxu1 %v7158_v36  ;;  %v8679_v36 = vld [vmem:[#allocation17_spill] sm:$0xff] }
 0x38d   : > { %3166 = vmatpush1.bf16.msra.mxu0 %v8669_v7  ;;  %3207 = vmatpush1.bf16.msra.mxu1 %v8670_v18  ;;  %v8680_v7 = vld [vmem:[#allocation18_spill] sm:$0xff]  ;;  %v8681_v18 = vld [vmem:[#allocation19_spill] sm:$0xff] }
 0x38e   : > { %3167 = vmatprep.subr.bf16.mxu0 %v8671_v8  ;;  %3208 = vmatprep.subr.bf16.mxu1 %v8672_v38  ;;  %v8682_v8 = vld [vmem:[#allocation20_spill] sm:$0xff]  ;;  %v8683_v38 = vld [vmem:[#allocation21_spill] sm:$0xff] }
 0x391   : > { %3168 = vmatpush1.bf16.msra.mxu0 %v8673_v6  ;;  %3209 = vmatpush1.bf16.msra.mxu1 %v8674_v59  ;;  %v8684_v6 = vld [vmem:[#allocation22_spill] sm:$0xff]  ;;  %v8685_v59 = vld [vmem:[#allocation23_spill] sm:$0xff] }
 0x392   : > { %3169 = vmatprep.subr.bf16.mxu0 %v8675_v24  ;;  %3210 = vmatprep.subr.bf16.mxu1 %v8676_v27  ;;  %v8686_v24 = vld [vmem:[#allocation24_spill] sm:$0xff]  ;;  %v8687_v27 = vld [vmem:[#allocation25_spill] sm:$0xff] }
 0x395   : > { %3170 = vmatpush1.bf16.msra.mxu0 %v8677_v54  ;;  %3211 = vmatpush1.bf16.msra.mxu1 %v8678_v39  ;;  %v8688_v54 = vld [vmem:[#allocation26_spill] sm:$0xff]  ;;  %v8689_v39 = vld [vmem:[#allocation27_spill] sm:$0xff] }
 0x396   : > { %3171 = vmatprep.subr.bf16.mxu0 %v8679_v36  ;;  %3212 = vmatprep.subr.bf16.mxu1 %v8680_v7  ;;  %v8690_v36 = vld [vmem:[#allocation28_spill] sm:$0xff]  ;;  %v8691_v7 = vld [vmem:[#allocation29_spill] sm:$0xff] }
 0x399   : > { %3172 = vmatpush1.bf16.msra.mxu0 %v8681_v18  ;;  %3213 = vmatpush1.bf16.msra.mxu1 %v8682_v8  ;;  %v8692_v18 = vld [vmem:[#allocation30_spill] sm:$0xff]  ;;  %v8693_v8 = vld [vmem:[#allocation31_spill] sm:$0xff] }
 0x39a   : > { %3173 = vmatprep.subr.bf16.mxu0 %v8683_v38  ;;  %3214 = vmatprep.subr.bf16.mxu1 %v8684_v6  ;;  %v8694_v38 = vld [vmem:[#allocation32_spill] sm:$0xff]  ;;  %v8695_v6 = vld [vmem:[#allocation33_spill] sm:$0xff] }
 0x39d   : > { %3174 = vmatpush1.bf16.msra.mxu0 %v8685_v59  ;;  %3215 = vmatpush1.bf16.msra.mxu1 %v8686_v24  ;;  %v8696_v59 = vld [vmem:[#allocation34_spill] sm:$0xff]  ;;  %v8697_v24 = vld [vmem:[#allocation35_spill] sm:$0xff] }
 0x39e   : > { %3175 = vmatprep.subr.bf16.mxu0 %v8687_v27  ;;  %3216 = vmatprep.subr.bf16.mxu1 %v8688_v54  ;;  %v8698_v27 = vld [vmem:[#allocation36_spill] sm:$0xff]  ;;  %v8699_v54 = vld [vmem:[#allocation37_spill] sm:$0xff] }
 0x3a1   : > { %3176 = vmatpush1.bf16.msra.mxu0 %v8689_v39  ;;  %3217 = vmatpush1.bf16.msra.mxu1 %v8690_v36  ;;  %v8700_v39 = vld [vmem:[#allocation38_spill] sm:$0xff]  ;;  %v8701_v36 = vld [vmem:[#allocation39_spill] sm:$0xff] }
 0x3a2   : > { %3177 = vmatprep.subr.bf16.mxu0 %v8691_v7  ;;  %3218 = vmatprep.subr.bf16.mxu1 %v8692_v18  ;;  %v8702_v7 = vld [vmem:[#allocation40_spill] sm:$0xff]  ;;  %v8703_v18 = vld [vmem:[#allocation41_spill] sm:$0xff] }
 0x3a5   : > { %3178 = vmatpush1.bf16.msra.mxu0 %v8693_v8  ;;  %3219 = vmatpush1.bf16.msra.mxu1 %v8694_v38  ;;  %v8704_v8 = vld [vmem:[#allocation42_spill] sm:$0xff]  ;;  %v8705_v38 = vld [vmem:[#allocation43_spill] sm:$0xff] }
 0x3a6   : > { %3179 = vmatprep.subr.bf16.mxu0 %v8695_v6  ;;  %3220 = vmatprep.subr.bf16.mxu1 %v8696_v59  ;;  %v8706_v6 = vld [vmem:[#allocation44_spill] sm:$0xff]  ;;  %v8707_v59 = vld [vmem:[#allocation45_spill] sm:$0xff] }
 0x3a9   : > { %3180 = vmatpush1.bf16.msra.mxu0 %v8697_v24  ;;  %3221 = vmatpush1.bf16.msra.mxu1 %v8698_v27  ;;  %v8708_v24 = vld [vmem:[#allocation46_spill] sm:$0xff]  ;;  %v8709_v27 = vld [vmem:[#allocation47_spill] sm:$0xff] }
 0x3aa   : > { %3181 = vmatprep.subr.bf16.mxu0 %v8699_v54  ;;  %3222 = vmatprep.subr.bf16.mxu1 %v8700_v39  ;;  %v8710_v54 = vld [vmem:[#allocation48_spill] sm:$0xff]  ;;  %v8711_v39 = vld [vmem:[#allocation49_spill] sm:$0xff] }
 0x3ad   : > { %3182 = vmatpush1.bf16.msra.mxu0 %v8701_v36  ;;  %3223 = vmatpush1.bf16.msra.mxu1 %v8702_v7  ;;  %v8712_v36 = vld [vmem:[#allocation50_spill] sm:$0xff]  ;;  %v8713_v7 = vld [vmem:[#allocation51_spill] sm:$0xff] }
 0x3ae   : > { %3183 = vmatprep.subr.bf16.mxu0 %v8703_v18  ;;  %3224 = vmatprep.subr.bf16.mxu1 %v8704_v8  ;;  %v8714_v18 = vld [vmem:[#allocation52_spill] sm:$0xff]  ;;  %v8715_v8 = vld [vmem:[#allocation53_spill] sm:$0xff] }
 0x3b1   : > { %3184 = vmatpush1.bf16.msra.mxu0 %v8705_v38  ;;  %3225 = vmatpush1.bf16.msra.mxu1 %v8706_v6  ;;  %v8716_v38 = vld [vmem:[#allocation54_spill] sm:$0xff]  ;;  %v8717_v6 = vld [vmem:[#allocation55_spill] sm:$0xff] }
 0x3b2   : > { %3185 = vmatprep.subr.bf16.mxu0 %v8707_v59  ;;  %3226 = vmatprep.subr.bf16.mxu1 %v8708_v24  ;;  %v8718_v59 = vld [vmem:[#allocation56_spill] sm:$0xff]  ;;  %v8719_v24 = vld [vmem:[#allocation57_spill] sm:$0xff] }
 0x3b5   : > { %3186 = vmatpush1.bf16.msra.mxu0 %v8709_v27  ;;  %3227 = vmatpush1.bf16.msra.mxu1 %v8710_v54  ;;  %v8720_v27 = vld [vmem:[#allocation58_spill] sm:$0xff]  ;;  %v8721_v54 = vld [vmem:[#allocation59_spill] sm:$0xff] }
 0x3b6   : > { %3187 = vmatprep.subr.bf16.mxu0 %v8711_v39  ;;  %3228 = vmatprep.subr.bf16.mxu1 %v8712_v36  ;;  %v8722_v39 = vld [vmem:[#allocation60_spill] sm:$0xff]  ;;  %v8723_v36 = vld [vmem:[#allocation61_spill] sm:$0xff] }
 0x3b9   : > { %3188 = vmatpush1.bf16.msra.mxu0 %v8713_v7  ;;  %3229 = vmatpush1.bf16.msra.mxu1 %v8714_v18  ;;  %v8724_v7 = vld [vmem:[#allocation62_spill] sm:$0xff]  ;;  %v8725_v18 = vld [vmem:[#allocation63_spill] sm:$0xff] }
 0x3ba   : > { %3189 = vmatprep.subr.bf16.mxu0 %v8715_v8  ;;  %3230 = vmatprep.subr.bf16.mxu1 %v8716_v38  ;;  %v8726_v8 = vld [vmem:[#allocation64_spill] sm:$0xff]  ;;  %v8727_v38 = vld [vmem:[#allocation65_spill] sm:$0xff] }
 0x3bd   : > { %3190 = vmatpush1.bf16.msra.mxu0 %v8717_v6  ;;  %3231 = vmatpush1.bf16.msra.mxu1 %v8718_v59  ;;  %v8728_v6 = vld [vmem:[#allocation66_spill] sm:$0xff]  ;;  %v8729_v59 = vld [vmem:[#allocation67_spill] sm:$0xff] }
 0x3be   : > { %3191 = vmatprep.subr.bf16.mxu0 %v8719_v24  ;;  %3232 = vmatprep.subr.bf16.mxu1 %v8720_v27  ;;  %v8730_v24 = vld [vmem:[#allocation68_spill] sm:$0xff]  ;;  %v8731_v27 = vld [vmem:[#allocation69_spill] sm:$0xff] }
 0x3c1   : > { %3192 = vmatpush1.bf16.msra.mxu0 %v8721_v54  ;;  %3233 = vmatpush1.bf16.msra.mxu1 %v8722_v39  ;;  %v8732_v54 = vld [vmem:[#allocation70_spill] sm:$0xff] }
 0x3c2   : > { %3193 = vmatprep.subr.bf16.mxu0 %v8723_v36  ;;  %3234 = vmatprep.subr.bf16.mxu1 %v8724_v7 }
 0x3c5   : > { %3194 = vmatpush1.bf16.msra.mxu0 %v8725_v18  ;;  %3235 = vmatpush1.bf16.msra.mxu1 %v8726_v8 }
 0x3c6   : > { %3195 = vmatprep.subr.bf16.mxu0 %v8727_v38  ;;  %3236 = vmatprep.subr.bf16.mxu1 %v8728_v6 }
 0x3c9   : > { %3196 = vmatpush1.bf16.msra.mxu0 %v8729_v59  ;;  %3237 = vmatpush1.bf16.msra.mxu1 %v8730_v24 }
 0x3ca   : > { %3247 = vmatprep.subr.bf16.mxu0 %v8731_v27  ;;  %3288 = vmatprep.subr.bf16.mxu1 %v8732_v54 }
 0x41f   : > { %v2966_v39 = vpop.f32.mrb[48].mxu0  ;;  %v3007_v36 = vpop.f32.mrb[48].mxu1 }
 0x420   : > { %v3096_v7 = vadd.f32 %v2966_v39, %v8733_v26  ;;  %v3098_v18 = vadd.f32 %v3007_v36, %v8734_v21  ;;  %v2968_v1 = vpop.f32.mrb[49].mxu0  ;;  %v3009_v8 = vpop.f32.mrb[49].mxu1 }
 0x421   : > { %v3097_v38 = vadd.f32 %v2968_v1, %v8735_v40  ;;  %v3099_v6 = vadd.f32 %v3009_v8, %v8736_v9  ;;  %v2970_v34 = vpop.f32.mrb[50].mxu0  ;;  %v3011_v59 = vpop.f32.mrb[50].mxu1 }
 0x422   : > { %v2971_v63 = vpop.f32.mrb[51].mxu0  ;;  %v3012_v24 = vpop.f32.mrb[51].mxu1  ;;  %v4964_v37 = vmul.f32 -1.442695, %v3096_v7  ;;  %v4966_v27 = vmul.f32 -1.442695, %v3098_v18 }
 0x423   : > { %v4965_v14 = vmul.f32 -1.442695, %v3097_v38  ;;  %v4967_v54 = vmul.f32 -1.442695, %v3099_v6  ;;  %v8737_v7 = vld [vmem:[#allocation164_spill] sm:$0xff]  ;;  %v8738_v6 = vld [vmem:[#allocation165_spill] sm:$0xff] }
 0x424   : > { %5147 = vpow2.f32 %v4964_v37  ;;  %v8740_v63 = vld [vmem:[#allocation167_spill] sm:$0xff] }
 0x425   : > { %5149 = vpow2.f32 %v4966_v27 }
 0x426   : > { %5151 = vpow2.f32 %v4965_v14 }
 0x427   : > { %5153 = vpow2.f32 %v4967_v54  ;;  %v8739_v54 = vld [vmem:[#allocation166_spill] sm:$0xff] }
 0x42e   : > { %v5148_v39 = vpop.eup %5147 }
 0x42f   : > { %v5150_v26 = vpop.eup %5149  ;;  %v3122_v48 = vadd.f32 1.0, %v5148_v39 }
 0x430   : > { %v5152_v21 = vpop.eup %5151  ;;  %v3124_v40 = vadd.f32 1.0, %v5150_v26 }
 0x431   : > { %v5154_v36 = vpop.eup %5153  ;;  %v3123_v1 = vadd.f32 1.0, %v5152_v21  ;;  %5155 = vrcp.f32 %v3122_v48 }
 0x432   : > { %v3125_v8 = vadd.f32 1.0, %v5154_v36  ;;  %5157 = vrcp.f32 %v3124_v40 }
 0x433   : > { %5159 = vrcp.f32 %v3123_v1 }
 0x434   : > { %5161 = vrcp.f32 %v3125_v8 }
 0x43b   : > { %v5156_v40 = vpop.eup %5155 }
 0x43c   : > { %v5158_v1 = vpop.eup %5157 }
 0x45f   : > { %v3048_v59 = vpop.f32.mrb[52].mxu0  ;;  %v3089_v24 = vpop.f32.mrb[52].mxu1 }
 0x460   : > { %v3100_v38 = vadd.f32 %v3048_v59, %v8737_v7  ;;  %v3102_v18 = vadd.f32 %v3089_v24, %v8738_v6  ;;  %v3050_v27 = vpop.f32.mrb[53].mxu0  ;;  %v3091_v14 = vpop.f32.mrb[53].mxu1  ;;  %v3142_v6 = vmul.f32 %v5158_v1, %v7152_v51  ;;  %v8741_v1 = vld [vmem:[#allocation98_spill] sm:$0xff] }
 0x461   : > { %v3101_v37 = vadd.f32 %v3050_v27, %v8739_v54  ;;  %v3103_v34 = vadd.f32 %v3091_v14, %v8740_v63  ;;  %v3052_v9 = vpop.f32.mrb[54].mxu0  ;;  %v3093_v39 = vpop.f32.mrb[54].mxu1 }
 0x462   : > { %v4968_v26 = vmul.f32 -1.442695, %v3100_v38  ;;  %5163 = vtanh.f32 %v3102_v18  ;;  %v3053_v48 = vpop.f32.mrb[55].mxu0  ;;  %v3094_v21 = vpop.f32.mrb[55].mxu1 }
 0x463   : > { %v4969_v36 = vmul.f32 -1.442695, %v3101_v37  ;;  %5165 = vtanh.f32 %v3103_v34  ;;  %v5160_v59 = vpop.eup %5159 }
 0x464   : > { %5167 = vpow2.f32 %v4968_v26  ;;  %v5162_v24 = vpop.eup %5161 }
 0x465   : > { %5169 = vpow2.f32 %v4969_v36  ;;  %v3143_v54 = vmul.f32 %v5162_v24, %v7154_v60  ;;  %v8743_v24 = vld [vmem:[#allocation113_spill] sm:$0xff] }
 0x46c   : > { %v5164_v7 = vpop.eup %5163 }
 0x46d   : > { %v5166_v8 = vpop.eup %5165  ;;  %v3144_v27 = vmul.f32 %v5164_v7, %v5156_v40  ;;  %v8744_v7 = vld [vmem:[#allocation114_spill] sm:$0xff] }
 0x46e   : > { %v5168_v14 = vpop.eup %5167  ;;  %v3145_v38 = vmul.f32 %v5166_v8, %v5160_v59  ;;  %v8742_v59 = vld [vmem:[#allocation99_spill] sm:$0xff] }
 0x46f   : > { %v5170_v18 = vpop.eup %5169  ;;  %v3126_v63 = vadd.f32 1.0, %v5168_v14  ;;  %v7302_v9 = vadd.f32 %v3144_v27, %v3142_v6  ;;  %v8745_v8 = vld [vmem:[#allocation115_spill] sm:$0xff]  ;;  %v8746_v6 = vld [vmem:[#allocation116_spill] sm:$0xff]  ;;  %v8747_v27 = vld [vmem:[#allocation117_spill] sm:$0xff] }
 0x470   : > { %v3127_v37 = vadd.f32 1.0, %v5170_v18  ;;  %v7304_v34 = vadd.f32 %v3145_v38, %v3143_v54  ;;  %v8748_v14 = vld [vmem:[#allocation118_spill] sm:$0xff]  ;;  %v8749_v54 = vld [vmem:[#allocation119_spill] sm:$0xff]  ;;  %v8750_v38 = vld [vmem:[#allocation120_spill] sm:$0xff] }
 0x471   : > { %5171 = vrcp.f32 %v3126_v63  ;;  %v8751_v18 = vld [vmem:[#allocation121_spill] sm:$0xff]  ;;  %v8752_v63 = vld [vmem:[#allocation122_spill] sm:$0xff] }
 0x472   : > { %5173 = vtanh.f32 %v7302_v9 }
 0x473   : > { %5175 = vrcp.f32 %v3127_v37  ;;  %v8753_v37 = vld [vmem:[#allocation123_spill] sm:$0xff] }
 0x474   : > { %5177 = vtanh.f32 %v7304_v34 }
 0x47b   : > { %v5172_v39 = vpop.eup %5171 }
 0x47c   : > { %v5174_v51 = vpop.eup %5173 }
 0x47d   : > { %v5176_v26 = vpop.eup %5175  ;;  %v3150_v21 = vmul.f32 %v5174_v51, %v5172_v39  ;;  %v8754_v39 = vld [vmem:[#allocation124_spill] sm:$0xff]  ;;  %v8755_v51 = vld [vmem:[#allocation125_spill] sm:$0xff] }
 0x47e   : > { %v5178_v48 = vpop.eup %5177 }
 0x47f   : > { %v3151_v60 = vmul.f32 %v5178_v48, %v5176_v26  ;;  %v7308_v40 = vpack.c.bf16 %v3150_v21, %v3150_v21  ;;  %v8756_v26 = vld [vmem:[#allocation126_spill] sm:$0xff]  ;;  %v8757_v48 = vld [vmem:[#allocation127_spill] sm:$0xff]  ;;  %v8758_v21 = vld [vmem:[#allocation128_spill] sm:$0xff] }
 0x481   : > { %v3164_v36 = vpack.c.bf16 %v3151_v60, %v3151_v60  ;;  %v8759_v60 = vld [vmem:[#allocation129_spill] sm:$0xff] }
 0x483   : > { %3197 = vmatprep.mubr.bf16.mxu0 %v3164_v36  ;;  %3238 = vmatprep.mubr.bf16.mxu1 %v3164_v36 }
 0x484   : > { %3198 = vmatmul.mubr.bf16.vlgmr.msra.gmra.mrb[56].mxu0 %v7308_v40  ;;  %3239 = vmatmul.mubr.bf16.vlgmr.msra.gmra.mrb[56].mxu1 %v7308_v40 }
 0x485   : > { %3248 = vmatpush1.bf16.msra.mxu0 %v6334_v41  ;;  %3289 = vmatpush1.bf16.msra.mxu1 %v8542_v3 }
 0x486   : > { %3279 = vmatprep.mubr.bf16.mxu0 %v3164_v36  ;;  %3320 = vmatprep.mubr.bf16.mxu1 %v3164_v36  ;;  %v8760_v36 = vld [vmem:[#allocation130_spill] sm:$0xff] }
 0x487   : > { %3249 = vmatprep.subr.bf16.mxu0 %v8543_v16  ;;  %3290 = vmatprep.subr.bf16.mxu1 %v8544_v55 }
 0x489   : > { %3250 = vmatpush1.bf16.msra.mxu0 %v8545_v57  ;;  %3291 = vmatpush1.bf16.msra.mxu1 %v8546_v15 }
 0x48a   : > { %3251 = vmatprep.subr.bf16.mxu0 %v8547_v52  ;;  %3292 = vmatprep.subr.bf16.mxu1 %v8548_v22 }
 0x48d   : > { %3252 = vmatpush1.bf16.msra.mxu0 %v8549_v23  ;;  %3293 = vmatpush1.bf16.msra.mxu1 %v8550_v56 }
 0x48e   : > { %3253 = vmatprep.subr.bf16.mxu0 %v8551_v25  ;;  %3294 = vmatprep.subr.bf16.mxu1 %v8552_v61 }
 0x491   : > { %3254 = vmatpush1.bf16.msra.mxu0 %v8553_v62  ;;  %3295 = vmatpush1.bf16.msra.mxu1 %v8554_v58 }
 0x492   : > { %3255 = vmatprep.subr.bf16.mxu0 %v8555_v2  ;;  %3296 = vmatprep.subr.bf16.mxu1 %v8556_v4 }
 0x495   : > { %3256 = vmatpush1.bf16.msra.mxu0 %v8557_v17  ;;  %3297 = vmatpush1.bf16.msra.mxu1 %v8558_v29 }
 0x496   : > { %3257 = vmatprep.subr.bf16.mxu0 %v8559_v53  ;;  %3298 = vmatprep.subr.bf16.mxu1 %v8646_v44 }
 0x499   : > { %3258 = vmatpush1.bf16.msra.mxu0 %v8647_v32  ;;  %3299 = vmatpush1.bf16.msra.mxu1 %v8648_v33 }
 0x49a   : > { %3259 = vmatprep.subr.bf16.mxu0 %v8649_v43  ;;  %3300 = vmatprep.subr.bf16.mxu1 %v8650_v35 }
 0x49d   : > { %3260 = vmatpush1.bf16.msra.mxu0 %v8651_v42  ;;  %3301 = vmatpush1.bf16.msra.mxu1 %v8652_v19 }
 0x49e   : > { %3261 = vmatprep.subr.bf16.mxu0 %v8653_v50  ;;  %3302 = vmatprep.subr.bf16.mxu1 %v8654_v20 }
 0x4a1   : > { %3262 = vmatpush1.bf16.msra.mxu0 %v8741_v1  ;;  %3303 = vmatpush1.bf16.msra.mxu1 %v8742_v59 }
 0x4a2   : > { %3263 = vmatprep.subr.bf16.mxu0 %v8657_v31  ;;  %3304 = vmatprep.subr.bf16.mxu1 %v8658_v30 }
 0x4a5   : > { %3264 = vmatpush1.bf16.msra.mxu0 %v8659_v49  ;;  %3305 = vmatpush1.bf16.msra.mxu1 %v8660_v46 }
 0x4a6   : > { %3265 = vmatprep.subr.bf16.mxu0 %v8661_v45  ;;  %3306 = vmatprep.subr.bf16.mxu1 %v8662_v28 }
 0x4a9   : > { %3266 = vmatpush1.bf16.msra.mxu0 %v8663_v10  ;;  %3307 = vmatpush1.bf16.msra.mxu1 %v8664_v47 }
 0x4aa   : > { %3267 = vmatprep.subr.bf16.mxu0 %v8665_v11  ;;  %3308 = vmatprep.subr.bf16.mxu1 %v8666_v12 }
 0x4ad   : > { %3268 = vmatpush1.bf16.msra.mxu0 %v8667_v13  ;;  %3309 = vmatpush1.bf16.msra.mxu1 %v8582_v5 }
 0x4ae   : > { %3269 = vmatprep.subr.bf16.mxu0 %v8583_v0  ;;  %3310 = vmatprep.subr.bf16.mxu1 %v8743_v24 }
 0x4b1   : > { %3270 = vmatpush1.bf16.msra.mxu0 %v8744_v7  ;;  %3311 = vmatpush1.bf16.msra.mxu1 %v8745_v8 }
 0x4b2   : > { %3271 = vmatprep.subr.bf16.mxu0 %v8746_v6  ;;  %3312 = vmatprep.subr.bf16.mxu1 %v8747_v27  ;;  %v8830_v27 = vld [vmem:[#allocation142_spill] sm:$0xff]  ;;  %v8831_v6 = vld [vmem:[#allocation143_spill] sm:$0xff] }
 0x4b5   : > { %3272 = vmatpush1.bf16.msra.mxu0 %v8748_v14  ;;  %3313 = vmatpush1.bf16.msra.mxu1 %v8749_v54  ;;  %v8829_v54 = vld [vmem:[#allocation141_spill] sm:$0xff] }
 0x4b6   : > { %3273 = vmatprep.subr.bf16.mxu0 %v8750_v38  ;;  %3314 = vmatprep.subr.bf16.mxu1 %v8751_v18  ;;  %v8761_v38 = vld [vmem:[#allocation131_spill] sm:$0xff]  ;;  %v8762_v18 = vld [vmem:[#allocation5_spill] sm:$0xff] }
 0x4b9   : > { %3274 = vmatpush1.bf16.msra.mxu0 %v8752_v63  ;;  %3315 = vmatpush1.bf16.msra.mxu1 %v8753_v37  ;;  %v8763_v63 = vld [vmem:[#allocation6_spill] sm:$0xff]  ;;  %v8828_v37 = vld [vmem:[#allocation140_spill] sm:$0xff] }
 0x4ba   : > { %3275 = vmatprep.subr.bf16.mxu0 %v8754_v39  ;;  %3316 = vmatprep.subr.bf16.mxu1 %v8755_v51  ;;  %v8764_v51 = vld [vmem:[#allocation7_spill] sm:$0xff]  ;;  %v8773_v39 = vld [vmem:[#allocation16_spill] sm:$0xff] }
 0x4bd   : > { %3276 = vmatpush1.bf16.msra.mxu0 %v8756_v26  ;;  %3317 = vmatpush1.bf16.msra.mxu1 %v8757_v48  ;;  %v8765_v26 = vld [vmem:[#allocation8_spill] sm:$0xff]  ;;  %v8766_v48 = vld [vmem:[#allocation9_spill] sm:$0xff] }
 0x4be   : > { %3277 = vmatprep.subr.bf16.mxu0 %v8758_v21  ;;  %3318 = vmatprep.subr.bf16.mxu1 %v8759_v60  ;;  %v8767_v21 = vld [vmem:[#allocation10_spill] sm:$0xff]  ;;  %v8768_v60 = vld [vmem:[#allocation11_spill] sm:$0xff] }
 0x4c1   : > { %3278 = vmatpush1.bf16.msra.mxu0 %v8760_v36  ;;  %3319 = vmatpush1.bf16.msra.mxu1 %v8761_v38  ;;  %v8769_v36 = vld [vmem:[#allocation12_spill] sm:$0xff]  ;;  %v8770_v38 = vld [vmem:[#allocation13_spill] sm:$0xff] }
 0x4c2   : > { %3398 = vmatprep.subr.bf16.mxu0 %v8762_v18  ;;  %3439 = vmatprep.subr.bf16.mxu1 %v8763_v63  ;;  %v8771_v18 = vld [vmem:[#allocation14_spill] sm:$0xff]  ;;  %v8772_v63 = vld [vmem:[#allocation15_spill] sm:$0xff] }
 0x4c4   : > { %3280 = vmatmul.mubr.bf16.vlgmr.msra.gmra.mrb[60].mxu0 %v7308_v40  ;;  %3321 = vmatmul.mubr.bf16.vlgmr.msra.gmra.mrb[60].mxu1 %v7308_v40  ;;  %v8774_v40 = vld [vmem:[#allocation17_spill] sm:$0xff] }
 0x4c5   : > { %3399 = vmatpush1.bf16.msra.mxu0 %v8764_v51  ;;  %3440 = vmatpush1.bf16.msra.mxu1 %v8765_v26  ;;  %v8775_v51 = vld [vmem:[#allocation18_spill] sm:$0xff]  ;;  %v8776_v26 = vld [vmem:[#allocation19_spill] sm:$0xff] }
 0x4c6   : > { %3400 = vmatprep.subr.bf16.mxu0 %v8766_v48  ;;  %3441 = vmatprep.subr.bf16.mxu1 %v8767_v21  ;;  %v8777_v48 = vld [vmem:[#allocation20_spill] sm:$0xff]  ;;  %v8778_v21 = vld [vmem:[#allocation21_spill] sm:$0xff] }
 0x4c9   : > { %3401 = vmatpush1.bf16.msra.mxu0 %v8768_v60  ;;  %3442 = vmatpush1.bf16.msra.mxu1 %v8769_v36  ;;  %v8779_v60 = vld [vmem:[#allocation22_spill] sm:$0xff]  ;;  %v8780_v36 = vld [vmem:[#allocation23_spill] sm:$0xff] }
 0x4ca   : > { %3402 = vmatprep.subr.bf16.mxu0 %v8770_v38  ;;  %3443 = vmatprep.subr.bf16.mxu1 %v8771_v18  ;;  %v8781_v38 = vld [vmem:[#allocation24_spill] sm:$0xff]  ;;  %v8782_v18 = vld [vmem:[#allocation25_spill] sm:$0xff] }
 0x4cd   : > { %3403 = vmatpush1.bf16.msra.mxu0 %v8772_v63  ;;  %3444 = vmatpush1.bf16.msra.mxu1 %v8773_v39  ;;  %v8783_v63 = vld [vmem:[#allocation26_spill] sm:$0xff]  ;;  %v8784_v39 = vld [vmem:[#allocation27_spill] sm:$0xff] }
 0x4ce   : > { %3404 = vmatprep.subr.bf16.mxu0 %v8774_v40  ;;  %3445 = vmatprep.subr.bf16.mxu1 %v8775_v51  ;;  %v8785_v40 = vld [vmem:[#allocation28_spill] sm:$0xff]  ;;  %v8786_v51 = vld [vmem:[#allocation29_spill] sm:$0xff] }
 0x4d1   : > { %3405 = vmatpush1.bf16.msra.mxu0 %v8776_v26  ;;  %3446 = vmatpush1.bf16.msra.mxu1 %v8777_v48  ;;  %v8787_v26 = vld [vmem:[#allocation30_spill] sm:$0xff]  ;;  %v8788_v48 = vld [vmem:[#allocation31_spill] sm:$0xff] }
 0x4d2   : > { %3406 = vmatprep.subr.bf16.mxu0 %v8778_v21  ;;  %3447 = vmatprep.subr.bf16.mxu1 %v8779_v60  ;;  %v8789_v21 = vld [vmem:[#allocation32_spill] sm:$0xff]  ;;  %v8790_v60 = vld [vmem:[#allocation33_spill] sm:$0xff] }
 0x4d5   : > { %3407 = vmatpush1.bf16.msra.mxu0 %v8780_v36  ;;  %3448 = vmatpush1.bf16.msra.mxu1 %v8781_v38  ;;  %v8791_v36 = vld [vmem:[#allocation34_spill] sm:$0xff]  ;;  %v8792_v38 = vld [vmem:[#allocation35_spill] sm:$0xff] }
 0x4d6   : > { %3408 = vmatprep.subr.bf16.mxu0 %v8782_v18  ;;  %3449 = vmatprep.subr.bf16.mxu1 %v8783_v63  ;;  %v8793_v18 = vld [vmem:[#allocation36_spill] sm:$0xff]  ;;  %v8794_v63 = vld [vmem:[#allocation37_spill] sm:$0xff] }
 0x4d9   : > { %3409 = vmatpush1.bf16.msra.mxu0 %v8784_v39  ;;  %3450 = vmatpush1.bf16.msra.mxu1 %v8785_v40  ;;  %v8795_v39 = vld [vmem:[#allocation38_spill] sm:$0xff]  ;;  %v8796_v40 = vld [vmem:[#allocation39_spill] sm:$0xff] }
 0x4da   : > { %3410 = vmatprep.subr.bf16.mxu0 %v8786_v51  ;;  %3451 = vmatprep.subr.bf16.mxu1 %v8787_v26  ;;  %v8797_v51 = vld [vmem:[#allocation40_spill] sm:$0xff]  ;;  %v8798_v26 = vld [vmem:[#allocation41_spill] sm:$0xff] }
 0x4dd   : > { %3411 = vmatpush1.bf16.msra.mxu0 %v8788_v48  ;;  %3452 = vmatpush1.bf16.msra.mxu1 %v8789_v21  ;;  %v8799_v48 = vld [vmem:[#allocation42_spill] sm:$0xff]  ;;  %v8800_v21 = vld [vmem:[#allocation43_spill] sm:$0xff] }
 0x4de   : > { %3412 = vmatprep.subr.bf16.mxu0 %v8790_v60  ;;  %3453 = vmatprep.subr.bf16.mxu1 %v8791_v36  ;;  %v8801_v60 = vld [vmem:[#allocation44_spill] sm:$0xff]  ;;  %v8802_v36 = vld [vmem:[#allocation45_spill] sm:$0xff] }
 0x4e1   : > { %3413 = vmatpush1.bf16.msra.mxu0 %v8792_v38  ;;  %3454 = vmatpush1.bf16.msra.mxu1 %v8793_v18  ;;  %v8803_v38 = vld [vmem:[#allocation46_spill] sm:$0xff]  ;;  %v8804_v18 = vld [vmem:[#allocation47_spill] sm:$0xff] }
 0x4e2   : > { %3414 = vmatprep.subr.bf16.mxu0 %v8794_v63  ;;  %3455 = vmatprep.subr.bf16.mxu1 %v8795_v39  ;;  %v8805_v63 = vld [vmem:[#allocation48_spill] sm:$0xff]  ;;  %v8806_v39 = vld [vmem:[#allocation49_spill] sm:$0xff] }
 0x4e5   : > { %3415 = vmatpush1.bf16.msra.mxu0 %v8796_v40  ;;  %3456 = vmatpush1.bf16.msra.mxu1 %v8797_v51  ;;  %v8807_v40 = vld [vmem:[#allocation50_spill] sm:$0xff]  ;;  %v8808_v51 = vld [vmem:[#allocation51_spill] sm:$0xff] }
 0x4e6   : > { %3416 = vmatprep.subr.bf16.mxu0 %v8798_v26  ;;  %3457 = vmatprep.subr.bf16.mxu1 %v8799_v48  ;;  %v8809_v26 = vld [vmem:[#allocation52_spill] sm:$0xff]  ;;  %v8810_v48 = vld [vmem:[#allocation53_spill] sm:$0xff] }
 0x4e9   : > { %3417 = vmatpush1.bf16.msra.mxu0 %v8800_v21  ;;  %3458 = vmatpush1.bf16.msra.mxu1 %v8801_v60  ;;  %v8811_v21 = vld [vmem:[#allocation54_spill] sm:$0xff]  ;;  %v8812_v60 = vld [vmem:[#allocation55_spill] sm:$0xff] }
 0x4ea   : > { %3418 = vmatprep.subr.bf16.mxu0 %v8802_v36  ;;  %3459 = vmatprep.subr.bf16.mxu1 %v8803_v38  ;;  %v8813_v36 = vld [vmem:[#allocation56_spill] sm:$0xff]  ;;  %v8814_v38 = vld [vmem:[#allocation57_spill] sm:$0xff] }
 0x4ed   : > { %3419 = vmatpush1.bf16.msra.mxu0 %v8804_v18  ;;  %3460 = vmatpush1.bf16.msra.mxu1 %v8805_v63  ;;  %v8815_v18 = vld [vmem:[#allocation58_spill] sm:$0xff]  ;;  %v8816_v63 = vld [vmem:[#allocation59_spill] sm:$0xff] }
 0x4ee   : > { %3420 = vmatprep.subr.bf16.mxu0 %v8806_v39  ;;  %3461 = vmatprep.subr.bf16.mxu1 %v8807_v40  ;;  %v8817_v39 = vld [vmem:[#allocation60_spill] sm:$0xff]  ;;  %v8818_v40 = vld [vmem:[#allocation61_spill] sm:$0xff] }
 0x4f1   : > { %3421 = vmatpush1.bf16.msra.mxu0 %v8808_v51  ;;  %3462 = vmatpush1.bf16.msra.mxu1 %v8809_v26  ;;  %v8819_v51 = vld [vmem:[#allocation62_spill] sm:$0xff]  ;;  %v8820_v26 = vld [vmem:[#allocation63_spill] sm:$0xff] }
 0x4f2   : > { %3422 = vmatprep.subr.bf16.mxu0 %v8810_v48  ;;  %3463 = vmatprep.subr.bf16.mxu1 %v8811_v21  ;;  %v8821_v48 = vld [vmem:[#allocation64_spill] sm:$0xff]  ;;  %v8822_v21 = vld [vmem:[#allocation65_spill] sm:$0xff] }
 0x4f5   : > { %3423 = vmatpush1.bf16.msra.mxu0 %v8812_v60  ;;  %3464 = vmatpush1.bf16.msra.mxu1 %v8813_v36  ;;  %v8823_v60 = vld [vmem:[#allocation66_spill] sm:$0xff]  ;;  %v8824_v36 = vld [vmem:[#allocation67_spill] sm:$0xff] }
 0x4f6   : > { %3424 = vmatprep.subr.bf16.mxu0 %v8814_v38  ;;  %3465 = vmatprep.subr.bf16.mxu1 %v8815_v18  ;;  %v8825_v38 = vld [vmem:[#allocation68_spill] sm:$0xff]  ;;  %v8826_v18 = vld [vmem:[#allocation69_spill] sm:$0xff] }
 0x4f9   : > { %3425 = vmatpush1.bf16.msra.mxu0 %v8816_v63  ;;  %3466 = vmatpush1.bf16.msra.mxu1 %v8817_v39  ;;  %v8827_v63 = vld [vmem:[#allocation70_spill] sm:$0xff] }
 0x4fa   : > { %3426 = vmatprep.subr.bf16.mxu0 %v8818_v40  ;;  %3467 = vmatprep.subr.bf16.mxu1 %v8819_v51 }
 0x4fd   : > { %3427 = vmatpush1.bf16.msra.mxu0 %v8820_v26  ;;  %3468 = vmatpush1.bf16.msra.mxu1 %v8821_v48 }
 0x4fe   : > { %3428 = vmatprep.subr.bf16.mxu0 %v8822_v21  ;;  %3469 = vmatprep.subr.bf16.mxu1 %v8823_v60 }
 0x501   : > { %3429 = vmatpush1.bf16.msra.mxu0 %v8824_v36  ;;  %3470 = vmatpush1.bf16.msra.mxu1 %v8825_v38 }
 0x502   : > { %3480 = vmatprep.subr.bf16.mxu0 %v8826_v18  ;;  %3521 = vmatprep.subr.bf16.mxu1 %v8827_v63 }
 0x557   : > { %v3199_v39 = vpop.f32.mrb[56].mxu0  ;;  %v3240_v40 = vpop.f32.mrb[56].mxu1 }
 0x558   : > { %v3329_v51 = vadd.f32 %v3199_v39, %v8828_v37  ;;  %v3331_v26 = vadd.f32 %v3240_v40, %v8829_v54  ;;  %v3201_v14 = vpop.f32.mrb[57].mxu0  ;;  %v3242_v48 = vpop.f32.mrb[57].mxu1 }
 0x559   : > { %v3330_v21 = vadd.f32 %v3201_v14, %v8830_v27  ;;  %v3332_v60 = vadd.f32 %v3242_v48, %v8831_v6  ;;  %v3203_v8 = vpop.f32.mrb[58].mxu0  ;;  %v3244_v36 = vpop.f32.mrb[58].mxu1 }
 0x55a   : > { %v3204_v7 = vpop.f32.mrb[59].mxu0  ;;  %v3245_v38 = vpop.f32.mrb[59].mxu1  ;;  %v4970_v24 = vmul.f32 -1.442695, %v3329_v51  ;;  %v4972_v18 = vmul.f32 -1.442695, %v3331_v26 }
 0x55b   : > { %v4971_v0 = vmul.f32 -1.442695, %v3330_v21  ;;  %v4973_v63 = vmul.f32 -1.442695, %v3332_v60  ;;  %v8832_v38 = vld [vmem:[#allocation168_spill] sm:$0xff]  ;;  %v8833_v26 = vld [vmem:[#allocation169_spill] sm:$0xff] }
 0x55c   : > { %5179 = vpow2.f32 %v4970_v24  ;;  %v8835_v21 = vld [vmem:[#allocation171_spill] sm:$0xff] }
 0x55d   : > { %5181 = vpow2.f32 %v4972_v18 }
 0x55e   : > { %5183 = vpow2.f32 %v4971_v0 }
 0x55f   : > { %5185 = vpow2.f32 %v4973_v63  ;;  %v8834_v63 = vld [vmem:[#allocation170_spill] sm:$0xff] }
 0x566   : > { %v5180_v37 = vpop.eup %5179 }
 0x567   : > { %v5182_v54 = vpop.eup %5181  ;;  %v3355_v5 = vadd.f32 1.0, %v5180_v37 }
 0x568   : > { %v5184_v39 = vpop.eup %5183  ;;  %v3357_v27 = vadd.f32 1.0, %v5182_v54 }
 0x569   : > { %v5186_v40 = vpop.eup %5185  ;;  %v3356_v14 = vadd.f32 1.0, %v5184_v39  ;;  %5187 = vrcp.f32 %v3355_v5 }
 0x56a   : > { %v3358_v6 = vadd.f32 1.0, %v5186_v40  ;;  %5189 = vrcp.f32 %v3357_v27 }
 0x56b   : > { %5191 = vrcp.f32 %v3356_v14 }
 0x56c   : > { %5193 = vrcp.f32 %v3358_v6 }
 0x573   : > { %v5188_v27 = vpop.eup %5187 }
 0x574   : > { %v5190_v14 = vpop.eup %5189 }
 0x597   : > { %v3281_v7 = vpop.f32.mrb[60].mxu0  ;;  %v3322_v8 = vpop.f32.mrb[60].mxu1 }
 0x598   : > { %v3333_v51 = vadd.f32 %v3281_v7, %v8832_v38  ;;  %v3335_v24 = vadd.f32 %v3322_v8, %v8833_v26  ;;  %v3283_v18 = vpop.f32.mrb[61].mxu0  ;;  %v3324_v0 = vpop.f32.mrb[61].mxu1  ;;  %v3375_v26 = vmul.f32 %v5190_v14, %v7302_v9  ;;  %v8836_v14 = vld [vmem:[#allocation111_spill] sm:$0xff] }
 0x599   : > { %v3334_v48 = vadd.f32 %v3283_v18, %v8834_v63  ;;  %v3336_v60 = vadd.f32 %v3324_v0, %v8835_v21  ;;  %v3285_v36 = vpop.f32.mrb[62].mxu0  ;;  %v3326_v37 = vpop.f32.mrb[62].mxu1 }
 0x59a   : > { %v4974_v54 = vmul.f32 -1.442695, %v3333_v51  ;;  %5195 = vtanh.f32 %v3335_v24  ;;  %v3286_v5 = vpop.f32.mrb[63].mxu0  ;;  %v3327_v39 = vpop.f32.mrb[63].mxu1 }
 0x59b   : > { %v4975_v40 = vmul.f32 -1.442695, %v3334_v48  ;;  %5197 = vtanh.f32 %v3336_v60  ;;  %v5192_v7 = vpop.eup %5191 }
 0x59c   : > { %5199 = vpow2.f32 %v4974_v54  ;;  %v5194_v8 = vpop.eup %5193 }
 0x59d   : > { %5201 = vpow2.f32 %v4975_v40  ;;  %v3376_v63 = vmul.f32 %v5194_v8, %v7304_v34  ;;  %v8838_v8 = vld [vmem:[#allocation113_spill] sm:$0xff] }
 0x5a4   : > { %v5196_v38 = vpop.eup %5195 }
 0x5a5   : > { %v5198_v6 = vpop.eup %5197  ;;  %v3377_v18 = vmul.f32 %v5196_v38, %v5188_v27  ;;  %v8839_v38 = vld [vmem:[#allocation114_spill] sm:$0xff] }
 0x5a6   : > { %v5200_v0 = vpop.eup %5199  ;;  %v3378_v51 = vmul.f32 %v5198_v6, %v5192_v7  ;;  %v8837_v7 = vld [vmem:[#allocation112_spill] sm:$0xff]  ;;  %v8840_v6 = vld [vmem:[#allocation115_spill] sm:$0xff] }
 0x5a7   : > { %v5202_v24 = vpop.eup %5201  ;;  %v3359_v21 = vadd.f32 1.0, %v5200_v0  ;;  %v7452_v36 = vadd.f32 %v3377_v18, %v3375_v26  ;;  %v8841_v26 = vld [vmem:[#allocation116_spill] sm:$0xff]  ;;  %v8842_v18 = vld [vmem:[#allocation117_spill] sm:$0xff]  ;;  %v8843_v0 = vld [vmem:[#allocation118_spill] sm:$0xff] }
 0x5a8   : > { %v3360_v48 = vadd.f32 1.0, %v5202_v24  ;;  %v7454_v60 = vadd.f32 %v3378_v51, %v3376_v63  ;;  %v8844_v63 = vld [vmem:[#allocation119_spill] sm:$0xff]  ;;  %v8845_v51 = vld [vmem:[#allocation120_spill] sm:$0xff]  ;;  %v8846_v24 = vld [vmem:[#allocation121_spill] sm:$0xff] }
 0x5a9   : > { %5203 = vrcp.f32 %v3359_v21  ;;  %v8847_v21 = vld [vmem:[#allocation122_spill] sm:$0xff] }
 0x5aa   : > { %5205 = vtanh.f32 %v7452_v36 }
 0x5ab   : > { %5207 = vrcp.f32 %v3360_v48  ;;  %v8848_v48 = vld [vmem:[#allocation123_spill] sm:$0xff] }
 0x5ac   : > { %5209 = vtanh.f32 %v7454_v60 }
 0x5b3   : > { %v5204_v37 = vpop.eup %5203 }
 0x5b4   : > { %v5206_v9 = vpop.eup %5205 }
 0x5b5   : > { %v5208_v54 = vpop.eup %5207  ;;  %v3383_v39 = vmul.f32 %v5206_v9, %v5204_v37  ;;  %v8849_v37 = vld [vmem:[#allocation124_spill] sm:$0xff]  ;;  %v8850_v9 = vld [vmem:[#allocation125_spill] sm:$0xff] }
 0x5b6   : > { %v5210_v5 = vpop.eup %5209 }
 0x5b7   : > { %v3384_v34 = vmul.f32 %v5210_v5, %v5208_v54  ;;  %v7458_v27 = vpack.c.bf16 %v3383_v39, %v3383_v39  ;;  %v8851_v54 = vld [vmem:[#allocation126_spill] sm:$0xff]  ;;  %v8852_v5 = vld [vmem:[#allocation127_spill] sm:$0xff]  ;;  %v8853_v39 = vld [vmem:[#allocation128_spill] sm:$0xff] }
 0x5b9   : > { %v3397_v40 = vpack.c.bf16 %v3384_v34, %v3384_v34  ;;  %v8854_v34 = vld [vmem:[#allocation129_spill] sm:$0xff] }
 0x5bb   : > { %3430 = vmatprep.mubr.bf16.mxu0 %v3397_v40  ;;  %3471 = vmatprep.mubr.bf16.mxu1 %v3397_v40 }
 0x5bc   : > { %3431 = vmatmul.mubr.bf16.vlgmr.msra.gmra.mrb[64].mxu0 %v7458_v27  ;;  %3472 = vmatmul.mubr.bf16.vlgmr.msra.gmra.mrb[64].mxu1 %v7458_v27 }
 0x5bd   : > { %3481 = vmatpush1.bf16.msra.mxu0 %v6334_v41  ;;  %3522 = vmatpush1.bf16.msra.mxu1 %v8542_v3 }
 0x5be   : > { %3512 = vmatprep.mubr.bf16.mxu0 %v3397_v40  ;;  %3553 = vmatprep.mubr.bf16.mxu1 %v3397_v40  ;;  %v8855_v40 = vld [vmem:[#allocation130_spill] sm:$0xff] }
 0x5bf   : > { %3482 = vmatprep.subr.bf16.mxu0 %v8543_v16  ;;  %3523 = vmatprep.subr.bf16.mxu1 %v8544_v55 }
 0x5c1   : > { %3483 = vmatpush1.bf16.msra.mxu0 %v8545_v57  ;;  %3524 = vmatpush1.bf16.msra.mxu1 %v8546_v15 }
 0x5c2   : > { %3484 = vmatprep.subr.bf16.mxu0 %v8547_v52  ;;  %3525 = vmatprep.subr.bf16.mxu1 %v8548_v22 }
 0x5c5   : > { %3485 = vmatpush1.bf16.msra.mxu0 %v8549_v23  ;;  %3526 = vmatpush1.bf16.msra.mxu1 %v8550_v56 }
 0x5c6   : > { %3486 = vmatprep.subr.bf16.mxu0 %v8551_v25  ;;  %3527 = vmatprep.subr.bf16.mxu1 %v8552_v61 }
 0x5c9   : > { %3487 = vmatpush1.bf16.msra.mxu0 %v8553_v62  ;;  %3528 = vmatpush1.bf16.msra.mxu1 %v8554_v58 }
 0x5ca   : > { %3488 = vmatprep.subr.bf16.mxu0 %v8555_v2  ;;  %3529 = vmatprep.subr.bf16.mxu1 %v8556_v4 }
 0x5cd   : > { %3489 = vmatpush1.bf16.msra.mxu0 %v8557_v17  ;;  %3530 = vmatpush1.bf16.msra.mxu1 %v8558_v29 }
 0x5ce   : > { %3490 = vmatprep.subr.bf16.mxu0 %v8559_v53  ;;  %3531 = vmatprep.subr.bf16.mxu1 %v8646_v44 }
 0x5d1   : > { %3491 = vmatpush1.bf16.msra.mxu0 %v8647_v32  ;;  %3532 = vmatpush1.bf16.msra.mxu1 %v8648_v33 }
 0x5d2   : > { %3492 = vmatprep.subr.bf16.mxu0 %v8649_v43  ;;  %3533 = vmatprep.subr.bf16.mxu1 %v8650_v35 }
 0x5d5   : > { %3493 = vmatpush1.bf16.msra.mxu0 %v8651_v42  ;;  %3534 = vmatpush1.bf16.msra.mxu1 %v8652_v19 }
 0x5d6   : > { %3494 = vmatprep.subr.bf16.mxu0 %v8653_v50  ;;  %3535 = vmatprep.subr.bf16.mxu1 %v8654_v20 }
 0x5d9   : > { %3495 = vmatpush1.bf16.msra.mxu0 %v8741_v1  ;;  %3536 = vmatpush1.bf16.msra.mxu1 %v8742_v59 }
 0x5da   : > { %3496 = vmatprep.subr.bf16.mxu0 %v8657_v31  ;;  %3537 = vmatprep.subr.bf16.mxu1 %v8658_v30 }
 0x5dd   : > { %3497 = vmatpush1.bf16.msra.mxu0 %v8659_v49  ;;  %3538 = vmatpush1.bf16.msra.mxu1 %v8660_v46 }
 0x5de   : > { %3498 = vmatprep.subr.bf16.mxu0 %v8661_v45  ;;  %3539 = vmatprep.subr.bf16.mxu1 %v8662_v28 }
 0x5e1   : > { %3499 = vmatpush1.bf16.msra.mxu0 %v8663_v10  ;;  %3540 = vmatpush1.bf16.msra.mxu1 %v8664_v47 }
 0x5e2   : > { %3500 = vmatprep.subr.bf16.mxu0 %v8665_v11  ;;  %3541 = vmatprep.subr.bf16.mxu1 %v8666_v12 }
 0x5e5   : > { %3501 = vmatpush1.bf16.msra.mxu0 %v8667_v13  ;;  %3542 = vmatpush1.bf16.msra.mxu1 %v8836_v14 }
 0x5e6   : > { %3502 = vmatprep.subr.bf16.mxu0 %v8837_v7  ;;  %3543 = vmatprep.subr.bf16.mxu1 %v8838_v8 }
 0x5e9   : > { %3503 = vmatpush1.bf16.msra.mxu0 %v8839_v38  ;;  %3544 = vmatpush1.bf16.msra.mxu1 %v8840_v6 }
 0x5ea   : > { %3504 = vmatprep.subr.bf16.mxu0 %v8841_v26  ;;  %3545 = vmatprep.subr.bf16.mxu1 %v8842_v18  ;;  %v8925_v18 = vld [vmem:[#allocation146_spill] sm:$0xff]  ;;  %v8926_v26 = vld [vmem:[#allocation147_spill] sm:$0xff] }
 0x5ed   : > { %3505 = vmatpush1.bf16.msra.mxu0 %v8843_v0  ;;  %3546 = vmatpush1.bf16.msra.mxu1 %v8844_v63  ;;  %v8924_v63 = vld [vmem:[#allocation145_spill] sm:$0xff] }
 0x5ee   : > { %3506 = vmatprep.subr.bf16.mxu0 %v8845_v51  ;;  %3547 = vmatprep.subr.bf16.mxu1 %v8846_v24  ;;  %v8856_v51 = vld [vmem:[#allocation131_spill] sm:$0xff]  ;;  %v8857_v24 = vld [vmem:[#allocation5_spill] sm:$0xff] }
 0x5f1   : > { %3507 = vmatpush1.bf16.msra.mxu0 %v8847_v21  ;;  %3548 = vmatpush1.bf16.msra.mxu1 %v8848_v48  ;;  %v8858_v21 = vld [vmem:[#allocation6_spill] sm:$0xff]  ;;  %v8923_v48 = vld [vmem:[#allocation144_spill] sm:$0xff] }
 0x5f2   : > { %3508 = vmatprep.subr.bf16.mxu0 %v8849_v37  ;;  %3549 = vmatprep.subr.bf16.mxu1 %v8850_v9  ;;  %v8859_v9 = vld [vmem:[#allocation7_spill] sm:$0xff]  ;;  %v8868_v37 = vld [vmem:[#allocation16_spill] sm:$0xff] }
 0x5f5   : > { %3509 = vmatpush1.bf16.msra.mxu0 %v8851_v54  ;;  %3550 = vmatpush1.bf16.msra.mxu1 %v8852_v5  ;;  %v8860_v54 = vld [vmem:[#allocation8_spill] sm:$0xff]  ;;  %v8861_v5 = vld [vmem:[#allocation9_spill] sm:$0xff] }
 0x5f6   : > { %3510 = vmatprep.subr.bf16.mxu0 %v8853_v39  ;;  %3551 = vmatprep.subr.bf16.mxu1 %v8854_v34  ;;  %v8862_v39 = vld [vmem:[#allocation10_spill] sm:$0xff]  ;;  %v8863_v34 = vld [vmem:[#allocation11_spill] sm:$0xff] }
 0x5f9   : > { %3511 = vmatpush1.bf16.msra.mxu0 %v8855_v40  ;;  %3552 = vmatpush1.bf16.msra.mxu1 %v8856_v51  ;;  %v8864_v40 = vld [vmem:[#allocation12_spill] sm:$0xff]  ;;  %v8865_v51 = vld [vmem:[#allocation13_spill] sm:$0xff] }
 0x5fa   : > { %3631 = vmatprep.subr.bf16.mxu0 %v8857_v24  ;;  %3672 = vmatprep.subr.bf16.mxu1 %v8858_v21  ;;  %v8866_v24 = vld [vmem:[#allocation14_spill] sm:$0xff]  ;;  %v8867_v21 = vld [vmem:[#allocation15_spill] sm:$0xff] }
 0x5fc   : > { %3513 = vmatmul.mubr.bf16.vlgmr.msra.gmra.mrb[68].mxu0 %v7458_v27  ;;  %3554 = vmatmul.mubr.bf16.vlgmr.msra.gmra.mrb[68].mxu1 %v7458_v27  ;;  %v8869_v27 = vld [vmem:[#allocation17_spill] sm:$0xff] }
 0x5fd   : > { %3632 = vmatpush1.bf16.msra.mxu0 %v8859_v9  ;;  %3673 = vmatpush1.bf16.msra.mxu1 %v8860_v54  ;;  %v8870_v9 = vld [vmem:[#allocation18_spill] sm:$0xff]  ;;  %v8871_v54 = vld [vmem:[#allocation19_spill] sm:$0xff] }
 0x5fe   : > { %3633 = vmatprep.subr.bf16.mxu0 %v8861_v5  ;;  %3674 = vmatprep.subr.bf16.mxu1 %v8862_v39  ;;  %v8872_v5 = vld [vmem:[#allocation20_spill] sm:$0xff]  ;;  %v8873_v39 = vld [vmem:[#allocation21_spill] sm:$0xff] }
 0x601   : > { %3634 = vmatpush1.bf16.msra.mxu0 %v8863_v34  ;;  %3675 = vmatpush1.bf16.msra.mxu1 %v8864_v40  ;;  %v8874_v34 = vld [vmem:[#allocation22_spill] sm:$0xff]  ;;  %v8875_v40 = vld [vmem:[#allocation23_spill] sm:$0xff] }
 0x602   : > { %3635 = vmatprep.subr.bf16.mxu0 %v8865_v51  ;;  %3676 = vmatprep.subr.bf16.mxu1 %v8866_v24  ;;  %v8876_v51 = vld [vmem:[#allocation24_spill] sm:$0xff]  ;;  %v8877_v24 = vld [vmem:[#allocation25_spill] sm:$0xff] }
 0x605   : > { %3636 = vmatpush1.bf16.msra.mxu0 %v8867_v21  ;;  %3677 = vmatpush1.bf16.msra.mxu1 %v8868_v37  ;;  %v8878_v21 = vld [vmem:[#allocation26_spill] sm:$0xff]  ;;  %v8879_v37 = vld [vmem:[#allocation27_spill] sm:$0xff] }
 0x606   : > { %3637 = vmatprep.subr.bf16.mxu0 %v8869_v27  ;;  %3678 = vmatprep.subr.bf16.mxu1 %v8870_v9  ;;  %v8880_v27 = vld [vmem:[#allocation28_spill] sm:$0xff]  ;;  %v8881_v9 = vld [vmem:[#allocation29_spill] sm:$0xff] }
 0x609   : > { %3638 = vmatpush1.bf16.msra.mxu0 %v8871_v54  ;;  %3679 = vmatpush1.bf16.msra.mxu1 %v8872_v5  ;;  %v8882_v54 = vld [vmem:[#allocation30_spill] sm:$0xff]  ;;  %v8883_v5 = vld [vmem:[#allocation31_spill] sm:$0xff] }
 0x60a   : > { %3639 = vmatprep.subr.bf16.mxu0 %v8873_v39  ;;  %3680 = vmatprep.subr.bf16.mxu1 %v8874_v34  ;;  %v8884_v39 = vld [vmem:[#allocation32_spill] sm:$0xff]  ;;  %v8885_v34 = vld [vmem:[#allocation33_spill] sm:$0xff] }
 0x60d   : > { %3640 = vmatpush1.bf16.msra.mxu0 %v8875_v40  ;;  %3681 = vmatpush1.bf16.msra.mxu1 %v8876_v51  ;;  %v8886_v40 = vld [vmem:[#allocation34_spill] sm:$0xff]  ;;  %v8887_v51 = vld [vmem:[#allocation35_spill] sm:$0xff] }
 0x60e   : > { %3641 = vmatprep.subr.bf16.mxu0 %v8877_v24  ;;  %3682 = vmatprep.subr.bf16.mxu1 %v8878_v21  ;;  %v8888_v24 = vld [vmem:[#allocation36_spill] sm:$0xff]  ;;  %v8889_v21 = vld [vmem:[#allocation37_spill] sm:$0xff] }
 0x611   : > { %3642 = vmatpush1.bf16.msra.mxu0 %v8879_v37  ;;  %3683 = vmatpush1.bf16.msra.mxu1 %v8880_v27  ;;  %v8890_v37 = vld [vmem:[#allocation38_spill] sm:$0xff]  ;;  %v8891_v27 = vld [vmem:[#allocation39_spill] sm:$0xff] }
 0x612   : > { %3643 = vmatprep.subr.bf16.mxu0 %v8881_v9  ;;  %3684 = vmatprep.subr.bf16.mxu1 %v8882_v54  ;;  %v8892_v9 = vld [vmem:[#allocation40_spill] sm:$0xff]  ;;  %v8893_v54 = vld [vmem:[#allocation41_spill] sm:$0xff] }
 0x615   : > { %3644 = vmatpush1.bf16.msra.mxu0 %v8883_v5  ;;  %3685 = vmatpush1.bf16.msra.mxu1 %v8884_v39  ;;  %v8894_v5 = vld [vmem:[#allocation42_spill] sm:$0xff]  ;;  %v8895_v39 = vld [vmem:[#allocation43_spill] sm:$0xff] }
 0x616   : > { %3645 = vmatprep.subr.bf16.mxu0 %v8885_v34  ;;  %3686 = vmatprep.subr.bf16.mxu1 %v8886_v40  ;;  %v8896_v34 = vld [vmem:[#allocation44_spill] sm:$0xff]  ;;  %v8897_v40 = vld [vmem:[#allocation45_spill] sm:$0xff] }
 0x619   : > { %3646 = vmatpush1.bf16.msra.mxu0 %v8887_v51  ;;  %3687 = vmatpush1.bf16.msra.mxu1 %v8888_v24  ;;  %v8898_v51 = vld [vmem:[#allocation46_spill] sm:$0xff]  ;;  %v8899_v24 = vld [vmem:[#allocation47_spill] sm:$0xff] }
 0x61a   : > { %3647 = vmatprep.subr.bf16.mxu0 %v8889_v21  ;;  %3688 = vmatprep.subr.bf16.mxu1 %v8890_v37  ;;  %v8900_v21 = vld [vmem:[#allocation48_spill] sm:$0xff]  ;;  %v8901_v37 = vld [vmem:[#allocation49_spill] sm:$0xff] }
 0x61d   : > { %3648 = vmatpush1.bf16.msra.mxu0 %v8891_v27  ;;  %3689 = vmatpush1.bf16.msra.mxu1 %v8892_v9  ;;  %v8902_v27 = vld [vmem:[#allocation50_spill] sm:$0xff]  ;;  %v8903_v9 = vld [vmem:[#allocation51_spill] sm:$0xff] }
 0x61e   : > { %3649 = vmatprep.subr.bf16.mxu0 %v8893_v54  ;;  %3690 = vmatprep.subr.bf16.mxu1 %v8894_v5  ;;  %v8904_v54 = vld [vmem:[#allocation52_spill] sm:$0xff]  ;;  %v8905_v5 = vld [vmem:[#allocation53_spill] sm:$0xff] }
 0x621   : > { %3650 = vmatpush1.bf16.msra.mxu0 %v8895_v39  ;;  %3691 = vmatpush1.bf16.msra.mxu1 %v8896_v34  ;;  %v8906_v39 = vld [vmem:[#allocation54_spill] sm:$0xff]  ;;  %v8907_v34 = vld [vmem:[#allocation55_spill] sm:$0xff] }
 0x622   : > { %3651 = vmatprep.subr.bf16.mxu0 %v8897_v40  ;;  %3692 = vmatprep.subr.bf16.mxu1 %v8898_v51  ;;  %v8908_v40 = vld [vmem:[#allocation56_spill] sm:$0xff]  ;;  %v8909_v51 = vld [vmem:[#allocation57_spill] sm:$0xff] }
 0x625   : > { %3652 = vmatpush1.bf16.msra.mxu0 %v8899_v24  ;;  %3693 = vmatpush1.bf16.msra.mxu1 %v8900_v21  ;;  %v8910_v24 = vld [vmem:[#allocation58_spill] sm:$0xff]  ;;  %v8911_v21 = vld [vmem:[#allocation59_spill] sm:$0xff] }
 0x626   : > { %3653 = vmatprep.subr.bf16.mxu0 %v8901_v37  ;;  %3694 = vmatprep.subr.bf16.mxu1 %v8902_v27  ;;  %v8912_v37 = vld [vmem:[#allocation60_spill] sm:$0xff]  ;;  %v8913_v27 = vld [vmem:[#allocation61_spill] sm:$0xff] }
 0x629   : > { %3654 = vmatpush1.bf16.msra.mxu0 %v8903_v9  ;;  %3695 = vmatpush1.bf16.msra.mxu1 %v8904_v54  ;;  %v8914_v9 = vld [vmem:[#allocation62_spill] sm:$0xff]  ;;  %v8915_v54 = vld [vmem:[#allocation63_spill] sm:$0xff] }
 0x62a   : > { %3655 = vmatprep.subr.bf16.mxu0 %v8905_v5  ;;  %3696 = vmatprep.subr.bf16.mxu1 %v8906_v39  ;;  %v8916_v5 = vld [vmem:[#allocation64_spill] sm:$0xff]  ;;  %v8917_v39 = vld [vmem:[#allocation65_spill] sm:$0xff] }
 0x62d   : > { %3656 = vmatpush1.bf16.msra.mxu0 %v8907_v34  ;;  %3697 = vmatpush1.bf16.msra.mxu1 %v8908_v40  ;;  %v8918_v34 = vld [vmem:[#allocation66_spill] sm:$0xff]  ;;  %v8919_v40 = vld [vmem:[#allocation67_spill] sm:$0xff] }
 0x62e   : > { %3657 = vmatprep.subr.bf16.mxu0 %v8909_v51  ;;  %3698 = vmatprep.subr.bf16.mxu1 %v8910_v24  ;;  %v8920_v51 = vld [vmem:[#allocation68_spill] sm:$0xff]  ;;  %v8921_v24 = vld [vmem:[#allocation69_spill] sm:$0xff] }
 0x631   : > { %3658 = vmatpush1.bf16.msra.mxu0 %v8911_v21  ;;  %3699 = vmatpush1.bf16.msra.mxu1 %v8912_v37  ;;  %v8922_v21 = vld [vmem:[#allocation70_spill] sm:$0xff] }
 0x632   : > { %3659 = vmatprep.subr.bf16.mxu0 %v8913_v27  ;;  %3700 = vmatprep.subr.bf16.mxu1 %v8914_v9 }
 0x635   : > { %3660 = vmatpush1.bf16.msra.mxu0 %v8915_v54  ;;  %3701 = vmatpush1.bf16.msra.mxu1 %v8916_v5 }
 0x636   : > { %3661 = vmatprep.subr.bf16.mxu0 %v8917_v39  ;;  %3702 = vmatprep.subr.bf16.mxu1 %v8918_v34 }
 0x639   : > { %3662 = vmatpush1.bf16.msra.mxu0 %v8919_v40  ;;  %3703 = vmatpush1.bf16.msra.mxu1 %v8920_v51 }
 0x63a   : > { %3713 = vmatprep.subr.bf16.mxu0 %v8921_v24  ;;  %3754 = vmatprep.subr.bf16.mxu1 %v8922_v21 }
 0x68f   : > { %v3432_v37 = vpop.f32.mrb[64].mxu0  ;;  %v3473_v27 = vpop.f32.mrb[64].mxu1 }
 0x690   : > { %v3562_v9 = vadd.f32 %v3432_v37, %v8923_v48  ;;  %v3564_v54 = vadd.f32 %v3473_v27, %v8924_v63  ;;  %v3434_v0 = vpop.f32.mrb[65].mxu0  ;;  %v3475_v5 = vpop.f32.mrb[65].mxu1 }
 0x691   : > { %v3563_v39 = vadd.f32 %v3434_v0, %v8925_v18  ;;  %v3565_v34 = vadd.f32 %v3475_v5, %v8926_v26  ;;  %v3436_v6 = vpop.f32.mrb[66].mxu0  ;;  %v3477_v40 = vpop.f32.mrb[66].mxu1 }
 0x692   : > { %v3437_v38 = vpop.f32.mrb[67].mxu0  ;;  %v3478_v51 = vpop.f32.mrb[67].mxu1  ;;  %v4976_v8 = vmul.f32 -1.442695, %v3562_v9  ;;  %v4978_v24 = vmul.f32 -1.442695, %v3564_v54 }
 0x693   : > { %v4977_v7 = vmul.f32 -1.442695, %v3563_v39  ;;  %v4979_v21 = vmul.f32 -1.442695, %v3565_v34  ;;  %v8927_v51 = vld [vmem:[#allocation172_spill] sm:$0xff]  ;;  %v8928_v54 = vld [vmem:[#allocation173_spill] sm:$0xff] }
 0x694   : > { %5211 = vpow2.f32 %v4976_v8  ;;  %v8930_v39 = vld [vmem:[#allocation175_spill] sm:$0xff] }
 0x695   : > { %5213 = vpow2.f32 %v4978_v24 }
 0x696   : > { %5215 = vpow2.f32 %v4977_v7 }
 0x697   : > { %5217 = vpow2.f32 %v4979_v21  ;;  %v8929_v21 = vld [vmem:[#allocation174_spill] sm:$0xff] }
 0x69e   : > { %v5212_v48 = vpop.eup %5211 }
 0x69f   : > { %v5214_v63 = vpop.eup %5213  ;;  %v3588_v14 = vadd.f32 1.0, %v5212_v48 }
 0x6a0   : > { %v5216_v37 = vpop.eup %5215  ;;  %v3590_v18 = vadd.f32 1.0, %v5214_v63 }
 0x6a1   : > { %v5218_v27 = vpop.eup %5217  ;;  %v3589_v0 = vadd.f32 1.0, %v5216_v37  ;;  %5219 = vrcp.f32 %v3588_v14 }
 0x6a2   : > { %v3591_v26 = vadd.f32 1.0, %v5218_v27  ;;  %5221 = vrcp.f32 %v3590_v18 }
 0x6a3   : > { %5223 = vrcp.f32 %v3589_v0 }
 0x6a4   : > { %5225 = vrcp.f32 %v3591_v26 }
 0x6ab   : > { %v5220_v18 = vpop.eup %5219 }
 0x6ac   : > { %v5222_v0 = vpop.eup %5221 }
 0x6cf   : > { %v3514_v38 = vpop.f32.mrb[68].mxu0  ;;  %v3555_v6 = vpop.f32.mrb[68].mxu1 }
 0x6d0   : > { %v3566_v9 = vadd.f32 %v3514_v38, %v8927_v51  ;;  %v3568_v8 = vadd.f32 %v3555_v6, %v8928_v54  ;;  %v3516_v24 = vpop.f32.mrb[69].mxu0  ;;  %v3557_v7 = vpop.f32.mrb[69].mxu1  ;;  %v3608_v54 = vmul.f32 %v5222_v0, %v7452_v36  ;;  %v8931_v0 = vld [vmem:[#allocation111_spill] sm:$0xff] }
 0x6d1   : > { %v3567_v5 = vadd.f32 %v3516_v24, %v8929_v21  ;;  %v3569_v34 = vadd.f32 %v3557_v7, %v8930_v39  ;;  %v3518_v40 = vpop.f32.mrb[70].mxu0  ;;  %v3559_v48 = vpop.f32.mrb[70].mxu1 }
 0x6d2   : > { %v4980_v63 = vmul.f32 -1.442695, %v3566_v9  ;;  %5227 = vtanh.f32 %v3568_v8  ;;  %v3519_v14 = vpop.f32.mrb[71].mxu0  ;;  %v3560_v37 = vpop.f32.mrb[71].mxu1 }
 0x6d3   : > { %v4981_v27 = vmul.f32 -1.442695, %v3567_v5  ;;  %5229 = vtanh.f32 %v3569_v34  ;;  %v5224_v38 = vpop.eup %5223 }
 0x6d4   : > { %5231 = vpow2.f32 %v4980_v63  ;;  %v5226_v6 = vpop.eup %5225 }
 0x6d5   : > { %5233 = vpow2.f32 %v4981_v27  ;;  %v3609_v21 = vmul.f32 %v5226_v6, %v7454_v60  ;;  %v8933_v6 = vld [vmem:[#allocation113_spill] sm:$0xff] }
 0x6dc   : > { %v5228_v51 = vpop.eup %5227 }
 0x6dd   : > { %v5230_v26 = vpop.eup %5229  ;;  %v3610_v24 = vmul.f32 %v5228_v51, %v5220_v18  ;;  %v8934_v51 = vld [vmem:[#allocation114_spill] sm:$0xff] }
 0x6de   : > { %v5232_v7 = vpop.eup %5231  ;;  %v3611_v9 = vmul.f32 %v5230_v26, %v5224_v38  ;;  %v8932_v38 = vld [vmem:[#allocation112_spill] sm:$0xff]  ;;  %v8935_v26 = vld [vmem:[#allocation115_spill] sm:$0xff] }
 0x6df   : > { %v5234_v8 = vpop.eup %5233  ;;  %v3592_v39 = vadd.f32 1.0, %v5232_v7  ;;  %v7602_v40 = vadd.f32 %v3610_v24, %v3608_v54  ;;  %v8936_v54 = vld [vmem:[#allocation116_spill] sm:$0xff]  ;;  %v8937_v24 = vld [vmem:[#allocation117_spill] sm:$0xff]  ;;  %v8938_v7 = vld [vmem:[#allocation118_spill] sm:$0xff] }
 0x6e0   : > { %v3593_v5 = vadd.f32 1.0, %v5234_v8  ;;  %v7604_v34 = vadd.f32 %v3611_v9, %v3609_v21  ;;  %v8939_v21 = vld [vmem:[#allocation119_spill] sm:$0xff]  ;;  %v8940_v9 = vld [vmem:[#allocation120_spill] sm:$0xff]  ;;  %v8941_v8 = vld [vmem:[#allocation121_spill] sm:$0xff] }
 0x6e1   : > { %5235 = vrcp.f32 %v3592_v39  ;;  %v8942_v39 = vld [vmem:[#allocation122_spill] sm:$0xff] }
 0x6e2   : > { %5237 = vtanh.f32 %v7602_v40 }
 0x6e3   : > { %5239 = vrcp.f32 %v3593_v5  ;;  %v8943_v5 = vld [vmem:[#allocation123_spill] sm:$0xff] }
 0x6e4   : > { %5241 = vtanh.f32 %v7604_v34 }
 0x6eb   : > { %v5236_v48 = vpop.eup %5235 }
 0x6ec   : > { %v5238_v36 = vpop.eup %5237 }
 0x6ed   : > { %v5240_v63 = vpop.eup %5239  ;;  %v3616_v37 = vmul.f32 %v5238_v36, %v5236_v48  ;;  %v8944_v48 = vld [vmem:[#allocation124_spill] sm:$0xff]  ;;  %v8945_v36 = vld [vmem:[#allocation125_spill] sm:$0xff] }
 0x6ee   : > { %v5242_v14 = vpop.eup %5241 }
 0x6ef   : > { %v3617_v60 = vmul.f32 %v5242_v14, %v5240_v63  ;;  %v7608_v18 = vpack.c.bf16 %v3616_v37, %v3616_v37  ;;  %v8946_v63 = vld [vmem:[#allocation126_spill] sm:$0xff]  ;;  %v8947_v14 = vld [vmem:[#allocation127_spill] sm:$0xff]  ;;  %v8948_v37 = vld [vmem:[#allocation128_spill] sm:$0xff] }
 0x6f1   : > { %v3630_v27 = vpack.c.bf16 %v3617_v60, %v3617_v60  ;;  %v8949_v60 = vld [vmem:[#allocation129_spill] sm:$0xff] }
 0x6f3   : > { %3663 = vmatprep.mubr.bf16.mxu0 %v3630_v27  ;;  %3704 = vmatprep.mubr.bf16.mxu1 %v3630_v27 }
 0x6f4   : > { %3664 = vmatmul.mubr.bf16.vlgmr.msra.gmra.mrb[72].mxu0 %v7608_v18  ;;  %3705 = vmatmul.mubr.bf16.vlgmr.msra.gmra.mrb[72].mxu1 %v7608_v18 }
 0x6f5   : > { %3714 = vmatpush1.bf16.msra.mxu0 %v6334_v41  ;;  %3755 = vmatpush1.bf16.msra.mxu1 %v8542_v3 }
 0x6f6   : > { %3745 = vmatprep.mubr.bf16.mxu0 %v3630_v27  ;;  %3786 = vmatprep.mubr.bf16.mxu1 %v3630_v27  ;;  %v8950_v27 = vld [vmem:[#allocation130_spill] sm:$0xff] }
 0x6f7   : > { %3715 = vmatprep.subr.bf16.mxu0 %v8543_v16  ;;  %3756 = vmatprep.subr.bf16.mxu1 %v8544_v55 }
 0x6f9   : > { %3716 = vmatpush1.bf16.msra.mxu0 %v8545_v57  ;;  %3757 = vmatpush1.bf16.msra.mxu1 %v8546_v15 }
 0x6fa   : > { %3717 = vmatprep.subr.bf16.mxu0 %v8547_v52  ;;  %3758 = vmatprep.subr.bf16.mxu1 %v8548_v22 }
 0x6fd   : > { %3718 = vmatpush1.bf16.msra.mxu0 %v8549_v23  ;;  %3759 = vmatpush1.bf16.msra.mxu1 %v8550_v56 }
 0x6fe   : > { %3719 = vmatprep.subr.bf16.mxu0 %v8551_v25  ;;  %3760 = vmatprep.subr.bf16.mxu1 %v8552_v61 }
 0x701   : > { %3720 = vmatpush1.bf16.msra.mxu0 %v8553_v62  ;;  %3761 = vmatpush1.bf16.msra.mxu1 %v8554_v58 }
 0x702   : > { %3721 = vmatprep.subr.bf16.mxu0 %v8555_v2  ;;  %3762 = vmatprep.subr.bf16.mxu1 %v8556_v4 }
 0x705   : > { %3722 = vmatpush1.bf16.msra.mxu0 %v8557_v17  ;;  %3763 = vmatpush1.bf16.msra.mxu1 %v8558_v29 }
 0x706   : > { %3723 = vmatprep.subr.bf16.mxu0 %v8559_v53  ;;  %3764 = vmatprep.subr.bf16.mxu1 %v8646_v44 }
 0x709   : > { %3724 = vmatpush1.bf16.msra.mxu0 %v8647_v32  ;;  %3765 = vmatpush1.bf16.msra.mxu1 %v8648_v33 }
 0x70a   : > { %3725 = vmatprep.subr.bf16.mxu0 %v8649_v43  ;;  %3766 = vmatprep.subr.bf16.mxu1 %v8650_v35 }
 0x70d   : > { %3726 = vmatpush1.bf16.msra.mxu0 %v8651_v42  ;;  %3767 = vmatpush1.bf16.msra.mxu1 %v8652_v19 }
 0x70e   : > { %3727 = vmatprep.subr.bf16.mxu0 %v8653_v50  ;;  %3768 = vmatprep.subr.bf16.mxu1 %v8654_v20 }
 0x711   : > { %3728 = vmatpush1.bf16.msra.mxu0 %v8741_v1  ;;  %3769 = vmatpush1.bf16.msra.mxu1 %v8742_v59 }
 0x712   : > { %3729 = vmatprep.subr.bf16.mxu0 %v8657_v31  ;;  %3770 = vmatprep.subr.bf16.mxu1 %v8658_v30 }
 0x715   : > { %3730 = vmatpush1.bf16.msra.mxu0 %v8659_v49  ;;  %3771 = vmatpush1.bf16.msra.mxu1 %v8660_v46 }
 0x716   : > { %3731 = vmatprep.subr.bf16.mxu0 %v8661_v45  ;;  %3772 = vmatprep.subr.bf16.mxu1 %v8662_v28 }
 0x719   : > { %3732 = vmatpush1.bf16.msra.mxu0 %v8663_v10  ;;  %3773 = vmatpush1.bf16.msra.mxu1 %v8664_v47 }
 0x71a   : > { %3733 = vmatprep.subr.bf16.mxu0 %v8665_v11  ;;  %3774 = vmatprep.subr.bf16.mxu1 %v8666_v12 }
 0x71d   : > { %3734 = vmatpush1.bf16.msra.mxu0 %v8667_v13  ;;  %3775 = vmatpush1.bf16.msra.mxu1 %v8931_v0 }
 0x71e   : > { %3735 = vmatprep.subr.bf16.mxu0 %v8932_v38  ;;  %3776 = vmatprep.subr.bf16.mxu1 %v8933_v6 }
 0x721   : > { %3736 = vmatpush1.bf16.msra.mxu0 %v8934_v51  ;;  %3777 = vmatpush1.bf16.msra.mxu1 %v8935_v26 }
 0x722   : > { %3737 = vmatprep.subr.bf16.mxu0 %v8936_v54  ;;  %3778 = vmatprep.subr.bf16.mxu1 %v8937_v24  ;;  %v9020_v24 = vld [vmem:[#allocation150_spill] sm:$0xff]  ;;  %v9021_v54 = vld [vmem:[#allocation151_spill] sm:$0xff] }
 0x725   : > { %3738 = vmatpush1.bf16.msra.mxu0 %v8938_v7  ;;  %3779 = vmatpush1.bf16.msra.mxu1 %v8939_v21  ;;  %v9019_v21 = vld [vmem:[#allocation149_spill] sm:$0xff] }
 0x726   : > { %3739 = vmatprep.subr.bf16.mxu0 %v8940_v9  ;;  %3780 = vmatprep.subr.bf16.mxu1 %v8941_v8  ;;  %v8951_v9 = vld [vmem:[#allocation131_spill] sm:$0xff]  ;;  %v8952_v8 = vld [vmem:[#allocation5_spill] sm:$0xff] }
 0x729   : > { %3740 = vmatpush1.bf16.msra.mxu0 %v8942_v39  ;;  %3781 = vmatpush1.bf16.msra.mxu1 %v8943_v5  ;;  %v8953_v39 = vld [vmem:[#allocation6_spill] sm:$0xff]  ;;  %v9018_v5 = vld [vmem:[#allocation148_spill] sm:$0xff] }
 0x72a   : > { %3741 = vmatprep.subr.bf16.mxu0 %v8944_v48  ;;  %3782 = vmatprep.subr.bf16.mxu1 %v8945_v36  ;;  %v8954_v36 = vld [vmem:[#allocation7_spill] sm:$0xff]  ;;  %v8963_v48 = vld [vmem:[#allocation16_spill] sm:$0xff] }
 0x72d   : > { %3742 = vmatpush1.bf16.msra.mxu0 %v8946_v63  ;;  %3783 = vmatpush1.bf16.msra.mxu1 %v8947_v14  ;;  %v8955_v63 = vld [vmem:[#allocation8_spill] sm:$0xff]  ;;  %v8956_v14 = vld [vmem:[#allocation9_spill] sm:$0xff] }
 0x72e   : > { %3743 = vmatprep.subr.bf16.mxu0 %v8948_v37  ;;  %3784 = vmatprep.subr.bf16.mxu1 %v8949_v60  ;;  %v8957_v37 = vld [vmem:[#allocation10_spill] sm:$0xff]  ;;  %v8958_v60 = vld [vmem:[#allocation11_spill] sm:$0xff] }
 0x731   : > { %3744 = vmatpush1.bf16.msra.mxu0 %v8950_v27  ;;  %3785 = vmatpush1.bf16.msra.mxu1 %v8951_v9  ;;  %v8959_v27 = vld [vmem:[#allocation12_spill] sm:$0xff]  ;;  %v8960_v9 = vld [vmem:[#allocation13_spill] sm:$0xff] }
 0x732   : > { %3864 = vmatprep.subr.bf16.mxu0 %v8952_v8  ;;  %3905 = vmatprep.subr.bf16.mxu1 %v8953_v39  ;;  %v8961_v8 = vld [vmem:[#allocation14_spill] sm:$0xff]  ;;  %v8962_v39 = vld [vmem:[#allocation15_spill] sm:$0xff] }
 0x734   : > { %3746 = vmatmul.mubr.bf16.vlgmr.msra.gmra.mrb[76].mxu0 %v7608_v18  ;;  %3787 = vmatmul.mubr.bf16.vlgmr.msra.gmra.mrb[76].mxu1 %v7608_v18  ;;  %v8964_v18 = vld [vmem:[#allocation17_spill] sm:$0xff] }
 0x735   : > { %3865 = vmatpush1.bf16.msra.mxu0 %v8954_v36  ;;  %3906 = vmatpush1.bf16.msra.mxu1 %v8955_v63  ;;  %v8965_v36 = vld [vmem:[#allocation18_spill] sm:$0xff]  ;;  %v8966_v63 = vld [vmem:[#allocation19_spill] sm:$0xff] }
 0x736   : > { %3866 = vmatprep.subr.bf16.mxu0 %v8956_v14  ;;  %3907 = vmatprep.subr.bf16.mxu1 %v8957_v37  ;;  %v8967_v14 = vld [vmem:[#allocation20_spill] sm:$0xff]  ;;  %v8968_v37 = vld [vmem:[#allocation21_spill] sm:$0xff] }
 0x739   : > { %3867 = vmatpush1.bf16.msra.mxu0 %v8958_v60  ;;  %3908 = vmatpush1.bf16.msra.mxu1 %v8959_v27  ;;  %v8969_v60 = vld [vmem:[#allocation22_spill] sm:$0xff]  ;;  %v8970_v27 = vld [vmem:[#allocation23_spill] sm:$0xff] }
 0x73a   : > { %3868 = vmatprep.subr.bf16.mxu0 %v8960_v9  ;;  %3909 = vmatprep.subr.bf16.mxu1 %v8961_v8  ;;  %v8971_v9 = vld [vmem:[#allocation24_spill] sm:$0xff]  ;;  %v8972_v8 = vld [vmem:[#allocation25_spill] sm:$0xff] }
 0x73d   : > { %3869 = vmatpush1.bf16.msra.mxu0 %v8962_v39  ;;  %3910 = vmatpush1.bf16.msra.mxu1 %v8963_v48  ;;  %v8973_v39 = vld [vmem:[#allocation26_spill] sm:$0xff]  ;;  %v8974_v48 = vld [vmem:[#allocation27_spill] sm:$0xff] }
 0x73e   : > { %3870 = vmatprep.subr.bf16.mxu0 %v8964_v18  ;;  %3911 = vmatprep.subr.bf16.mxu1 %v8965_v36  ;;  %v8975_v18 = vld [vmem:[#allocation28_spill] sm:$0xff]  ;;  %v8976_v36 = vld [vmem:[#allocation29_spill] sm:$0xff] }
 0x741   : > { %3871 = vmatpush1.bf16.msra.mxu0 %v8966_v63  ;;  %3912 = vmatpush1.bf16.msra.mxu1 %v8967_v14  ;;  %v8977_v63 = vld [vmem:[#allocation30_spill] sm:$0xff]  ;;  %v8978_v14 = vld [vmem:[#allocation31_spill] sm:$0xff] }
 0x742   : > { %3872 = vmatprep.subr.bf16.mxu0 %v8968_v37  ;;  %3913 = vmatprep.subr.bf16.mxu1 %v8969_v60  ;;  %v8979_v37 = vld [vmem:[#allocation32_spill] sm:$0xff]  ;;  %v8980_v60 = vld [vmem:[#allocation33_spill] sm:$0xff] }
 0x745   : > { %3873 = vmatpush1.bf16.msra.mxu0 %v8970_v27  ;;  %3914 = vmatpush1.bf16.msra.mxu1 %v8971_v9  ;;  %v8981_v27 = vld [vmem:[#allocation34_spill] sm:$0xff]  ;;  %v8982_v9 = vld [vmem:[#allocation35_spill] sm:$0xff] }
 0x746   : > { %3874 = vmatprep.subr.bf16.mxu0 %v8972_v8  ;;  %3915 = vmatprep.subr.bf16.mxu1 %v8973_v39  ;;  %v8983_v8 = vld [vmem:[#allocation36_spill] sm:$0xff]  ;;  %v8984_v39 = vld [vmem:[#allocation37_spill] sm:$0xff] }
 0x749   : > { %3875 = vmatpush1.bf16.msra.mxu0 %v8974_v48  ;;  %3916 = vmatpush1.bf16.msra.mxu1 %v8975_v18  ;;  %v8985_v48 = vld [vmem:[#allocation38_spill] sm:$0xff]  ;;  %v8986_v18 = vld [vmem:[#allocation39_spill] sm:$0xff] }
 0x74a   : > { %3876 = vmatprep.subr.bf16.mxu0 %v8976_v36  ;;  %3917 = vmatprep.subr.bf16.mxu1 %v8977_v63  ;;  %v8987_v36 = vld [vmem:[#allocation40_spill] sm:$0xff]  ;;  %v8988_v63 = vld [vmem:[#allocation41_spill] sm:$0xff] }
 0x74d   : > { %3877 = vmatpush1.bf16.msra.mxu0 %v8978_v14  ;;  %3918 = vmatpush1.bf16.msra.mxu1 %v8979_v37  ;;  %v8989_v14 = vld [vmem:[#allocation42_spill] sm:$0xff]  ;;  %v8990_v37 = vld [vmem:[#allocation43_spill] sm:$0xff] }
 0x74e   : > { %3878 = vmatprep.subr.bf16.mxu0 %v8980_v60  ;;  %3919 = vmatprep.subr.bf16.mxu1 %v8981_v27  ;;  %v8991_v60 = vld [vmem:[#allocation44_spill] sm:$0xff]  ;;  %v8992_v27 = vld [vmem:[#allocation45_spill] sm:$0xff] }
 0x751   : > { %3879 = vmatpush1.bf16.msra.mxu0 %v8982_v9  ;;  %3920 = vmatpush1.bf16.msra.mxu1 %v8983_v8  ;;  %v8993_v9 = vld [vmem:[#allocation46_spill] sm:$0xff]  ;;  %v8994_v8 = vld [vmem:[#allocation47_spill] sm:$0xff] }
 0x752   : > { %3880 = vmatprep.subr.bf16.mxu0 %v8984_v39  ;;  %3921 = vmatprep.subr.bf16.mxu1 %v8985_v48  ;;  %v8995_v39 = vld [vmem:[#allocation48_spill] sm:$0xff]  ;;  %v8996_v48 = vld [vmem:[#allocation49_spill] sm:$0xff] }
 0x755   : > { %3881 = vmatpush1.bf16.msra.mxu0 %v8986_v18  ;;  %3922 = vmatpush1.bf16.msra.mxu1 %v8987_v36  ;;  %v8997_v18 = vld [vmem:[#allocation50_spill] sm:$0xff]  ;;  %v8998_v36 = vld [vmem:[#allocation51_spill] sm:$0xff] }
 0x756   : > { %3882 = vmatprep.subr.bf16.mxu0 %v8988_v63  ;;  %3923 = vmatprep.subr.bf16.mxu1 %v8989_v14  ;;  %v8999_v63 = vld [vmem:[#allocation52_spill] sm:$0xff]  ;;  %v9000_v14 = vld [vmem:[#allocation53_spill] sm:$0xff] }
 0x759   : > { %3883 = vmatpush1.bf16.msra.mxu0 %v8990_v37  ;;  %3924 = vmatpush1.bf16.msra.mxu1 %v8991_v60  ;;  %v9001_v37 = vld [vmem:[#allocation54_spill] sm:$0xff]  ;;  %v9002_v60 = vld [vmem:[#allocation55_spill] sm:$0xff] }
 0x75a   : > { %3884 = vmatprep.subr.bf16.mxu0 %v8992_v27  ;;  %3925 = vmatprep.subr.bf16.mxu1 %v8993_v9  ;;  %v9003_v27 = vld [vmem:[#allocation56_spill] sm:$0xff]  ;;  %v9004_v9 = vld [vmem:[#allocation57_spill] sm:$0xff] }
 0x75d   : > { %3885 = vmatpush1.bf16.msra.mxu0 %v8994_v8  ;;  %3926 = vmatpush1.bf16.msra.mxu1 %v8995_v39  ;;  %v9005_v8 = vld [vmem:[#allocation58_spill] sm:$0xff]  ;;  %v9006_v39 = vld [vmem:[#allocation59_spill] sm:$0xff] }
 0x75e   : > { %3886 = vmatprep.subr.bf16.mxu0 %v8996_v48  ;;  %3927 = vmatprep.subr.bf16.mxu1 %v8997_v18  ;;  %v9007_v48 = vld [vmem:[#allocation60_spill] sm:$0xff]  ;;  %v9008_v18 = vld [vmem:[#allocation61_spill] sm:$0xff] }
 0x761   : > { %3887 = vmatpush1.bf16.msra.mxu0 %v8998_v36  ;;  %3928 = vmatpush1.bf16.msra.mxu1 %v8999_v63  ;;  %v9009_v36 = vld [vmem:[#allocation62_spill] sm:$0xff]  ;;  %v9010_v63 = vld [vmem:[#allocation63_spill] sm:$0xff] }
 0x762   : > { %3888 = vmatprep.subr.bf16.mxu0 %v9000_v14  ;;  %3929 = vmatprep.subr.bf16.mxu1 %v9001_v37  ;;  %v9011_v14 = vld [vmem:[#allocation64_spill] sm:$0xff]  ;;  %v9012_v37 = vld [vmem:[#allocation65_spill] sm:$0xff] }
 0x765   : > { %3889 = vmatpush1.bf16.msra.mxu0 %v9002_v60  ;;  %3930 = vmatpush1.bf16.msra.mxu1 %v9003_v27  ;;  %v9013_v60 = vld [vmem:[#allocation66_spill] sm:$0xff]  ;;  %v9014_v27 = vld [vmem:[#allocation67_spill] sm:$0xff] }
 0x766   : > { %3890 = vmatprep.subr.bf16.mxu0 %v9004_v9  ;;  %3931 = vmatprep.subr.bf16.mxu1 %v9005_v8  ;;  %v9015_v9 = vld [vmem:[#allocation68_spill] sm:$0xff]  ;;  %v9016_v8 = vld [vmem:[#allocation69_spill] sm:$0xff] }
 0x769   : > { %3891 = vmatpush1.bf16.msra.mxu0 %v9006_v39  ;;  %3932 = vmatpush1.bf16.msra.mxu1 %v9007_v48  ;;  %v9017_v39 = vld [vmem:[#allocation70_spill] sm:$0xff] }
 0x76a   : > { %3892 = vmatprep.subr.bf16.mxu0 %v9008_v18  ;;  %3933 = vmatprep.subr.bf16.mxu1 %v9009_v36 }
 0x76d   : > { %3893 = vmatpush1.bf16.msra.mxu0 %v9010_v63  ;;  %3934 = vmatpush1.bf16.msra.mxu1 %v9011_v14 }
 0x76e   : > { %3894 = vmatprep.subr.bf16.mxu0 %v9012_v37  ;;  %3935 = vmatprep.subr.bf16.mxu1 %v9013_v60 }
 0x771   : > { %3895 = vmatpush1.bf16.msra.mxu0 %v9014_v27  ;;  %3936 = vmatpush1.bf16.msra.mxu1 %v9015_v9 }
 0x772   : > { %3946 = vmatprep.subr.bf16.mxu0 %v9016_v8  ;;  %3987 = vmatprep.subr.bf16.mxu1 %v9017_v39 }
 0x7c7   : > { %v3665_v48 = vpop.f32.mrb[72].mxu0  ;;  %v3706_v18 = vpop.f32.mrb[72].mxu1 }
 0x7c8   : > { %v3795_v36 = vadd.f32 %v3665_v48, %v9018_v5  ;;  %v3797_v63 = vadd.f32 %v3706_v18, %v9019_v21  ;;  %v3667_v7 = vpop.f32.mrb[73].mxu0  ;;  %v3708_v14 = vpop.f32.mrb[73].mxu1 }
 0x7c9   : > { %v3796_v37 = vadd.f32 %v3667_v7, %v9020_v24  ;;  %v3798_v60 = vadd.f32 %v3708_v14, %v9021_v54  ;;  %v3669_v26 = vpop.f32.mrb[74].mxu0  ;;  %v3710_v27 = vpop.f32.mrb[74].mxu1 }
 0x7ca   : > { %v3670_v51 = vpop.f32.mrb[75].mxu0  ;;  %v3711_v9 = vpop.f32.mrb[75].mxu1  ;;  %v4982_v6 = vmul.f32 -1.442695, %v3795_v36  ;;  %v4984_v8 = vmul.f32 -1.442695, %v3797_v63 }
 0x7cb   : > { %v4983_v38 = vmul.f32 -1.442695, %v3796_v37  ;;  %v4985_v39 = vmul.f32 -1.442695, %v3798_v60  ;;  %v9022_v9 = vld [vmem:[#allocation176_spill] sm:$0xff]  ;;  %v9023_v63 = vld [vmem:[#allocation177_spill] sm:$0xff] }
 0x7cc   : > { %5243 = vpow2.f32 %v4982_v6  ;;  %v9025_v37 = vld [vmem:[#allocation179_spill] sm:$0xff] }
 0x7cd   : > { %5245 = vpow2.f32 %v4984_v8 }
 0x7ce   : > { %5247 = vpow2.f32 %v4983_v38 }
 0x7cf   : > { %5249 = vpow2.f32 %v4985_v39  ;;  %v9024_v39 = vld [vmem:[#allocation178_spill] sm:$0xff] }
 0x7d6   : > { %v5244_v5 = vpop.eup %5243 }
 0x7d7   : > { %v5246_v21 = vpop.eup %5245  ;;  %v3821_v0 = vadd.f32 1.0, %v5244_v5 }
 0x7d8   : > { %v5248_v48 = vpop.eup %5247  ;;  %v3823_v24 = vadd.f32 1.0, %v5246_v21 }
 0x7d9   : > { %v5250_v18 = vpop.eup %5249  ;;  %v3822_v7 = vadd.f32 1.0, %v5248_v48  ;;  %5251 = vrcp.f32 %v3821_v0 }
 0x7da   : > { %v3824_v54 = vadd.f32 1.0, %v5250_v18  ;;  %5253 = vrcp.f32 %v3823_v24 }
 0x7db   : > { %5255 = vrcp.f32 %v3822_v7 }
 0x7dc   : > { %5257 = vrcp.f32 %v3824_v54 }
 0x7e3   : > { %v5252_v24 = vpop.eup %5251 }
 0x7e4   : > { %v5254_v7 = vpop.eup %5253 }
 0x807   : > { %v3747_v51 = vpop.f32.mrb[76].mxu0  ;;  %v3788_v26 = vpop.f32.mrb[76].mxu1 }
 0x808   : > { %v3799_v36 = vadd.f32 %v3747_v51, %v9022_v9  ;;  %v3801_v6 = vadd.f32 %v3788_v26, %v9023_v63  ;;  %v3749_v8 = vpop.f32.mrb[77].mxu0  ;;  %v3790_v38 = vpop.f32.mrb[77].mxu1  ;;  %v3841_v63 = vmul.f32 %v5254_v7, %v7602_v40  ;;  %v9026_v7 = vld [vmem:[#allocation111_spill] sm:$0xff] }
 0x809   : > { %v3800_v14 = vadd.f32 %v3749_v8, %v9024_v39  ;;  %v3802_v60 = vadd.f32 %v3790_v38, %v9025_v37  ;;  %v3751_v27 = vpop.f32.mrb[78].mxu0  ;;  %v3792_v5 = vpop.f32.mrb[78].mxu1 }
 0x80a   : > { %v4986_v21 = vmul.f32 -1.442695, %v3799_v36  ;;  %5259 = vtanh.f32 %v3801_v6  ;;  %v3752_v0 = vpop.f32.mrb[79].mxu0  ;;  %v3793_v48 = vpop.f32.mrb[79].mxu1 }
 0x80b   : > { %v4987_v18 = vmul.f32 -1.442695, %v3800_v14  ;;  %5261 = vtanh.f32 %v3802_v60  ;;  %v5256_v51 = vpop.eup %5255 }
 0x80c   : > { %5263 = vpow2.f32 %v4986_v21  ;;  %v5258_v26 = vpop.eup %5257 }
 0x80d   : > { %5265 = vpow2.f32 %v4987_v18  ;;  %v3842_v39 = vmul.f32 %v5258_v26, %v7604_v34  ;;  %v9028_v26 = vld [vmem:[#allocation113_spill] sm:$0xff] }
 0x814   : > { %v5260_v9 = vpop.eup %5259 }
 0x815   : > { %v5262_v54 = vpop.eup %5261  ;;  %v3843_v8 = vmul.f32 %v5260_v9, %v5252_v24  ;;  %v9029_v9 = vld [vmem:[#allocation114_spill] sm:$0xff] }
 0x816   : > { %v5264_v38 = vpop.eup %5263  ;;  %v3844_v36 = vmul.f32 %v5262_v54, %v5256_v51  ;;  %v9027_v51 = vld [vmem:[#allocation112_spill] sm:$0xff]  ;;  %v9030_v54 = vld [vmem:[#allocation115_spill] sm:$0xff] }
 0x817   : > { %v5266_v6 = vpop.eup %5265  ;;  %v3825_v37 = vadd.f32 1.0, %v5264_v38  ;;  %v7752_v27 = vadd.f32 %v3843_v8, %v3841_v63  ;;  %v9031_v63 = vld [vmem:[#allocation116_spill] sm:$0xff]  ;;  %v9032_v8 = vld [vmem:[#allocation117_spill] sm:$0xff]  ;;  %v9033_v38 = vld [vmem:[#allocation118_spill] sm:$0xff] }
 0x818   : > { %v3826_v14 = vadd.f32 1.0, %v5266_v6  ;;  %v7754_v60 = vadd.f32 %v3844_v36, %v3842_v39  ;;  %v9034_v39 = vld [vmem:[#allocation119_spill] sm:$0xff]  ;;  %v9035_v36 = vld [vmem:[#allocation120_spill] sm:$0xff]  ;;  %v9036_v6 = vld [vmem:[#allocation121_spill] sm:$0xff] }
 0x819   : > { %5267 = vrcp.f32 %v3825_v37  ;;  %v9037_v37 = vld [vmem:[#allocation122_spill] sm:$0xff] }
 0x81a   : > { %5269 = vtanh.f32 %v7752_v27 }
 0x81b   : > { %5271 = vrcp.f32 %v3826_v14  ;;  %v9038_v14 = vld [vmem:[#allocation123_spill] sm:$0xff] }
 0x81c   : > { %5273 = vtanh.f32 %v7754_v60 }
 0x823   : > { %v5268_v5 = vpop.eup %5267 }
 0x824   : > { %v5270_v40 = vpop.eup %5269 }
 0x825   : > { %v5272_v21 = vpop.eup %5271  ;;  %v3849_v48 = vmul.f32 %v5270_v40, %v5268_v5  ;;  %v9039_v5 = vld [vmem:[#allocation124_spill] sm:$0xff]  ;;  %v9040_v40 = vld [vmem:[#allocation125_spill] sm:$0xff] }
 0x826   : > { %v5274_v0 = vpop.eup %5273 }
 0x827   : > { %v3850_v34 = vmul.f32 %v5274_v0, %v5272_v21  ;;  %v7758_v24 = vpack.c.bf16 %v3849_v48, %v3849_v48  ;;  %v9041_v21 = vld [vmem:[#allocation126_spill] sm:$0xff]  ;;  %v9042_v0 = vld [vmem:[#allocation127_spill] sm:$0xff]  ;;  %v9043_v48 = vld [vmem:[#allocation128_spill] sm:$0xff] }
 0x829   : > { %v3863_v18 = vpack.c.bf16 %v3850_v34, %v3850_v34  ;;  %v9044_v34 = vld [vmem:[#allocation129_spill] sm:$0xff] }
 0x82b   : > { %3896 = vmatprep.mubr.bf16.mxu0 %v3863_v18  ;;  %3937 = vmatprep.mubr.bf16.mxu1 %v3863_v18 }
 0x82c   : > { %3897 = vmatmul.mubr.bf16.vlgmr.msra.gmra.mrb[80].mxu0 %v7758_v24  ;;  %3938 = vmatmul.mubr.bf16.vlgmr.msra.gmra.mrb[80].mxu1 %v7758_v24 }
 0x82d   : > { %3947 = vmatpush1.bf16.msra.mxu0 %v6334_v41  ;;  %3988 = vmatpush1.bf16.msra.mxu1 %v8542_v3 }
 0x82e   : > { %3978 = vmatprep.mubr.bf16.mxu0 %v3863_v18  ;;  %4019 = vmatprep.mubr.bf16.mxu1 %v3863_v18  ;;  %v9045_v18 = vld [vmem:[#allocation130_spill] sm:$0xff] }
 0x82f   : > { %3948 = vmatprep.subr.bf16.mxu0 %v8543_v16  ;;  %3989 = vmatprep.subr.bf16.mxu1 %v8544_v55 }
 0x831   : > { %3949 = vmatpush1.bf16.msra.mxu0 %v8545_v57  ;;  %3990 = vmatpush1.bf16.msra.mxu1 %v8546_v15 }
 0x832   : > { %3950 = vmatprep.subr.bf16.mxu0 %v8547_v52  ;;  %3991 = vmatprep.subr.bf16.mxu1 %v8548_v22 }
 0x835   : > { %3951 = vmatpush1.bf16.msra.mxu0 %v8549_v23  ;;  %3992 = vmatpush1.bf16.msra.mxu1 %v8550_v56 }
 0x836   : > { %3952 = vmatprep.subr.bf16.mxu0 %v8551_v25  ;;  %3993 = vmatprep.subr.bf16.mxu1 %v8552_v61 }
 0x839   : > { %3953 = vmatpush1.bf16.msra.mxu0 %v8553_v62  ;;  %3994 = vmatpush1.bf16.msra.mxu1 %v8554_v58 }
 0x83a   : > { %3954 = vmatprep.subr.bf16.mxu0 %v8555_v2  ;;  %3995 = vmatprep.subr.bf16.mxu1 %v8556_v4 }
 0x83d   : > { %3955 = vmatpush1.bf16.msra.mxu0 %v8557_v17  ;;  %3996 = vmatpush1.bf16.msra.mxu1 %v8558_v29 }
 0x83e   : > { %3956 = vmatprep.subr.bf16.mxu0 %v8559_v53  ;;  %3997 = vmatprep.subr.bf16.mxu1 %v8646_v44 }
 0x841   : > { %3957 = vmatpush1.bf16.msra.mxu0 %v8647_v32  ;;  %3998 = vmatpush1.bf16.msra.mxu1 %v8648_v33 }
 0x842   : > { %3958 = vmatprep.subr.bf16.mxu0 %v8649_v43  ;;  %3999 = vmatprep.subr.bf16.mxu1 %v8650_v35 }
 0x845   : > { %3959 = vmatpush1.bf16.msra.mxu0 %v8651_v42  ;;  %4000 = vmatpush1.bf16.msra.mxu1 %v8652_v19 }
 0x846   : > { %3960 = vmatprep.subr.bf16.mxu0 %v8653_v50  ;;  %4001 = vmatprep.subr.bf16.mxu1 %v8654_v20 }
 0x849   : > { %3961 = vmatpush1.bf16.msra.mxu0 %v8741_v1  ;;  %4002 = vmatpush1.bf16.msra.mxu1 %v8742_v59 }
 0x84a   : > { %3962 = vmatprep.subr.bf16.mxu0 %v8657_v31  ;;  %4003 = vmatprep.subr.bf16.mxu1 %v8658_v30 }
 0x84d   : > { %3963 = vmatpush1.bf16.msra.mxu0 %v8659_v49  ;;  %4004 = vmatpush1.bf16.msra.mxu1 %v8660_v46 }
 0x84e   : > { %3964 = vmatprep.subr.bf16.mxu0 %v8661_v45  ;;  %4005 = vmatprep.subr.bf16.mxu1 %v8662_v28 }
 0x851   : > { %3965 = vmatpush1.bf16.msra.mxu0 %v8663_v10  ;;  %4006 = vmatpush1.bf16.msra.mxu1 %v8664_v47 }
 0x852   : > { %3966 = vmatprep.subr.bf16.mxu0 %v8665_v11  ;;  %4007 = vmatprep.subr.bf16.mxu1 %v8666_v12 }
 0x855   : > { %3967 = vmatpush1.bf16.msra.mxu0 %v8667_v13  ;;  %4008 = vmatpush1.bf16.msra.mxu1 %v9026_v7 }
 0x856   : > { %3968 = vmatprep.subr.bf16.mxu0 %v9027_v51  ;;  %4009 = vmatprep.subr.bf16.mxu1 %v9028_v26 }
 0x859   : > { %3969 = vmatpush1.bf16.msra.mxu0 %v9029_v9  ;;  %4010 = vmatpush1.bf16.msra.mxu1 %v9030_v54 }
 0x85a   : > { %3970 = vmatprep.subr.bf16.mxu0 %v9031_v63  ;;  %4011 = vmatprep.subr.bf16.mxu1 %v9032_v8  ;;  %v9115_v8 = vld [vmem:[#allocation154_spill] sm:$0xff]  ;;  %v9116_v63 = vld [vmem:[#allocation155_spill] sm:$0xff] }
 0x85d   : > { %3971 = vmatpush1.bf16.msra.mxu0 %v9033_v38  ;;  %4012 = vmatpush1.bf16.msra.mxu1 %v9034_v39  ;;  %v9114_v39 = vld [vmem:[#allocation153_spill] sm:$0xff] }
 0x85e   : > { %3972 = vmatprep.subr.bf16.mxu0 %v9035_v36  ;;  %4013 = vmatprep.subr.bf16.mxu1 %v9036_v6  ;;  %v9046_v36 = vld [vmem:[#allocation131_spill] sm:$0xff]  ;;  %v9047_v6 = vld [vmem:[#allocation5_spill] sm:$0xff] }
 0x861   : > { %3973 = vmatpush1.bf16.msra.mxu0 %v9037_v37  ;;  %4014 = vmatpush1.bf16.msra.mxu1 %v9038_v14  ;;  %v9048_v37 = vld [vmem:[#allocation6_spill] sm:$0xff]  ;;  %v9113_v14 = vld [vmem:[#allocation152_spill] sm:$0xff] }
 0x862   : > { %3974 = vmatprep.subr.bf16.mxu0 %v9039_v5  ;;  %4015 = vmatprep.subr.bf16.mxu1 %v9040_v40  ;;  %v9049_v40 = vld [vmem:[#allocation7_spill] sm:$0xff]  ;;  %v9058_v5 = vld [vmem:[#allocation16_spill] sm:$0xff] }
 0x865   : > { %3975 = vmatpush1.bf16.msra.mxu0 %v9041_v21  ;;  %4016 = vmatpush1.bf16.msra.mxu1 %v9042_v0  ;;  %v9050_v21 = vld [vmem:[#allocation8_spill] sm:$0xff]  ;;  %v9051_v0 = vld [vmem:[#allocation9_spill] sm:$0xff] }
 0x866   : > { %3976 = vmatprep.subr.bf16.mxu0 %v9043_v48  ;;  %4017 = vmatprep.subr.bf16.mxu1 %v9044_v34  ;;  %v9052_v48 = vld [vmem:[#allocation10_spill] sm:$0xff]  ;;  %v9053_v34 = vld [vmem:[#allocation11_spill] sm:$0xff] }
 0x869   : > { %3977 = vmatpush1.bf16.msra.mxu0 %v9045_v18  ;;  %4018 = vmatpush1.bf16.msra.mxu1 %v9046_v36  ;;  %v9054_v18 = vld [vmem:[#allocation12_spill] sm:$0xff]  ;;  %v9055_v36 = vld [vmem:[#allocation13_spill] sm:$0xff] }
 0x86a   : > { %4097 = vmatprep.subr.bf16.mxu0 %v9047_v6  ;;  %4138 = vmatprep.subr.bf16.mxu1 %v9048_v37  ;;  %v9056_v6 = vld [vmem:[#allocation14_spill] sm:$0xff]  ;;  %v9057_v37 = vld [vmem:[#allocation15_spill] sm:$0xff] }
 0x86c   : > { %3979 = vmatmul.mubr.bf16.vlgmr.msra.gmra.mrb[84].mxu0 %v7758_v24  ;;  %4020 = vmatmul.mubr.bf16.vlgmr.msra.gmra.mrb[84].mxu1 %v7758_v24  ;;  %v9059_v24 = vld [vmem:[#allocation17_spill] sm:$0xff] }
 0x86d   : > { %4098 = vmatpush1.bf16.msra.mxu0 %v9049_v40  ;;  %4139 = vmatpush1.bf16.msra.mxu1 %v9050_v21  ;;  %v9060_v40 = vld [vmem:[#allocation18_spill] sm:$0xff]  ;;  %v9061_v21 = vld [vmem:[#allocation19_spill] sm:$0xff] }
 0x86e   : > { %4099 = vmatprep.subr.bf16.mxu0 %v9051_v0  ;;  %4140 = vmatprep.subr.bf16.mxu1 %v9052_v48  ;;  %v9062_v0 = vld [vmem:[#allocation20_spill] sm:$0xff]  ;;  %v9063_v48 = vld [vmem:[#allocation21_spill] sm:$0xff] }
 0x871   : > { %4100 = vmatpush1.bf16.msra.mxu0 %v9053_v34  ;;  %4141 = vmatpush1.bf16.msra.mxu1 %v9054_v18  ;;  %v9064_v34 = vld [vmem:[#allocation22_spill] sm:$0xff]  ;;  %v9065_v18 = vld [vmem:[#allocation23_spill] sm:$0xff] }
 0x872   : > { %4101 = vmatprep.subr.bf16.mxu0 %v9055_v36  ;;  %4142 = vmatprep.subr.bf16.mxu1 %v9056_v6  ;;  %v9066_v36 = vld [vmem:[#allocation24_spill] sm:$0xff]  ;;  %v9067_v6 = vld [vmem:[#allocation25_spill] sm:$0xff] }
 0x875   : > { %4102 = vmatpush1.bf16.msra.mxu0 %v9057_v37  ;;  %4143 = vmatpush1.bf16.msra.mxu1 %v9058_v5  ;;  %v9068_v37 = vld [vmem:[#allocation26_spill] sm:$0xff]  ;;  %v9069_v5 = vld [vmem:[#allocation27_spill] sm:$0xff] }
 0x876   : > { %4103 = vmatprep.subr.bf16.mxu0 %v9059_v24  ;;  %4144 = vmatprep.subr.bf16.mxu1 %v9060_v40  ;;  %v9070_v24 = vld [vmem:[#allocation28_spill] sm:$0xff]  ;;  %v9071_v40 = vld [vmem:[#allocation29_spill] sm:$0xff] }
 0x879   : > { %4104 = vmatpush1.bf16.msra.mxu0 %v9061_v21  ;;  %4145 = vmatpush1.bf16.msra.mxu1 %v9062_v0  ;;  %v9072_v21 = vld [vmem:[#allocation30_spill] sm:$0xff]  ;;  %v9073_v0 = vld [vmem:[#allocation31_spill] sm:$0xff] }
 0x87a   : > { %4105 = vmatprep.subr.bf16.mxu0 %v9063_v48  ;;  %4146 = vmatprep.subr.bf16.mxu1 %v9064_v34  ;;  %v9074_v48 = vld [vmem:[#allocation32_spill] sm:$0xff]  ;;  %v9075_v34 = vld [vmem:[#allocation33_spill] sm:$0xff] }
 0x87d   : > { %4106 = vmatpush1.bf16.msra.mxu0 %v9065_v18  ;;  %4147 = vmatpush1.bf16.msra.mxu1 %v9066_v36  ;;  %v9076_v18 = vld [vmem:[#allocation34_spill] sm:$0xff]  ;;  %v9077_v36 = vld [vmem:[#allocation35_spill] sm:$0xff] }
 0x87e   : > { %4107 = vmatprep.subr.bf16.mxu0 %v9067_v6  ;;  %4148 = vmatprep.subr.bf16.mxu1 %v9068_v37  ;;  %v9078_v6 = vld [vmem:[#allocation36_spill] sm:$0xff]  ;;  %v9079_v37 = vld [vmem:[#allocation37_spill] sm:$0xff] }
 0x881   : > { %4108 = vmatpush1.bf16.msra.mxu0 %v9069_v5  ;;  %4149 = vmatpush1.bf16.msra.mxu1 %v9070_v24  ;;  %v9080_v5 = vld [vmem:[#allocation38_spill] sm:$0xff]  ;;  %v9081_v24 = vld [vmem:[#allocation39_spill] sm:$0xff] }
 0x882   : > { %4109 = vmatprep.subr.bf16.mxu0 %v9071_v40  ;;  %4150 = vmatprep.subr.bf16.mxu1 %v9072_v21  ;;  %v9082_v40 = vld [vmem:[#allocation40_spill] sm:$0xff]  ;;  %v9083_v21 = vld [vmem:[#allocation41_spill] sm:$0xff] }
 0x885   : > { %4110 = vmatpush1.bf16.msra.mxu0 %v9073_v0  ;;  %4151 = vmatpush1.bf16.msra.mxu1 %v9074_v48  ;;  %v9084_v0 = vld [vmem:[#allocation42_spill] sm:$0xff]  ;;  %v9085_v48 = vld [vmem:[#allocation43_spill] sm:$0xff] }
 0x886   : > { %4111 = vmatprep.subr.bf16.mxu0 %v9075_v34  ;;  %4152 = vmatprep.subr.bf16.mxu1 %v9076_v18  ;;  %v9086_v34 = vld [vmem:[#allocation44_spill] sm:$0xff]  ;;  %v9087_v18 = vld [vmem:[#allocation45_spill] sm:$0xff] }
 0x889   : > { %4112 = vmatpush1.bf16.msra.mxu0 %v9077_v36  ;;  %4153 = vmatpush1.bf16.msra.mxu1 %v9078_v6  ;;  %v9088_v36 = vld [vmem:[#allocation46_spill] sm:$0xff]  ;;  %v9089_v6 = vld [vmem:[#allocation47_spill] sm:$0xff] }
 0x88a   : > { %4113 = vmatprep.subr.bf16.mxu0 %v9079_v37  ;;  %4154 = vmatprep.subr.bf16.mxu1 %v9080_v5  ;;  %v9090_v37 = vld [vmem:[#allocation48_spill] sm:$0xff]  ;;  %v9091_v5 = vld [vmem:[#allocation49_spill] sm:$0xff] }
 0x88d   : > { %4114 = vmatpush1.bf16.msra.mxu0 %v9081_v24  ;;  %4155 = vmatpush1.bf16.msra.mxu1 %v9082_v40  ;;  %v9092_v24 = vld [vmem:[#allocation50_spill] sm:$0xff]  ;;  %v9093_v40 = vld [vmem:[#allocation51_spill] sm:$0xff] }
 0x88e   : > { %4115 = vmatprep.subr.bf16.mxu0 %v9083_v21  ;;  %4156 = vmatprep.subr.bf16.mxu1 %v9084_v0  ;;  %v9094_v21 = vld [vmem:[#allocation52_spill] sm:$0xff]  ;;  %v9095_v0 = vld [vmem:[#allocation53_spill] sm:$0xff] }
 0x891   : > { %4116 = vmatpush1.bf16.msra.mxu0 %v9085_v48  ;;  %4157 = vmatpush1.bf16.msra.mxu1 %v9086_v34  ;;  %v9096_v48 = vld [vmem:[#allocation54_spill] sm:$0xff]  ;;  %v9097_v34 = vld [vmem:[#allocation55_spill] sm:$0xff] }
 0x892   : > { %4117 = vmatprep.subr.bf16.mxu0 %v9087_v18  ;;  %4158 = vmatprep.subr.bf16.mxu1 %v9088_v36  ;;  %v9098_v18 = vld [vmem:[#allocation56_spill] sm:$0xff]  ;;  %v9099_v36 = vld [vmem:[#allocation57_spill] sm:$0xff] }
 0x895   : > { %4118 = vmatpush1.bf16.msra.mxu0 %v9089_v6  ;;  %4159 = vmatpush1.bf16.msra.mxu1 %v9090_v37  ;;  %v9100_v6 = vld [vmem:[#allocation58_spill] sm:$0xff]  ;;  %v9101_v37 = vld [vmem:[#allocation59_spill] sm:$0xff] }
 0x896   : > { %4119 = vmatprep.subr.bf16.mxu0 %v9091_v5  ;;  %4160 = vmatprep.subr.bf16.mxu1 %v9092_v24  ;;  %v9102_v5 = vld [vmem:[#allocation60_spill] sm:$0xff]  ;;  %v9103_v24 = vld [vmem:[#allocation61_spill] sm:$0xff] }
 0x899   : > { %4120 = vmatpush1.bf16.msra.mxu0 %v9093_v40  ;;  %4161 = vmatpush1.bf16.msra.mxu1 %v9094_v21  ;;  %v9104_v40 = vld [vmem:[#allocation62_spill] sm:$0xff]  ;;  %v9105_v21 = vld [vmem:[#allocation63_spill] sm:$0xff] }
 0x89a   : > { %4121 = vmatprep.subr.bf16.mxu0 %v9095_v0  ;;  %4162 = vmatprep.subr.bf16.mxu1 %v9096_v48  ;;  %v9106_v0 = vld [vmem:[#allocation64_spill] sm:$0xff]  ;;  %v9107_v48 = vld [vmem:[#allocation65_spill] sm:$0xff] }
 0x89d   : > { %4122 = vmatpush1.bf16.msra.mxu0 %v9097_v34  ;;  %4163 = vmatpush1.bf16.msra.mxu1 %v9098_v18  ;;  %v9108_v34 = vld [vmem:[#allocation66_spill] sm:$0xff]  ;;  %v9109_v18 = vld [vmem:[#allocation67_spill] sm:$0xff] }
 0x89e   : > { %4123 = vmatprep.subr.bf16.mxu0 %v9099_v36  ;;  %4164 = vmatprep.subr.bf16.mxu1 %v9100_v6  ;;  %v9110_v36 = vld [vmem:[#allocation68_spill] sm:$0xff]  ;;  %v9111_v6 = vld [vmem:[#allocation69_spill] sm:$0xff] }
 0x8a1   : > { %4124 = vmatpush1.bf16.msra.mxu0 %v9101_v37  ;;  %4165 = vmatpush1.bf16.msra.mxu1 %v9102_v5  ;;  %v9112_v37 = vld [vmem:[#allocation70_spill] sm:$0xff] }
 0x8a2   : > { %4125 = vmatprep.subr.bf16.mxu0 %v9103_v24  ;;  %4166 = vmatprep.subr.bf16.mxu1 %v9104_v40 }
 0x8a5   : > { %4126 = vmatpush1.bf16.msra.mxu0 %v9105_v21  ;;  %4167 = vmatpush1.bf16.msra.mxu1 %v9106_v0 }
 0x8a6   : > { %4127 = vmatprep.subr.bf16.mxu0 %v9107_v48  ;;  %4168 = vmatprep.subr.bf16.mxu1 %v9108_v34 }
 0x8a9   : > { %4128 = vmatpush1.bf16.msra.mxu0 %v9109_v18  ;;  %4169 = vmatpush1.bf16.msra.mxu1 %v9110_v36 }
 0x8aa   : > { %4179 = vmatprep.subr.bf16.mxu0 %v9111_v6  ;;  %4220 = vmatprep.subr.bf16.mxu1 %v9112_v37 }
 0x8ff   : > { %v3898_v5 = vpop.f32.mrb[80].mxu0  ;;  %v3939_v24 = vpop.f32.mrb[80].mxu1 }
 0x900   : > { %v4028_v40 = vadd.f32 %v3898_v5, %v9113_v14  ;;  %v4030_v21 = vadd.f32 %v3939_v24, %v9114_v39  ;;  %v3900_v38 = vpop.f32.mrb[81].mxu0  ;;  %v3941_v0 = vpop.f32.mrb[81].mxu1 }
 0x901   : > { %v4029_v48 = vadd.f32 %v3900_v38, %v9115_v8  ;;  %v4031_v34 = vadd.f32 %v3941_v0, %v9116_v63  ;;  %v3902_v54 = vpop.f32.mrb[82].mxu0  ;;  %v3943_v18 = vpop.f32.mrb[82].mxu1  ;;  %v9118_v0 = vld [vmem:[#allocation181_spill] sm:$0xff] }
 0x902   : > { %v3903_v9 = vpop.f32.mrb[83].mxu0  ;;  %v3944_v36 = vpop.f32.mrb[83].mxu1  ;;  %v4988_v26 = vmul.f32 -1.442695, %v4028_v40  ;;  %v4990_v6 = vmul.f32 -1.442695, %v4030_v21 }
 0x903   : > { %v4989_v51 = vmul.f32 -1.442695, %v4029_v48  ;;  %v4991_v37 = vmul.f32 -1.442695, %v4031_v34  ;;  %v9117_v40 = vld [vmem:[#allocation180_spill] sm:$0xff]  ;;  %v9119_v34 = vld [vmem:[#allocation182_spill] sm:$0xff] }
 0x904   : > { %5275 = vpow2.f32 %v4988_v26  ;;  %v9120_v36 = vld [vmem:[#allocation183_spill] sm:$0xff] }
 0x905   : > { %5277 = vpow2.f32 %v4990_v6 }
 0x906   : > { %5279 = vpow2.f32 %v4989_v51 }
 0x907   : > { %5281 = vpow2.f32 %v4991_v37 }
 0x90e   : > { %v5276_v14 = vpop.eup %5275 }
 0x90f   : > { %v5278_v39 = vpop.eup %5277  ;;  %v4054_v7 = vadd.f32 1.0, %v5276_v14 }
 0x910   : > { %v5280_v5 = vpop.eup %5279  ;;  %v4056_v8 = vadd.f32 1.0, %v5278_v39 }
 0x911   : > { %v5282_v24 = vpop.eup %5281  ;;  %v4055_v38 = vadd.f32 1.0, %v5280_v5  ;;  %5283 = vrcp.f32 %v4054_v7 }
 0x912   : > { %v4057_v63 = vadd.f32 1.0, %v5282_v24  ;;  %5285 = vrcp.f32 %v4056_v8 }
 0x913   : > { %5287 = vrcp.f32 %v4055_v38 }
 0x914   : > { %5289 = vrcp.f32 %v4057_v63 }
 0x91b   : > { %v5284_v8 = vpop.eup %5283 }
 0x91c   : > { %v5286_v38 = vpop.eup %5285 }
 0x93f   : > { %v3980_v9 = vpop.f32.mrb[84].mxu0  ;;  %v4021_v54 = vpop.f32.mrb[84].mxu1 }
 0x940   : > { %v4032_v21 = vadd.f32 %v3980_v9, %v9117_v40  ;;  %v4034_v26 = vadd.f32 %v4021_v54, %v9118_v0  ;;  %v3982_v48 = vpop.f32.mrb[85].mxu0  ;;  %v4023_v51 = vpop.f32.mrb[85].mxu1  ;;  %v4074_v0 = vmul.f32 %v5286_v38, %v7752_v27 }
 0x941   : > { %v4033_v18 = vadd.f32 %v3982_v48, %v9119_v34  ;;  %v4035_v6 = vadd.f32 %v4023_v51, %v9120_v36  ;;  %v3984_v37 = vpop.f32.mrb[86].mxu0  ;;  %v4025_v14 = vpop.f32.mrb[86].mxu1 }
 0x942   : > { %v4992_v39 = vmul.f32 -1.442695, %v4032_v21  ;;  %5291 = vtanh.f32 %v4034_v26  ;;  %v3985_v7 = vpop.f32.mrb[87].mxu0  ;;  %v4026_v5 = vpop.f32.mrb[87].mxu1 }
 0x943   : > { %v4993_v24 = vmul.f32 -1.442695, %v4033_v18  ;;  %5293 = vtanh.f32 %v4035_v6  ;;  %v5288_v9 = vpop.eup %5287 }
 0x944   : > { %5295 = vpow2.f32 %v4992_v39  ;;  %v5290_v54 = vpop.eup %5289 }
 0x945   : > { %5297 = vpow2.f32 %v4993_v24  ;;  %v4075_v34 = vmul.f32 %v5290_v54, %v7754_v60 }
 0x94c   : > { %v5292_v40 = vpop.eup %5291 }
 0x94d   : > { %v5294_v63 = vpop.eup %5293  ;;  %v4076_v48 = vmul.f32 %v5292_v40, %v5284_v8 }
 0x94e   : > { %v5296_v51 = vpop.eup %5295  ;;  %v4077_v21 = vmul.f32 %v5294_v63, %v5288_v9 }
 0x94f   : > { %v5298_v26 = vpop.eup %5297  ;;  %v4058_v36 = vadd.f32 1.0, %v5296_v51  ;;  %v7902_v37 = vadd.f32 %v4076_v48, %v4074_v0 }
 0x950   : > { %v4059_v18 = vadd.f32 1.0, %v5298_v26  ;;  %v7904_v6 = vadd.f32 %v4077_v21, %v4075_v34  ;;  %v9146_v26 = vld [vmem:[#allocation184_spill] sm:$0xff] }
 0x951   : > { %5299 = vrcp.f32 %v4058_v36 }
 0x952   : > { %5301 = vtanh.f32 %v7902_v37 }
 0x953   : > { %5303 = vrcp.f32 %v4059_v18  ;;  %v9147_v18 = vld [vmem:[#allocation185_spill] sm:$0xff] }
 0x954   : > { %5305 = vtanh.f32 %v7904_v6 }
 0x95b   : > { %v5300_v14 = vpop.eup %5299 }
 0x95c   : > { %v5302_v27 = vpop.eup %5301 }
 0x95d   : > { %v5304_v39 = vpop.eup %5303  ;;  %v4082_v5 = vmul.f32 %v5302_v27, %v5300_v14 }
 0x95e   : > { %v5306_v7 = vpop.eup %5305 }
 0x95f   : > { %v4083_v60 = vmul.f32 %v5306_v7, %v5304_v39  ;;  %v7908_v8 = vpack.c.bf16 %v4082_v5, %v4082_v5  ;;  %v9148_v7 = vld [vmem:[#allocation186_spill] sm:$0xff] }
 0x961   : > { %v4096_v24 = vpack.c.bf16 %v4083_v60, %v4083_v60  ;;  %v9149_v60 = vld [vmem:[#allocation187_spill] sm:$0xff] }
 0x963   : > { %4129 = vmatprep.mubr.bf16.mxu0 %v4096_v24  ;;  %4170 = vmatprep.mubr.bf16.mxu1 %v4096_v24 }
 0x964   : > { %4130 = vmatmul.mubr.bf16.vlgmr.msra.gmra.mrb[88].mxu0 %v7908_v8  ;;  %4171 = vmatmul.mubr.bf16.vlgmr.msra.gmra.mrb[88].mxu1 %v7908_v8 }
 0x965   : > { %4180 = vmatpush1.bf16.msra.mxu0 %v6334_v41  ;;  %4221 = vmatpush1.bf16.msra.mxu1 %v8542_v3  ;;  %v9121_v41 = vld [vmem:[#allocation111_spill] sm:$0xff]  ;;  %v9122_v3 = vld [vmem:[#allocation112_spill] sm:$0xff] }
 0x966   : > { %4211 = vmatprep.mubr.bf16.mxu0 %v4096_v24  ;;  %4252 = vmatprep.mubr.bf16.mxu1 %v4096_v24 }
 0x967   : > { %4181 = vmatprep.subr.bf16.mxu0 %v8543_v16  ;;  %4222 = vmatprep.subr.bf16.mxu1 %v8544_v55  ;;  %v9123_v16 = vld [vmem:[#allocation113_spill] sm:$0xff]  ;;  %v9124_v55 = vld [vmem:[#allocation114_spill] sm:$0xff] }
 0x969   : > { %4182 = vmatpush1.bf16.msra.mxu0 %v8545_v57  ;;  %4223 = vmatpush1.bf16.msra.mxu1 %v8546_v15  ;;  %v9125_v57 = vld [vmem:[#allocation115_spill] sm:$0xff]  ;;  %v9126_v15 = vld [vmem:[#allocation116_spill] sm:$0xff] }
 0x96a   : > { %4183 = vmatprep.subr.bf16.mxu0 %v8547_v52  ;;  %4224 = vmatprep.subr.bf16.mxu1 %v8548_v22  ;;  %v9127_v52 = vld [vmem:[#allocation117_spill] sm:$0xff]  ;;  %v9128_v22 = vld [vmem:[#allocation118_spill] sm:$0xff] }
 0x96d   : > { %4184 = vmatpush1.bf16.msra.mxu0 %v8549_v23  ;;  %4225 = vmatpush1.bf16.msra.mxu1 %v8550_v56  ;;  %v9129_v23 = vld [vmem:[#allocation119_spill] sm:$0xff]  ;;  %v9130_v56 = vld [vmem:[#allocation120_spill] sm:$0xff] }
 0x96e   : > { %4185 = vmatprep.subr.bf16.mxu0 %v8551_v25  ;;  %4226 = vmatprep.subr.bf16.mxu1 %v8552_v61  ;;  %v9131_v25 = vld [vmem:[#allocation121_spill] sm:$0xff]  ;;  %v9132_v61 = vld [vmem:[#allocation122_spill] sm:$0xff] }
 0x971   : > { %4186 = vmatpush1.bf16.msra.mxu0 %v8553_v62  ;;  %4227 = vmatpush1.bf16.msra.mxu1 %v8554_v58  ;;  %v9133_v62 = vld [vmem:[#allocation123_spill] sm:$0xff]  ;;  %v9134_v58 = vld [vmem:[#allocation124_spill] sm:$0xff] }
 0x972   : > { %4187 = vmatprep.subr.bf16.mxu0 %v8555_v2  ;;  %4228 = vmatprep.subr.bf16.mxu1 %v8556_v4  ;;  %v9135_v2 = vld [vmem:[#allocation125_spill] sm:$0xff]  ;;  %v9136_v4 = vld [vmem:[#allocation126_spill] sm:$0xff] }
 0x975   : > { %4188 = vmatpush1.bf16.msra.mxu0 %v8557_v17  ;;  %4229 = vmatpush1.bf16.msra.mxu1 %v8558_v29  ;;  %v9137_v17 = vld [vmem:[#allocation127_spill] sm:$0xff]  ;;  %v9138_v29 = vld [vmem:[#allocation128_spill] sm:$0xff] }
 0x976   : > { %4189 = vmatprep.subr.bf16.mxu0 %v8559_v53  ;;  %4230 = vmatprep.subr.bf16.mxu1 %v8646_v44  ;;  %v9139_v53 = vld [vmem:[#allocation129_spill] sm:$0xff]  ;;  %v9140_v44 = vld [vmem:[#allocation130_spill] sm:$0xff] }
 0x979   : > { %4190 = vmatpush1.bf16.msra.mxu0 %v8647_v32  ;;  %4231 = vmatpush1.bf16.msra.mxu1 %v8648_v33  ;;  %v9141_v32 = vld [vmem:[#allocation131_spill] sm:$0xff] }
 0x97a   : > { %4191 = vmatprep.subr.bf16.mxu0 %v8649_v43  ;;  %4232 = vmatprep.subr.bf16.mxu1 %v8650_v35  ;;  %v9142_v35 = vld [vmem:[#allocation156_spill] sm:$0xff] }
 0x97d   : > { %4192 = vmatpush1.bf16.msra.mxu0 %v8651_v42  ;;  %4233 = vmatpush1.bf16.msra.mxu1 %v8652_v19  ;;  %v9143_v19 = vld [vmem:[#allocation157_spill] sm:$0xff] }
 0x97e   : > { %4193 = vmatprep.subr.bf16.mxu0 %v8653_v50  ;;  %4234 = vmatprep.subr.bf16.mxu1 %v8654_v20 }
 0x981   : > { %4194 = vmatpush1.bf16.msra.mxu0 %v8741_v1  ;;  %4235 = vmatpush1.bf16.msra.mxu1 %v8742_v59 }
 0x982   : > { %4195 = vmatprep.subr.bf16.mxu0 %v8657_v31  ;;  %4236 = vmatprep.subr.bf16.mxu1 %v8658_v30  ;;  %v9145_v30 = vld [vmem:[#allocation159_spill] sm:$0xff] }
 0x985   : > { %4196 = vmatpush1.bf16.msra.mxu0 %v8659_v49  ;;  %4237 = vmatpush1.bf16.msra.mxu1 %v8660_v46 }
 0x986   : > { %4197 = vmatprep.subr.bf16.mxu0 %v8661_v45  ;;  %4238 = vmatprep.subr.bf16.mxu1 %v8662_v28 }
 0x989   : > { %4198 = vmatpush1.bf16.msra.mxu0 %v8663_v10  ;;  %4239 = vmatpush1.bf16.msra.mxu1 %v8664_v47 }
 0x98a   : > { %4199 = vmatprep.subr.bf16.mxu0 %v8665_v11  ;;  %4240 = vmatprep.subr.bf16.mxu1 %v8666_v12 }
 0x98d   : > { %4200 = vmatpush1.bf16.msra.mxu0 %v8667_v13  ;;  %4241 = vmatpush1.bf16.msra.mxu1 %v9121_v41  ;;  %v9144_v13 = vld [vmem:[#allocation158_spill] sm:$0xff] }
 0x98e   : > { %4201 = vmatprep.subr.bf16.mxu0 %v9122_v3  ;;  %4242 = vmatprep.subr.bf16.mxu1 %v9123_v16 }
 0x991   : > { %4202 = vmatpush1.bf16.msra.mxu0 %v9124_v55  ;;  %4243 = vmatpush1.bf16.msra.mxu1 %v9125_v57 }
 0x992   : > { %4203 = vmatprep.subr.bf16.mxu0 %v9126_v15  ;;  %4244 = vmatprep.subr.bf16.mxu1 %v9127_v52 }
 0x995   : > { %4204 = vmatpush1.bf16.msra.mxu0 %v9128_v22  ;;  %4245 = vmatpush1.bf16.msra.mxu1 %v9129_v23 }
 0x996   : > { %4205 = vmatprep.subr.bf16.mxu0 %v9130_v56  ;;  %4246 = vmatprep.subr.bf16.mxu1 %v9131_v25 }
 0x999   : > { %4206 = vmatpush1.bf16.msra.mxu0 %v9132_v61  ;;  %4247 = vmatpush1.bf16.msra.mxu1 %v9133_v62 }
 0x99a   : > { %4207 = vmatprep.subr.bf16.mxu0 %v9134_v58  ;;  %4248 = vmatprep.subr.bf16.mxu1 %v9135_v2 }
 0x99d   : > { %4208 = vmatpush1.bf16.msra.mxu0 %v9136_v4  ;;  %4249 = vmatpush1.bf16.msra.mxu1 %v9137_v17 }
 0x99e   : > { %4209 = vmatprep.subr.bf16.mxu0 %v9138_v29  ;;  %4250 = vmatprep.subr.bf16.mxu1 %v9139_v53 }
 0x9a1   : > { %4210 = vmatpush1.bf16.msra.mxu0 %v9140_v44  ;;  %4251 = vmatpush1.bf16.msra.mxu1 %v9141_v32 }
 0x9a4   : > { %4212 = vmatmul.mubr.bf16.vlgmr.msra.gmra.mrb[92].mxu0 %v7908_v8  ;;  %4253 = vmatmul.mubr.bf16.vlgmr.msra.gmra.mrb[92].mxu1 %v7908_v8 }
 0xa37   : > { %v4131_v33 = vpop.f32.mrb[88].mxu0  ;;  %v4172_v43 = vpop.f32.mrb[88].mxu1 }
 0xa38   : > { %v4261_v42 = vadd.f32 %v4131_v33, %v9142_v35  ;;  %v4263_v50 = vadd.f32 %v4172_v43, %v9143_v19  ;;  %v4133_v20 = vpop.f32.mrb[89].mxu0  ;;  %v4174_v12 = vpop.f32.mrb[89].mxu1 }
 0xa39   : > { %v4262_v31 = vadd.f32 %v4133_v20, %v9144_v13  ;;  %v4264_v49 = vadd.f32 %v4174_v12, %v9145_v30  ;;  %v4135_v46 = vpop.f32.mrb[90].mxu0  ;;  %v4176_v45 = vpop.f32.mrb[90].mxu1  ;;  %v5340_v20 = vld [vmem:[%s8068_s6] sm:$0xff] (!%p5000_p6)   ;;  %v5341_v12 = vld [vmem:[%s8068_s6 + $0x48] sm:$0xff] (!%p5000_p6)   ;;  %v5344_v30 = vld [vmem:[%s8068_s6 + $0x10] sm:$0xff] (!%p5000_p6)  }
 0xa3a   : > { %v4136_v28 = vpop.f32.mrb[91].mxu0  ;;  %v4177_v10 = vpop.f32.mrb[91].mxu1  ;;  %v4994_v47 = vmul.f32 -1.442695, %v4261_v42  ;;  %v4996_v11 = vmul.f32 -1.442695, %v4263_v50 }
 0xa3b   : > { %v4995_v1 = vmul.f32 -1.442695, %v4262_v31  ;;  %v4997_v59 = vmul.f32 -1.442695, %v4264_v49  ;;  %v5342_v13 = vld [vmem:[%s8068_s6 + $0x8] sm:$0xff] (!%p5000_p6)   ;;  %v5343_v31 = vld [vmem:[%s8068_s6 + $0x50] sm:$0xff] (!%p5000_p6)  }
 0xa3c   : > { %5307 = vpow2.f32 %v4994_v47  ;;  %v5345_v49 = vld [vmem:[%s8068_s6 + $0x58] sm:$0xff] (!%p5000_p6)   ;;  %v5347_v45 = vld [vmem:[%s8068_s6 + $0x60] sm:$0xff] (!%p5000_p6)   ;;  %v5349_v10 = vld [vmem:[%s8068_s6 + $0x68] sm:$0xff] (!%p5000_p6)  }
 0xa3d   : > { %5309 = vpow2.f32 %v4996_v11  ;;  %v5346_v46 = vld [vmem:[%s8068_s6 + $0x18] sm:$0xff] (!%p5000_p6)   ;;  %v5348_v28 = vld [vmem:[%s8068_s6 + $0x20] sm:$0xff] (!%p5000_p6)   ;;  %v5350_v47 = vld [vmem:[%s8068_s6 + $0x28] sm:$0xff] (!%p5000_p6)  }
 0xa3e   : > { %5311 = vpow2.f32 %v4995_v1  ;;  %v5351_v11 = vld [vmem:[%s8068_s6 + $0x70] sm:$0xff] (!%p5000_p6)  }
 0xa3f   : > { %5313 = vpow2.f32 %v4997_v59  ;;  %v5352_v1 = vld [vmem:[%s8068_s6 + $0x30] sm:$0xff] (!%p5000_p6)   ;;  %v5353_v59 = vld [vmem:[%s8068_s6 + $0x78] sm:$0xff] (!%p5000_p6)  }
 0xa46   : > { %v5308_v38 = vpop.eup %5307 }
 0xa47   : > { %v5310_v9 = vpop.eup %5309  ;;  %v4287_v63 = vadd.f32 1.0, %v5308_v38  ;;  %v5354_v38 = vld [vmem:[%s8068_s6 + $0x38] sm:$0xff] (!%p5000_p6)  }
 0xa48   : > { %v5312_v54 = vpop.eup %5311  ;;  %v4289_v0 = vadd.f32 1.0, %v5310_v9 }
 0xa49   : > { %v5314_v40 = vpop.eup %5313  ;;  %v4288_v48 = vadd.f32 1.0, %v5312_v54  ;;  %5315 = vrcp.f32 %v4287_v63 }
 0xa4a   : > { %v4290_v51 = vadd.f32 1.0, %v5314_v40  ;;  %5317 = vrcp.f32 %v4289_v0  ;;  %v5001_v40 = vld [vmem:[%s8069_s7] ss:$0 sm:$0xff] (!%p5000_p6) }
 0xa4b   : > { %5319 = vrcp.f32 %v4288_v48 }
 0xa4c   : > { %5321 = vrcp.f32 %v4290_v51 }
 0xa53   : > { %v5316_v15 = vpop.eup %5315 }
 0xa54   : > { %v5318_v52 = vpop.eup %5317 }
 0xa55   : > { %v5320_v22 = vpop.eup %5319  ;;  %v4307_v61 = vmul.f32 %v5318_v52, %v7902_v37 }
 0xa56   : > { %v5322_v23 = vpop.eup %5321 }
 0xa57   : > { %v4308_v2 = vmul.f32 %v5322_v23, %v7904_v6  ;;  %v5339_v6 = vld [vmem:[%s8068_s6 + $0x40] sm:$0xff] (!%p5000_p6)  }
 0xa58   : > { %5025 = vmatprep.subr.bf16.mxu0 (!%p5000_p6), %v5339_v6 }
 0xa59   : > { %5026 = vmatpush3.bf16.msra.mxu0 (!%p5000_p6), %v5340_v20 }
 0xa5a   : > { %5027 = vmatprep.subr.bf16.mxu0 (!%p5000_p6), %v5341_v12 }
 0xa5d   : > { %5028 = vmatpush3.bf16.msra.mxu0 (!%p5000_p6), %v5342_v13 }
 0xa5e   : > { %5029 = vmatprep.subr.bf16.mxu0 (!%p5000_p6), %v5343_v31 }
 0xa61   : > { %5030 = vmatpush3.bf16.msra.mxu0 (!%p5000_p6), %v5344_v30 }
 0xa62   : > { %5031 = vmatprep.subr.bf16.mxu0 (!%p5000_p6), %v5345_v49 }
 0xa65   : > { %5032 = vmatpush3.bf16.msra.mxu0 (!%p5000_p6), %v5346_v46 }
 0xa66   : > { %5033 = vmatprep.subr.bf16.mxu0 (!%p5000_p6), %v5347_v45 }
 0xa69   : > { %5034 = vmatpush3.bf16.msra.mxu0 (!%p5000_p6), %v5348_v28 }
 0xa6a   : > { %5035 = vmatprep.subr.bf16.mxu0 (!%p5000_p6), %v5349_v10 }
 0xa6d   : > { %5036 = vmatpush3.bf16.msra.mxu0 (!%p5000_p6), %v5350_v47 }
 0xa6e   : > { %5037 = vmatprep.subr.bf16.mxu0 (!%p5000_p6), %v5351_v11 }
 0xa71   : > { %5038 = vmatpush3.bf16.msra.mxu0 (!%p5000_p6), %v5352_v1 }
 0xa72   : > { %5039 = vmatprep.subr.bf16.mxu0 (!%p5000_p6), %v5353_v59 }
 0xa75   : > { %5040 = vmatpush3.bf16.msra.mxu0 (!%p5000_p6), %v5354_v38 }
 0xa77   : > { %v4213_v34 = vpop.f32.mrb[92].mxu0  ;;  %v4254_v21 = vpop.f32.mrb[92].mxu1 }
 0xa78   : > { %v4265_v36 = vadd.f32 %v4213_v34, %v9146_v26  ;;  %v4267_v14 = vadd.f32 %v4254_v21, %v9147_v18  ;;  %v4215_v27 = vpop.f32.mrb[93].mxu0  ;;  %v4256_v39 = vpop.f32.mrb[93].mxu1 }
 0xa79   : > { %v4266_v5 = vadd.f32 %v4215_v27, %v9148_v7  ;;  %v4268_v24 = vadd.f32 %v4256_v39, %v9149_v60  ;;  %v4217_v8 = vpop.f32.mrb[94].mxu0  ;;  %v4258_v41 = vpop.f32.mrb[94].mxu1 }
 0xa7a   : > { %v4998_v3 = vmul.f32 -1.442695, %v4265_v36  ;;  %5323 = vtanh.f32 %v4267_v14  ;;  %v4218_v16 = vpop.f32.mrb[95].mxu0  ;;  %v4259_v55 = vpop.f32.mrb[95].mxu1 }
 0xa7b   : > { %v4999_v57 = vmul.f32 -1.442695, %v4266_v5  ;;  %5325 = vtanh.f32 %v4268_v24 }
 0xa7c   : > { %5327 = vpow2.f32 %v4998_v3 }
 0xa7d   : > { %5329 = vpow2.f32 %v4999_v57 }
 0xa84   : > { %v5324_v56 = vpop.eup %5323 }
 0xa85   : > { %v5326_v25 = vpop.eup %5325  ;;  %v4309_v62 = vmul.f32 %v5324_v56, %v5316_v15 }
 0xa86   : > { %v5328_v58 = vpop.eup %5327  ;;  %v4310_v4 = vmul.f32 %v5326_v25, %v5320_v22 }
 0xa87   : > { %v5330_v17 = vpop.eup %5329  ;;  %v4291_v29 = vadd.f32 1.0, %v5328_v58  ;;  %v4311_v53 = vadd.f32 %v4309_v62, %v4307_v61 }
 0xa88   : > { %v4292_v44 = vadd.f32 1.0, %v5330_v17  ;;  %v4312_v32 = vadd.f32 %v4310_v4, %v4308_v2 }
 0xa89   : > { %5331 = vrcp.f32 %v4291_v29  ;;  %4319 = vst [vmem:[#allocation3] sm:$0xff] %v4311_v53  ;;  %4327 = vst [vmem:[%s8072_s10] sm:$0xff] (!%p5000_p6), %v4311_v53 }
 0xa8a   : > { %5333 = vtanh.f32 %v4311_v53  ;;  %4320 = vst [vmem:[#allocation3 + $0x8] sm:$0xff] %v4312_v32  ;;  %4328 = vst [vmem:[%s8072_s10 + $0x8] sm:$0xff] (!%p5000_p6), %v4312_v32 }
 0xa8b   : > { %5335 = vrcp.f32 %v4292_v44 }
 0xa8c   : > { %5337 = vtanh.f32 %v4312_v32 }
 0xa93   : > { %v5332_v33 = vpop.eup %5331  ;;  %4324 = sbr.rel (%p5000_p6) target bundleno = 2960 (0xb90), region = 60 }
 0xa94   : > { %v5334_v43 = vpop.eup %5333 }
 0xa95   : > { %v5336_v35 = vpop.eup %5335  ;;  %v4315_v37 = vmul.f32 %v5334_v43, %v5332_v33 }
 0xa96   : > { %v5338_v42 = vpop.eup %5337 }
 0xa97   : > { %4317 = vst [vmem:[#allocation2] sm:$0xff] %v4315_v37  ;;  %v4316_v19 = vmul.f32 %v5338_v42, %v5336_v35  ;;  %4325 = vst [vmem:[%s8071_s9] sm:$0xff] (!%p5000_p6), %v4315_v37  ;;  %v4329_v9 = vpack.c.bf16 (!%p5000_p6), %v4315_v37, %v4315_v37 }
 0xa99   : > { %4318 = vst [vmem:[#allocation2 + $0x8] sm:$0xff] %v4316_v19  ;;  %4326 = vst [vmem:[%s8071_s9 + $0x8] sm:$0xff] (!%p5000_p6), %v4316_v19  ;;  %v4330_v50 = vpack.c.bf16 (!%p5000_p6), %v4316_v19, %v4316_v19 }
 0xa9b   : > { %4498 = vmatprep.mubr.bf16.mxu0 %v4330_v50 }
 0xa9c   : > { %4499 = vmatmul.mubr.bf16.vlgmr.msra.gmra.mrb[0].mxu0 %v4329_v9 }
 0xb6f   : > { %v5041_v54 = vpop.f32.mrb[0].mxu0 }
 0xb70   : > { %v5042_v63 = vpop.f32.mrb[1].mxu0 }
 0xb71   : > { %v5043_v0 = vadd.f32 %v5042_v63, %v5041_v54  ;;  %v5044_v48 = vpop.f32.mrb[2].mxu0 }
 0xb72   : > { %v5045_v51 = vpop.f32.mrb[3].mxu0 }
 0xb73   : > { %v4501_v34 = vadd.f32 %v5043_v0, %v5001_v40 }
 0xb75   : > { %v5018_v21 = vmul.f32 -1.442695, %v4501_v34 }
 0xb77   : > { %5355 = vpow2.f32 %v5018_v21 }
 0xb81   : > { %v5356_v26 = vpop.eup %5355 }
 0xb82   : > { %v4509_v36 = vadd.f32 1.0, %v5356_v26 }
 0xb84   : > { %5357 = vrcp.f32 %v4509_v36 }
 0xb8e   : > { %v5358_v18 = vpop.eup %5357 }
 0xb8f   : > { %4512 = vst [vmem:[%s8070_s8] sm:$0xff] %v5358_v18 }
 0xb90 PF: > { %s21_s15 = sadd.s32 1, %s5381_s15   ;;  %s9150_s13 = smov %s5377_s14 }
 0xb91   : > { %p18_p7 = scmp.ge.s32.totalorder %s21_s15, 4   ;;  %s9151_s14 = smov %s9153_s16 }
 0xb93   :  { %20 = sbr.rel (!%p18_p7) target bundleno = 2 (0x2), region = 128 }

</bundles_post_ra>
